<compile_context>
chip_gen: v6e
topology: v6e:2x2x1
jax: 0.10.0
libtpu: 0.0.40
codegen_flags: <defaults>
</compile_context>

<pallas_src>
import functools

import jax
import jax.numpy as jnp
from jax.experimental import pallas as pl
from jax.experimental.pallas import tpu as pltpu

EPS = 1e-5   # BatchNorm2d default eps
LANE = 128   # TPU lane width


def _round_up(x, m):
    return (x + m - 1) // m * m


# ---------------------------------------------------------------------------
# Pallas kernels
# ---------------------------------------------------------------------------
def _fill_padded_tile(pad_ref, interior, h, w, p):
    """Write `interior` (h, w, cp) into the centre of the padded VMEM tile and
    zero only the halo border (cheaper than re-zeroing the whole tile)."""
    wp = w + 2 * p
    cp = pad_ref.shape[-1]
    zrow = jnp.zeros((p, wp, cp), jnp.float32)
    zcol = jnp.zeros((h, p, cp), jnp.float32)
    pad_ref[0:p, :, :] = zrow                        # top halo rows
    pad_ref[p + h:p + h + p, :, :] = zrow            # bottom halo rows
    pad_ref[p:p + h, 0:p, :] = zcol                  # left halo cols
    pad_ref[p:p + h, p + w:p + w + p, :] = zcol      # right halo cols
    pad_ref[p:p + h, p:p + w, :] = interior          # centre


def _conv_accumulate(pad_ref, w_ref, h, w, cp, k):
    """'same' KxK conv as K*K shifted MXU matmuls over the padded VMEM tile."""
    acc = jnp.zeros((h * w, cp), jnp.float32)
    for kh in range(k):
        for kw in range(k):
            patch = pad_ref[kh:kh + h, kw:kw + w, :]            # (h, w, cp)
            acc = acc + jnp.dot(patch.reshape(h * w, cp),
                                w_ref[kh * k + kw],
                                preferred_element_type=jnp.float32)
    return acc


def _write_stats(st_ref, acc):
    """Per-image partial BN stats: sum and sum-of-squares over H*W (one pass)."""
    st_ref[0, 0:1, :] = jnp.sum(acc, axis=0, keepdims=True)
    st_ref[0, 1:2, :] = jnp.sum(acc * acc, axis=0, keepdims=True)


def _conv_stats_kernel(x_ref, w_ref, yc_ref, st_ref, pad_ref, *, k):
    """Stage 1: y = conv1(x) (bias folded away by BN); emits BN1 partial stats."""
    _, h, w, cp = x_ref.shape
    p = k // 2
    _fill_padded_tile(pad_ref, x_ref[0], h, w, p)
    acc = _conv_accumulate(pad_ref, w_ref, h, w, cp, k)
    yc_ref[0] = acc.reshape(h, w, cp)
    _write_stats(st_ref, acc)


def _bn_relu_conv_stats_kernel(yc_ref, sc_ref, sh_ref, w_ref, zc_ref, st_ref,
                               pad_ref, *, k):
    """Stage 2: z = conv2(relu(bn1(y))) with folded BN1 affine; emits BN2 stats."""
    _, h, w, cp = yc_ref.shape
    p = k // 2
    yn = jnp.maximum(yc_ref[0] * sc_ref[0] + sh_ref[0], 0.0)   # fused BN1 + ReLU
    _fill_padded_tile(pad_ref, yn, h, w, p)
    acc = _conv_accumulate(pad_ref, w_ref, h, w, cp, k)
    zc_ref[0] = acc.reshape(h, w, cp)
    _write_stats(st_ref, acc)


def _residual_bn_relu_kernel(x_ref, zc_ref, sc_ref, sh_ref, o_ref):
    """Stage 3: out = relu(x + bn2(conv2_out)) with folded BN2 affine."""
    o_ref[0] = jnp.maximum(x_ref[0] + zc_ref[0] * sc_ref[0] + sh_ref[0], 0.0)


# ---------------------------------------------------------------------------
# pallas_call plumbing
# ---------------------------------------------------------------------------
def _img_spec(h, w, cp):
    return pl.BlockSpec((1, h, w, cp), lambda i: (i, 0, 0, 0))


def _vec_spec(cp):
    return pl.BlockSpec((1, cp), lambda i: (0, 0))


def _conv_call(x_nhwc, w_flat, *, k):
    n, h, w, cp = x_nhwc.shape
    p, kk = k // 2, k * k
    flops = 2 * n * h * w * kk * cp * cp
    bytes_acc = 4 * (x_nhwc.size + w_flat.size + n * h * w * cp + n * 2 * cp)
    return pl.pallas_call(
        functools.partial(_conv_stats_kernel, k=k),
        out_shape=(jax.ShapeDtypeStruct((n, h, w, cp), jnp.float32),
                   jax.ShapeDtypeStruct((n, 2, cp), jnp.float32)),
        grid=(n,),
        in_specs=[_img_spec(h, w, cp),
                  pl.BlockSpec((kk, cp, cp), lambda i: (0, 0, 0))],
        out_specs=(_img_spec(h, w, cp),
                   pl.BlockSpec((1, 2, cp), lambda i: (i, 0, 0))),
        scratch_shapes=[pltpu.VMEM((h + 2 * p, w + 2 * p, cp), jnp.float32)],
        compiler_params=pltpu.CompilerParams(dimension_semantics=("parallel",)),
        cost_estimate=pl.CostEstimate(flops=flops, transcendentals=0,
                                      bytes_accessed=bytes_acc),
    )(x_nhwc, w_flat)


def _bn_relu_conv_call(yc, scale, shift, w_flat, *, k):
    n, h, w, cp = yc.shape
    p, kk = k // 2, k * k
    flops = 2 * n * h * w * kk * cp * cp
    bytes_acc = 4 * (yc.size + w_flat.size + 2 * cp + n * h * w * cp + n * 2 * cp)
    return pl.pallas_call(
        functools.partial(_bn_relu_conv_stats_kernel, k=k),
        out_shape=(jax.ShapeDtypeStruct((n, h, w, cp), jnp.float32),
                   jax.ShapeDtypeStruct((n, 2, cp), jnp.float32)),
        grid=(n,),
        in_specs=[_img_spec(h, w, cp), _vec_spec(cp), _vec_spec(cp),
                  pl.BlockSpec((kk, cp, cp), lambda i: (0, 0, 0))],
        out_specs=(_img_spec(h, w, cp),
                   pl.BlockSpec((1, 2, cp), lambda i: (i, 0, 0))),
        scratch_shapes=[pltpu.VMEM((h + 2 * p, w + 2 * p, cp), jnp.float32)],
        compiler_params=pltpu.CompilerParams(dimension_semantics=("parallel",)),
        cost_estimate=pl.CostEstimate(flops=flops, transcendentals=0,
                                      bytes_accessed=bytes_acc),
    )(yc, scale, shift, w_flat)


def _residual_call(x_nhwc, zc, scale, shift):
    n, h, w, cp = x_nhwc.shape
    flops = 3 * n * h * w * cp
    bytes_acc = 4 * (3 * n * h * w * cp + 2 * cp)
    return pl.pallas_call(
        _residual_bn_relu_kernel,
        out_shape=jax.ShapeDtypeStruct((n, h, w, cp), jnp.float32),
        grid=(n,),
        in_specs=[_img_spec(h, w, cp), _img_spec(h, w, cp),
                  _vec_spec(cp), _vec_spec(cp)],
        out_specs=_img_spec(h, w, cp),
        compiler_params=pltpu.CompilerParams(dimension_semantics=("parallel",)),
        cost_estimate=pl.CostEstimate(flops=flops, transcendentals=0,
                                      bytes_accessed=bytes_acc),
    )(x_nhwc, zc, scale, shift)


def _bn_fold(stats, gamma, beta, count):
    """Reduce per-image partial stats and fold BN into one scale/shift (tiny glue)."""
    s = jnp.sum(stats[:, 0, :], axis=0)
    ss = jnp.sum(stats[:, 1, :], axis=0)
    mean = s / count
    var = jnp.maximum(ss / count - mean * mean, 0.0)
    scale = gamma * jax.lax.rsqrt(var + EPS)
    shift = beta - mean * scale
    return scale[None, :], shift[None, :]


def resblock_forward(x_nchw, params, k=3):
    """ResBlock forward. x_nchw: (N, C, H, W) float32. Returns (N, C, H, W)."""
    (w1, b1, g1, be1, w2, b2, g2, be2) = params
    # Conv bias added before training-mode BatchNorm is exactly cancelled by the
    # mean subtraction -> dropped from the kernels (saves a full-tensor VALU add).
    del b1, b2
    assert k % 2 == 1, "only odd kernel sizes ('same' padding) supported"

    n, c, h, w = x_nchw.shape
    cp = max(LANE, _round_up(c, LANE))   # lane-dense channel padding
    kk = k * k

    # NHWC, channels zero-padded to a multiple of 128 lanes.
    x = jnp.transpose(x_nchw, (0, 2, 3, 1)).astype(jnp.float32)
    x = jnp.pad(x, ((0, 0), (0, 0), (0, 0), (0, cp - c)))

    def pad_w(wt):                      # (K, K, Ci, Co) HWIO -> (K*K, Cp, Cp)
        wt = jnp.pad(wt.astype(jnp.float32),
                     ((0, 0), (0, 0),
                      (0, cp - wt.shape[2]), (0, cp - wt.shape[3])))
        return wt.reshape(kk, cp, cp)

    def pad_vec(v, fill):
        return jnp.pad(v.astype(jnp.float32), (0, cp - v.shape[0]),
                       constant_values=fill)

    w1p, w2p = pad_w(w1), pad_w(w2)
    g1p, be1p = pad_vec(g1, 1.0), pad_vec(be1, 0.0)
    g2p, be2p = pad_vec(g2, 1.0), pad_vec(be2, 0.0)

    count = jnp.float32(n * h * w)

    # Stage 1: conv1 (+ BN1 partial stats)
    y1c, st1 = _conv_call(x, w1p, k=k)
    sc1, sh1 = _bn_fold(st1, g1p, be1p, count)

    # Stage 2: relu(bn1(.)) fused with conv2 (+ BN2 partial stats)
    y2c, st2 = _bn_relu_conv_call(y1c, sc1, sh1, w2p, k=k)
    sc2, sh2 = _bn_fold(st2, g2p, be2p, count)

    # Stage 3: residual + bn2 affine + relu
    out = _residual_call(x, y2c, sc2, sh2)

    return jnp.transpose(out[..., :c], (0, 3, 1, 2))   # back to NCHW


# ---------------------------------------------------------------------------
# Pure-JAX reference (for correctness check) — uses the conv bias explicitly.
# ---------------------------------------------------------------------------
def _reference(x_nchw, params):
    (w1, b1, g1, be1, w2, b2, g2, be2) = params
    x = jnp.transpose(x_nchw, (0, 2, 3, 1))

    def conv(z, wt, b):
        return jax.lax.conv_general_dilated(
            z, wt, (1, 1), "SAME",
            dimension_numbers=("NHWC", "HWIO", "NHWC")) + b

    def bn(z, g, be):
        mean = jnp.mean(z, axis=(0, 1, 2), keepdims=True)
        var = jnp.mean(jnp.square(z - mean), axis=(0, 1, 2), keepdims=True)
        return (z - mean) * jax.lax.rsqrt(var + EPS) * g + be

    y = jax.nn.relu(bn(conv(x, w1, b1), g1, be1))
    y = bn(conv(y, w2, b2), g2, be2)
    return jnp.transpose(jax.nn.relu(x + y), (0, 3, 1, 2))


# ---------------------------------------------------------------------------
if __name__ == "__main__":
    N, C, H, W, K = 2, 4, 16, 16, 3   # in_channels == out_channels == 4

    key = jax.random.PRNGKey(0)
    kx, kw1, kb1, kw2, kb2 = jax.random.split(key, 5)

    x = jax.random.normal(kx, (N, C, H, W), jnp.float32)

    # Conv2d-style init (uniform, bound 1/sqrt(fan_in)), HWIO layout.
    bound = 1.0 / (C * K * K) ** 0.5
    w1 = jax.random.uniform(kw1, (K, K, C, C), jnp.float32, -bound, bound)
    b1 = jax.random.uniform(kb1, (C,), jnp.float32, -bound, bound)
    w2 = jax.random.uniform(kw2, (K, K, C, C), jnp.float32, -bound, bound)
    b2 = jax.random.uniform(kb2, (C,), jnp.float32, -bound, bound)
    g1 = jnp.ones((C,), jnp.float32); be1 = jnp.zeros((C,), jnp.float32)
    g2 = jnp.ones((C,), jnp.float32); be2 = jnp.zeros((C,), jnp.float32)
    params = (w1, b1, g1, be1, w2, b2, g2, be2)

    out = jax.block_until_ready(resblock_forward(x, params, k=K))
    ref = jax.block_until_ready(_reference(x, params))

    if out.shape != (N, C, H, W):
        raise AssertionError(f"bad output shape {out.shape}")
    if not jnp.allclose(out, ref, rtol=1e-3, atol=1e-3):
        err = float(jnp.max(jnp.abs(out - ref)))
        raise AssertionError(f"Pallas ResBlock output mismatch vs reference (max abs err {err})")

    print("KERNEL_OK")
</pallas_src>

<mosaic_0001>
module attributes {stable_mosaic.version = 11 : i64} {
  func.func @_conv_stats_kernel(%arg0: i32, %arg1: memref<1x16x16x128xf32, #tpu.memory_space<vmem>>, %arg2: memref<9x128x128xf32, #tpu.memory_space<vmem>>, %arg3: memref<1x16x16x128xf32, #tpu.memory_space<vmem>>, %arg4: memref<1x2x128xf32, #tpu.memory_space<vmem>>, %arg5: memref<18x18x128xf32, #tpu.memory_space<vmem>>) attributes {dimension_semantics = [#tpu.dimension_semantics<parallel>], iteration_bounds = array<i64: 2>, scalar_prefetch = 0 : i64, scratch_operands = 1 : i64, tpu.core_type = #tpu.core_type<tc>, window_params = [{transform_indices = @transform_0, window_bounds = array<i64: 1, 16, 16, 128>}, {pipeline_mode = #tpu.pipeline_mode<synchronous>, transform_indices = @transform_1, window_bounds = array<i64: 9, 128, 128>}, {transform_indices = @transform_2, window_bounds = array<i64: 1, 16, 16, 128>}, {transform_indices = @transform_3, window_bounds = array<i64: 1, 2, 128>}]} {
    %c0 = arith.constant 0 : index
    %c0_0 = arith.constant 0 : index
    %c0_1 = arith.constant 0 : index
    %c0_2 = arith.constant 0 : index
    %0 = vector.load %arg1[%c0, %c0_0, %c0_1, %c0_2] : memref<1x16x16x128xf32, #tpu.memory_space<vmem>>, vector<1x16x16x128xf32>
    %1 = vector.shape_cast %0 : vector<1x16x16x128xf32> to vector<16x16x128xf32>
    %cst = arith.constant 0.000000e+00 : f32
    %2 = vector.broadcast %cst : f32 to vector<1x18x128xf32>
    %cst_3 = arith.constant 0.000000e+00 : f32
    %3 = vector.broadcast %cst_3 : f32 to vector<16x1x128xf32>
    %c0_4 = arith.constant 0 : index
    %c0_5 = arith.constant 0 : index
    %c0_6 = arith.constant 0 : index
    %4 = vector.load %arg5[%c0_4, %c0_5, %c0_6] : memref<18x18x128xf32, #tpu.memory_space<vmem>>, vector<1x18x128xf32>
    tpu.vector_store %arg5[%c0_4, %c0_5, %c0_6], %2 {strides = array<i32>} : memref<18x18x128xf32, #tpu.memory_space<vmem>>, vector<1x18x128xf32>,
    %c17 = arith.constant 17 : index
    %c0_7 = arith.constant 0 : index
    %c0_8 = arith.constant 0 : index
    %5 = vector.load %arg5[%c17, %c0_7, %c0_8] : memref<18x18x128xf32, #tpu.memory_space<vmem>>, vector<1x18x128xf32>
    tpu.vector_store %arg5[%c17, %c0_7, %c0_8], %2 {strides = array<i32>} : memref<18x18x128xf32, #tpu.memory_space<vmem>>, vector<1x18x128xf32>,
    %c1 = arith.constant 1 : index
    %c0_9 = arith.constant 0 : index
    %c0_10 = arith.constant 0 : index
    %6 = vector.load %arg5[%c1, %c0_9, %c0_10] : memref<18x18x128xf32, #tpu.memory_space<vmem>>, vector<16x1x128xf32>
    tpu.vector_store %arg5[%c1, %c0_9, %c0_10], %3 {strides = array<i32>} : memref<18x18x128xf32, #tpu.memory_space<vmem>>, vector<16x1x128xf32>,
    %c1_11 = arith.constant 1 : index
    %c17_12 = arith.constant 17 : index
    %c0_13 = arith.constant 0 : index
    %7 = vector.load %arg5[%c1_11, %c17_12, %c0_13] : memref<18x18x128xf32, #tpu.memory_space<vmem>>, vector<16x1x128xf32>
    tpu.vector_store %arg5[%c1_11, %c17_12, %c0_13], %3 {strides = array<i32>} : memref<18x18x128xf32, #tpu.memory_space<vmem>>, vector<16x1x128xf32>,
    %c1_14 = arith.constant 1 : index
    %c1_15 = arith.constant 1 : index
    %c0_16 = arith.constant 0 : index
    %8 = vector.load %arg5[%c1_14, %c1_15, %c0_16] : memref<18x18x128xf32, #tpu.memory_space<vmem>>, vector<16x16x128xf32>
    tpu.vector_store %arg5[%c1_14, %c1_15, %c0_16], %1 {strides = array<i32>} : memref<18x18x128xf32, #tpu.memory_space<vmem>>, vector<16x16x128xf32>,
    %cst_17 = arith.constant 0.000000e+00 : f32
    %9 = vector.broadcast %cst_17 : f32 to vector<256x128xf32>
    %c0_18 = arith.constant 0 : index
    %c0_19 = arith.constant 0 : index
    %c0_20 = arith.constant 0 : index
    %10 = vector.load %arg5[%c0_18, %c0_19, %c0_20] : memref<18x18x128xf32, #tpu.memory_space<vmem>>, vector<16x16x128xf32>
    %11 = vector.shape_cast %10 : vector<16x16x128xf32> to vector<256x128xf32>
    %c0_21 = arith.constant 0 : index
    %c0_22 = arith.constant 0 : index
    %c0_23 = arith.constant 0 : index
    %12 = vector.load %arg2[%c0_21, %c0_22, %c0_23] : memref<9x128x128xf32, #tpu.memory_space<vmem>>, vector<1x128x128xf32>
    %13 = vector.shape_cast %12 : vector<1x128x128xf32> to vector<128x128xf32>
    %cst_24 = arith.constant dense<0.000000e+00> : vector<256x128xf32>
    %14 = tpu.matmul %11, %13, %cst_24 {dimension_numbers = #tpu.dot_dimension_numbers<[1], [0], [0], [1], [0, 0, 1, 1], [], []>} : vector<256x128xf32>, vector<128x128xf32>, vector<256x128xf32> -> vector<256x128xf32>
    %15 = arith.addf %9, %14 : vector<256x128xf32>
    %c0_25 = arith.constant 0 : index
    %c1_26 = arith.constant 1 : index
    %c0_27 = arith.constant 0 : index
    %16 = vector.load %arg5[%c0_25, %c1_26, %c0_27] : memref<18x18x128xf32, #tpu.memory_space<vmem>>, vector<16x16x128xf32>
    %17 = vector.shape_cast %16 : vector<16x16x128xf32> to vector<256x128xf32>
    %c1_28 = arith.constant 1 : index
    %c0_29 = arith.constant 0 : index
    %c0_30 = arith.constant 0 : index
    %18 = vector.load %arg2[%c1_28, %c0_29, %c0_30] : memref<9x128x128xf32, #tpu.memory_space<vmem>>, vector<1x128x128xf32>
    %19 = vector.shape_cast %18 : vector<1x128x128xf32> to vector<128x128xf32>
    %cst_31 = arith.constant dense<0.000000e+00> : vector<256x128xf32>
    %20 = tpu.matmul %17, %19, %cst_31 {dimension_numbers = #tpu.dot_dimension_numbers<[1], [0], [0], [1], [0, 0, 1, 1], [], []>} : vector<256x128xf32>, vector<128x128xf32>, vector<256x128xf32> -> vector<256x128xf32>
    %21 = arith.addf %15, %20 : vector<256x128xf32>
    %c0_32 = arith.constant 0 : index
    %c2 = arith.constant 2 : index
    %c0_33 = arith.constant 0 : index
    %22 = vector.load %arg5[%c0_32, %c2, %c0_33] : memref<18x18x128xf32, #tpu.memory_space<vmem>>, vector<16x16x128xf32>
    %23 = vector.shape_cast %22 : vector<16x16x128xf32> to vector<256x128xf32>
    %c2_34 = arith.constant 2 : index
    %c0_35 = arith.constant 0 : index
    %c0_36 = arith.constant 0 : index
    %24 = vector.load %arg2[%c2_34, %c0_35, %c0_36] : memref<9x128x128xf32, #tpu.memory_space<vmem>>, vector<1x128x128xf32>
    %25 = vector.shape_cast %24 : vector<1x128x128xf32> to vector<128x128xf32>
    %cst_37 = arith.constant dense<0.000000e+00> : vector<256x128xf32>
    %26 = tpu.matmul %23, %25, %cst_37 {dimension_numbers = #tpu.dot_dimension_numbers<[1], [0], [0], [1], [0, 0, 1, 1], [], []>} : vector<256x128xf32>, vector<128x128xf32>, vector<256x128xf32> -> vector<256x128xf32>
    %27 = arith.addf %21, %26 : vector<256x128xf32>
    %c1_38 = arith.constant 1 : index
    %c0_39 = arith.constant 0 : index
    %c0_40 = arith.constant 0 : index
    %28 = vector.load %arg5[%c1_38, %c0_39, %c0_40] : memref<18x18x128xf32, #tpu.memory_space<vmem>>, vector<16x16x128xf32>
    %29 = vector.shape_cast %28 : vector<16x16x128xf32> to vector<256x128xf32>
    %c3 = arith.constant 3 : index
    %c0_41 = arith.constant 0 : index
    %c0_42 = arith.constant 0 : index
    %30 = vector.load %arg2[%c3, %c0_41, %c0_42] : memref<9x128x128xf32, #tpu.memory_space<vmem>>, vector<1x128x128xf32>
    %31 = vector.shape_cast %30 : vector<1x128x128xf32> to vector<128x128xf32>
    %cst_43 = arith.constant dense<0.000000e+00> : vector<256x128xf32>
    %32 = tpu.matmul %29, %31, %cst_43 {dimension_numbers = #tpu.dot_dimension_numbers<[1], [0], [0], [1], [0, 0, 1, 1], [], []>} : vector<256x128xf32>, vector<128x128xf32>, vector<256x128xf32> -> vector<256x128xf32>
    %33 = arith.addf %27, %32 : vector<256x128xf32>
    %c1_44 = arith.constant 1 : index
    %c1_45 = arith.constant 1 : index
    %c0_46 = arith.constant 0 : index
    %34 = vector.load %arg5[%c1_44, %c1_45, %c0_46] : memref<18x18x128xf32, #tpu.memory_space<vmem>>, vector<16x16x128xf32>
    %35 = vector.shape_cast %34 : vector<16x16x128xf32> to vector<256x128xf32>
    %c4 = arith.constant 4 : index
    %c0_47 = arith.constant 0 : index
    %c0_48 = arith.constant 0 : index
    %36 = vector.load %arg2[%c4, %c0_47, %c0_48] : memref<9x128x128xf32, #tpu.memory_space<vmem>>, vector<1x128x128xf32>
    %37 = vector.shape_cast %36 : vector<1x128x128xf32> to vector<128x128xf32>
    %cst_49 = arith.constant dense<0.000000e+00> : vector<256x128xf32>
    %38 = tpu.matmul %35, %37, %cst_49 {dimension_numbers = #tpu.dot_dimension_numbers<[1], [0], [0], [1], [0, 0, 1, 1], [], []>} : vector<256x128xf32>, vector<128x128xf32>, vector<256x128xf32> -> vector<256x128xf32>
    %39 = arith.addf %33, %38 : vector<256x128xf32>
    %c1_50 = arith.constant 1 : index
    %c2_51 = arith.constant 2 : index
    %c0_52 = arith.constant 0 : index
    %40 = vector.load %arg5[%c1_50, %c2_51, %c0_52] : memref<18x18x128xf32, #tpu.memory_space<vmem>>, vector<16x16x128xf32>
    %41 = vector.shape_cast %40 : vector<16x16x128xf32> to vector<256x128xf32>
    %c5 = arith.constant 5 : index
    %c0_53 = arith.constant 0 : index
    %c0_54 = arith.constant 0 : index
    %42 = vector.load %arg2[%c5, %c0_53, %c0_54] : memref<9x128x128xf32, #tpu.memory_space<vmem>>, vector<1x128x128xf32>
    %43 = vector.shape_cast %42 : vector<1x128x128xf32> to vector<128x128xf32>
    %cst_55 = arith.constant dense<0.000000e+00> : vector<256x128xf32>
    %44 = tpu.matmul %41, %43, %cst_55 {dimension_numbers = #tpu.dot_dimension_numbers<[1], [0], [0], [1], [0, 0, 1, 1], [], []>} : vector<256x128xf32>, vector<128x128xf32>, vector<256x128xf32> -> vector<256x128xf32>
    %45 = arith.addf %39, %44 : vector<256x128xf32>
    %c2_56 = arith.constant 2 : index
    %c0_57 = arith.constant 0 : index
    %c0_58 = arith.constant 0 : index
    %46 = vector.load %arg5[%c2_56, %c0_57, %c0_58] : memref<18x18x128xf32, #tpu.memory_space<vmem>>, vector<16x16x128xf32>
    %47 = vector.shape_cast %46 : vector<16x16x128xf32> to vector<256x128xf32>
    %c6 = arith.constant 6 : index
    %c0_59 = arith.constant 0 : index
    %c0_60 = arith.constant 0 : index
    %48 = vector.load %arg2[%c6, %c0_59, %c0_60] : memref<9x128x128xf32, #tpu.memory_space<vmem>>, vector<1x128x128xf32>
    %49 = vector.shape_cast %48 : vector<1x128x128xf32> to vector<128x128xf32>
    %cst_61 = arith.constant dense<0.000000e+00> : vector<256x128xf32>
    %50 = tpu.matmul %47, %49, %cst_61 {dimension_numbers = #tpu.dot_dimension_numbers<[1], [0], [0], [1], [0, 0, 1, 1], [], []>} : vector<256x128xf32>, vector<128x128xf32>, vector<256x128xf32> -> vector<256x128xf32>
    %51 = arith.addf %45, %50 : vector<256x128xf32>
    %c2_62 = arith.constant 2 : index
    %c1_63 = arith.constant 1 : index
    %c0_64 = arith.constant 0 : index
    %52 = vector.load %arg5[%c2_62, %c1_63, %c0_64] : memref<18x18x128xf32, #tpu.memory_space<vmem>>, vector<16x16x128xf32>
    %53 = vector.shape_cast %52 : vector<16x16x128xf32> to vector<256x128xf32>
    %c7 = arith.constant 7 : index
    %c0_65 = arith.constant 0 : index
    %c0_66 = arith.constant 0 : index
    %54 = vector.load %arg2[%c7, %c0_65, %c0_66] : memref<9x128x128xf32, #tpu.memory_space<vmem>>, vector<1x128x128xf32>
    %55 = vector.shape_cast %54 : vector<1x128x128xf32> to vector<128x128xf32>
    %cst_67 = arith.constant dense<0.000000e+00> : vector<256x128xf32>
    %56 = tpu.matmul %53, %55, %cst_67 {dimension_numbers = #tpu.dot_dimension_numbers<[1], [0], [0], [1], [0, 0, 1, 1], [], []>} : vector<256x128xf32>, vector<128x128xf32>, vector<256x128xf32> -> vector<256x128xf32>
    %57 = arith.addf %51, %56 : vector<256x128xf32>
    %c2_68 = arith.constant 2 : index
    %c2_69 = arith.constant 2 : index
    %c0_70 = arith.constant 0 : index
    %58 = vector.load %arg5[%c2_68, %c2_69, %c0_70] : memref<18x18x128xf32, #tpu.memory_space<vmem>>, vector<16x16x128xf32>
    %59 = vector.shape_cast %58 : vector<16x16x128xf32> to vector<256x128xf32>
    %c8 = arith.constant 8 : index
    %c0_71 = arith.constant 0 : index
    %c0_72 = arith.constant 0 : index
    %60 = vector.load %arg2[%c8, %c0_71, %c0_72] : memref<9x128x128xf32, #tpu.memory_space<vmem>>, vector<1x128x128xf32>
    %61 = vector.shape_cast %60 : vector<1x128x128xf32> to vector<128x128xf32>
    %cst_73 = arith.constant dense<0.000000e+00> : vector<256x128xf32>
    %62 = tpu.matmul %59, %61, %cst_73 {dimension_numbers = #tpu.dot_dimension_numbers<[1], [0], [0], [1], [0, 0, 1, 1], [], []>} : vector<256x128xf32>, vector<128x128xf32>, vector<256x128xf32> -> vector<256x128xf32>
    %63 = arith.addf %57, %62 : vector<256x128xf32>
    %64 = vector.shape_cast %63 : vector<256x128xf32> to vector<16x16x128xf32>
    %c0_74 = arith.constant 0 : index
    %c0_75 = arith.constant 0 : index
    %c0_76 = arith.constant 0 : index
    %c0_77 = arith.constant 0 : index
    %65 = vector.load %arg3[%c0_74, %c0_75, %c0_76, %c0_77] : memref<1x16x16x128xf32, #tpu.memory_space<vmem>>, vector<1x16x16x128xf32>
    %66 = vector.shape_cast %65 : vector<1x16x16x128xf32> to vector<16x16x128xf32>
    %67 = vector.shape_cast %64 : vector<16x16x128xf32> to vector<1x16x16x128xf32>
    tpu.vector_store %arg3[%c0_74, %c0_75, %c0_76, %c0_77], %67 {strides = array<i32>} : memref<1x16x16x128xf32, #tpu.memory_space<vmem>>, vector<1x16x16x128xf32>,
    %cst_78 = arith.constant dense<0.000000e+00> : vector<128xf32>
    %68 = vector.multi_reduction <add>, %63, %cst_78 [0] : vector<256x128xf32> to vector<128xf32>
    %69 = vector.shape_cast %68 : vector<128xf32> to vector<1x128xf32>
    %c0_79 = arith.constant 0 : index
    %c0_80 = arith.constant 0 : index
    %c0_81 = arith.constant 0 : index
    %70 = vector.load %arg4[%c0_79, %c0_80, %c0_81] : memref<1x2x128xf32, #tpu.memory_space<vmem>>, vector<1x1x128xf32>
    %71 = vector.shape_cast %70 : vector<1x1x128xf32> to vector<1x128xf32>
    %72 = vector.shape_cast %69 : vector<1x128xf32> to vector<1x1x128xf32>
    tpu.vector_store %arg4[%c0_79, %c0_80, %c0_81], %72 {strides = array<i32>} : memref<1x2x128xf32, #tpu.memory_space<vmem>>, vector<1x1x128xf32>,
    %73 = arith.mulf %63, %63 : vector<256x128xf32>
    %cst_82 = arith.constant dense<0.000000e+00> : vector<128xf32>
    %74 = vector.multi_reduction <add>, %73, %cst_82 [0] : vector<256x128xf32> to vector<128xf32>
    %75 = vector.shape_cast %74 : vector<128xf32> to vector<1x128xf32>
    %c0_83 = arith.constant 0 : index
    %c1_84 = arith.constant 1 : index
    %c0_85 = arith.constant 0 : index
    %76 = vector.load %arg4[%c0_83, %c1_84, %c0_85] : memref<1x2x128xf32, #tpu.memory_space<vmem>>, vector<1x1x128xf32>
    %77 = vector.shape_cast %76 : vector<1x1x128xf32> to vector<1x128xf32>
    %78 = vector.shape_cast %75 : vector<1x128xf32> to vector<1x1x128xf32>
    tpu.vector_store %arg4[%c0_83, %c1_84, %c0_85], %78 {strides = array<i32>} : memref<1x2x128xf32, #tpu.memory_space<vmem>>, vector<1x1x128xf32>,
    return
  }
  func.func @transform_0(%arg0: i32) -> (i32, i32, i32, i32) {
    %c0_i32 = arith.constant 0 : i32
    %c0_i32_0 = arith.constant 0 : i32
    %c0_i32_1 = arith.constant 0 : i32
    %c0_i32_2 = arith.constant 0 : i32
    return %arg0, %c0_i32, %c0_i32_0, %c0_i32_1 : i32, i32, i32, i32
  }
  func.func @transform_1(%arg0: i32) -> (i32, i32, i32) {
    %c0_i32 = arith.constant 0 : i32
    %c0_i32_0 = arith.constant 0 : i32
    %c0_i32_1 = arith.constant 0 : i32
    %c0_i32_2 = arith.constant 0 : i32
    return %c0_i32, %c0_i32_0, %c0_i32_1 : i32, i32, i32
  }
  func.func @transform_2(%arg0: i32) -> (i32, i32, i32, i32) {
    %c0_i32 = arith.constant 0 : i32
    %c0_i32_0 = arith.constant 0 : i32
    %c0_i32_1 = arith.constant 0 : i32
    %c0_i32_2 = arith.constant 0 : i32
    return %arg0, %c0_i32, %c0_i32_0, %c0_i32_1 : i32, i32, i32, i32
  }
  func.func @transform_3(%arg0: i32) -> (i32, i32, i32) {
    %c0_i32 = arith.constant 0 : i32
    %c0_i32_0 = arith.constant 0 : i32
    %c0_i32_1 = arith.constant 0 : i32
    return %arg0, %c0_i32, %c0_i32_0 : i32, i32, i32
  }
}

</mosaic_0001>

<bundles_post_ra>
// kernel: tpu_custom_call.1
= control target key start
LH: loop header
LB: loop body
LE: loop exit
PB: predicated region body
PF: predicated region fallthrough
CT: control target
= control target key end

     0   :  { %9 = vsyncpa [#allocation4], 0  ;;  %s5999_s0 = inlined_call_operand.hbm [shape: f32[2,16,16,128], index: 0, kind: input, shape index: {}]   ;;  %s6000_s1 = inlined_call_operand.hbm [shape: f32[9,128,128], index: 1, kind: input, shape index: {}]   ;;  %s6001_s2 = inlined_call_operand.hbm [shape: f32[2,16,16,128], index: 2, kind: output, shape index: {0}]   ;;  %s6002_s3 = inlined_call_operand.hbm [shape: f32[2,2,128], index: 3, kind: output, shape index: {1}]  }
   0x1   :  { %11 = vsyncpa [#allocation4 + $0x1], 0 }
   0x2   :  { %12 = vsyncpa [#allocation7], 0 }
   0x3   :  { %13 = vsyncpa [#allocation5], 0 }
   0x4   :  { %15 = vsyncpa [#allocation5 + $0x1], 0 }
   0x5   :  { %16 = vsyncpa [#allocation10], 0 }
   0x6   :  { %18 = vsyncpa [#allocation10 + $0x1], 0  ;;  %s4764_s12 = smov 0   ;;  %s4766_s13 = smov 0  }
   0x7   :  { %s4768_s14 = smov 0   ;;  %s4770_s15 = smov 0  }
   0x8 LB: > { %s4785_s16 = sadd.s32 4294967295, %s4733_s15   ;;  %s3296_s17 = sadd.s32 4294967294, %s4733_s15   ;;  %s4733_s15 = sphi %s4770_s15, %s6157_s15   ;;  %s4729_s14 = sphi %s4768_s14, %s6156_s14   ;;  %s4725_s13 = sphi %s4766_s13, %s6155_s13   ;;  %s4721_s12 = sphi %s4764_s12, %s6154_s12  }
   0x9   : > { %p44_p0 = scmp.ne.s32.totalorder %s4725_s13, %s4721_s12  ;;  %p6003_p1 = scmp.eq.s32.totalorder %s4785_s16, 0 }
   0xa   : > { %p95_p3 = scmp.eq.s32.totalorder %s3296_s17, 1  ;;  %p3297_p5 = scmp.ge.s32.totalorder %s4733_s15, 1 }
   0xb   : > { %p4794_p4 = por %p6003_p1, %p44_p0  ;;  %p128_p7 = scmp.lt.s32.totalorder %s4733_s15, 3 }
   0xc   : > { %p4799_p6 = por %p95_p3, %p44_p0  ;;  %s4735_s21 = smov [#allocation6]  }
   0xd   : > { %s6024_s18 = scalar_select %p4794_p4, 1, 0 }
   0xe   : > { %s6025_s19 = scalar_select %p4799_p6, 1, 0 }
   0xf   : > { %p4804_p8 = pnand %p3297_p5, %p128_p7  ;;  %s140_s22 = sshll.u32 %s4735_s21, 4  ;;  %s141_s22 = int_to_ptr.vmem [resolvable:$true] %s140_s22 }
  0x10   : > { %s4818_s24 = sadd.s32 1, %s4733_s15   ;;  %s31_s25 = sadd.s32 1, %s4729_s14 }
  0x11   : > { %s6026_s20 = scalar_select %p4804_p8, 1, 0 }
  0x12   : > { %p4511_p9 = pneg %p4804_p8  ;;  %s28_s26 = ssub.s32 %s4733_s15, %s4818_s24 }
  0x13   : > { %s4592_s27 = scalar_lea.vmem %s141_s22, 18432  ;;  %p4600_p5 = scmp.lt.s32.totalorder %s141_s22, %s141_s22 }
  0x14   : > { %p4813_p11 = pnand %p4511_p9, %p6003_p1  ;;  %p4593_p13 = scmp.ne.s32.totalorder %s141_s22, %s4592_s27 }
  0x15   : > { %p4601_p7 = scmp.lt.s32.totalorder %s4592_s27, %s4592_s27 }
  0x16   : > { %p4583_p12 = pneg %p4813_p11 }
  0x17   : > { %p4602_p10 = por %p4601_p7, %p4600_p5 }
  0x18   : > { %p4595_p0 = pnand %p4593_p13, %p4583_p12 }
  0x1a   : > { %p4596_p3 = pneg %p4595_p0 }
  0x1c   : > { %p4603_p2 = pnand %p4602_p10, %p4596_p3 }
  0x1e   : > { %4606 = shalt.err (!%p4603_p2)
}
  0x1f   : > { %s4736_s28 = smov 128   ;;  %s4737_s29 = smov 8  }
  0x20   : > { %4514 = dma.hbm_to_vmem [thread:$0]  (!%p4813_p11), %s6000_s1, 18432, %s141_s22, [#allocation7], %s4736_s28, %s4736_s28, %s4737_s29  }
  0x21   : > { %p29_p2 = scmp.eq.s32.totalorder %s28_s26, 0  ;;  %p38_p9 = scmp.ne.s32.totalorder %s4729_s14, %s4725_s13 }
  0x22   : > { %p39_p10 = scmp.eq.s32.totalorder %s4733_s15, 0  ;;  %p4527_p12 = scmp.lt.s32.totalorder %s4733_s15, 2 }
  0x23   : > { %s4838_s5 = scalar_select %p29_p2, %s4729_s14, %s31_s25  }
  0x24   : > { %p40_p13 = por %p39_p10, %p38_p9  ;;  %p6028_p0 = scmp.eq.s32.totalorder %s4785_s16, 1 }
  0x25   : > { %s154_s7 = sand.u32 1, %s4729_s14   ;;  %s3315_s8 = sshll.u32 %s4733_s15, 12 }
  0x26   : > { %p4842_p3 = por %p6028_p0, %p38_p9  ;;  %s3300_s9 = sshll.u32 %s154_s7, 8 }
  0x27   : > { %s4851_s17 = scalar_lea.hbm %s5999_s0, %s3315_s8  ;;  %s158_s21 = scalar_lea.vmem [#allocation3], %s3300_s9 }
  0x28   : > { %s6029_s6 = scalar_select %p4842_p3, 1, 0 }
  0x29   : > { %s165_s22 = sshll.u32 %s158_s21, 4  ;;  %p4853_p11 = pnand %p4527_p12, %p40_p13  ;;  %s4857_s22 = int_to_ptr.vmem [resolvable:$true] %s165_s22 }
  0x2a   : > { %s4859_s25 = scalar_lea.sflag [#allocation4], %s154_s7  ;;  %s4607_s26 = scalar_lea.hbm %s4851_s17, 4096 }
  0x2b   : > { %p4608_p5 = scmp.ne.s32.totalorder %s4851_s17, %s4607_s26  ;;  %p4609_p7 = pneg %p4853_p11 }
  0x2c   : > { %s4612_s4 = scalar_lea.hbm %s5999_s0, 8192  ;;  %p4613_p10 = scmp.lt.s32.totalorder %s4851_s17, %s5999_s0 }
  0x2d   : > { %p4610_p2 = pnand %p4609_p7, %p4608_p5  ;;  %p4614_p12 = scmp.lt.s32.totalorder %s4612_s4, %s4607_s26 }
  0x2f   : > { %p4611_p9 = pneg %p4610_p2  ;;  %p4615_p13 = por %p4614_p12, %p4613_p10 }
  0x31   : > { %p4616_p0 = pnand %p4615_p13, %p4611_p9 }
  0x33   : > { %4619 = shalt.err (!%p4616_p0)
}
  0x34   : > { %s4620_s7 = scalar_lea.vmem %s4857_s22, 4096  ;;  %s4738_s10 = smov [#allocation3]  }
  0x35   : > { %p4621_p1 = scmp.ne.s32.totalorder %s4857_s22, %s4620_s7  ;;  %s4625_s11 = sshll.u32 %s4738_s10, 4  ;;  %s4626_s11 = int_to_ptr.vmem [resolvable:$false] %s4625_s11 }
  0x36   : > { %s4627_s21 = scalar_lea.vmem %s4626_s11, 8192  ;;  %p4628_p2 = scmp.lt.s32.totalorder %s4857_s22, %s4626_s11 }
  0x37   : > { %p4623_p6 = pnand %p4621_p1, %p4609_p7  ;;  %p4629_p3 = scmp.lt.s32.totalorder %s4627_s21, %s4620_s7 }
  0x39   : > { %p4624_p5 = pneg %p4623_p6  ;;  %p4630_p4 = por %p4629_p3, %p4628_p2 }
  0x3b   : > { %p4631_p8 = pnand %p4630_p4, %p4624_p5 }
  0x3d   : > { %4634 = shalt.err (!%p4631_p8)
}
  0x3e   : > { %4518 = dma.hbm_to_vmem [thread:$0]  (!%p4853_p11), %s4851_s17, 4096, %s4857_s22, %s4859_s25, %s4736_s28, %s4736_s28, %s4737_s29  }
  0x3f   : > { %p6031_p1 = scmp.ne.s32.totalorder %s6026_s20, 0 }
  0x41   : > { %177 = sbr.rel (%p6031_p1) target bundleno = 651 (0x28b), region = 28 }
  0x46   : > { %s4886_s26 = sand.u32 1, %s4725_s13   ;;  %p6032_p4 = scmp.ne.s32.totalorder %s6024_s18, 0 }
  0x47   : > { %s3304_s27 = sshll.u32 %s4886_s26, 8  ;;  %s180_s30 = scalar_lea.sflag [#allocation4], %s4886_s26 }
  0x48   : > { %s4892_s23 = scalar_lea.vmem [#allocation3], %s3304_s27 }
  0x49   : > { %4704 = dma.done.wait (%p6032_p4), %s180_s30, 4096  }
  0x4a   : > { %4706 = vsyncadd (%p6032_p4), %s180_s30, 4294963200  ;;  %p6033_p6 = scmp.eq.s32.totalorder %s4785_s16, 0 }
  0x4c   : > { %4708 = dma.done.wait (%p6033_p6), [#allocation7], 18432   ;;  %p6034_p8 = pmov %p6033_p6 }
  0x4d   : > { %v4739_v0 = vmov 0.0   ;;  %v415_v1 = vld [vmem:[#allocation6 + $0xf8] sm:$0xff]  ;;  %v414_v2 = vld [vmem:[#allocation6 + $0xf0] sm:$0xff]  ;;  %v413_v3 = vld [vmem:[#allocation6 + $0xe8] sm:$0xff]  ;;  %s5817_s18 = scalar_lea.vmem [#allocation8], %s3304_s27  ;;  %s3316_s20 = sshll.u32 %s4785_s16, 12 }
  0x4e   : > { %4710 = vsyncadd (%p6034_p8), [#allocation7], 4294948864  ;;  %247 = vst [vmem:[#allocation2] sm:$0xff] %v4739_v0  ;;  %4469 = vmatprep.subr.mxu1 %v415_v1  ;;  %3749 = vmatprep.subr.mxu0 %v415_v1  ;;  %v412_v4 = vld [vmem:[#allocation6 + $0xe0] sm:$0xff]  ;;  %v4941_v5 = vld [vmem:[%s4892_s23 + $0x70] sm:$0xff]  ;;  %s3168_s28 = sshll.u32 %s5817_s18, 4  ;;  %s5934_s22 = scalar_lea.hbm %s6001_s2, %s3316_s20  ;;  %s5936_s28 = int_to_ptr.vmem [resolvable:$true] %s3168_s28 }
  0x4f   : > { %248 = vst [vmem:[#allocation2 + $0x8] sm:$0xff] %v4739_v0  ;;  %249 = vst [vmem:[#allocation2 + $0x10] sm:$0x3] %v4739_v0  ;;  %4485 = vmatpush3.msra.mxu1 %v415_v1  ;;  %3750 = vmatpush3.msra.mxu0 %v415_v1  ;;  %v411_v6 = vld [vmem:[#allocation6 + $0xd8] sm:$0xff]  ;;  %v4949_v8 = vld [vmem:[%s4892_s23 + $0x80] sm:$0xff]  ;;  %s3150_s25 = scalar_lea.sflag [#allocation5], %s4886_s26 }
  0x50   : > { %251 = vst [vmem:[#allocation2 + $0x198] sm:$0xff] %v4739_v0  ;;  %252 = vst [vmem:[#allocation2 + $0x1a0] sm:$0xff] %v4739_v0  ;;  %4470 = vmatprep.subr.mxu1 %v414_v2  ;;  %3751 = vmatprep.subr.mxu0 %v414_v2  ;;  %v4945_v7 = vld [vmem:[%s4892_s23 + $0x78] sm:$0xff]  ;;  %v410_v9 = vld [vmem:[#allocation6 + $0xd0] sm:$0xff]  ;;  %s4635_s4 = scalar_lea.vmem %s5936_s28, 4096  ;;  %p6151_p11 = scmp.ne.s32.totalorder %s6029_s6, 0 }
  0x51   : > { %253 = vst [vmem:[#allocation2 + $0x1a8] sm:$0x3] %v4739_v0  ;;  %255 = vst [vmem:[#allocation2 + $0x18] sm:$0x1] %v4739_v0  ;;  %4486 = vmatpush3.msra.mxu1 %v414_v2  ;;  %3752 = vmatpush3.msra.mxu0 %v414_v2  ;;  %v4953_v10 = vld [vmem:[%s4892_s23] sm:$0xff]  ;;  %v4956_v11 = vld [vmem:[%s4892_s23 + $0x88] sm:$0xff]  ;;  %p4636_p3 = scmp.ne.s32.totalorder %s5936_s28, %s4635_s4 }
  0x52   : > { %256 = vst [vmem:[#allocation2 + $0x30] sm:$0x1] %v4739_v0  ;;  %257 = vst [vmem:[#allocation2 + $0x48] sm:$0x1] %v4739_v0  ;;  %4471 = vmatprep.subr.mxu1 %v413_v3  ;;  %3753 = vmatprep.subr.mxu0 %v413_v3  ;;  %v4961_v12 = vld [vmem:[%s4892_s23 + $0x8] sm:$0xff]  ;;  %v4965_v14 = vld [vmem:[%s4892_s23 + $0x90] sm:$0xff] }
  0x53   : > { %258 = vst [vmem:[#allocation2 + $0x60] sm:$0x1] %v4739_v0  ;;  %259 = vst [vmem:[#allocation2 + $0x78] sm:$0x1] %v4739_v0  ;;  %4487 = vmatpush3.msra.mxu1 %v413_v3  ;;  %3754 = vmatpush3.msra.mxu0 %v413_v3  ;;  %v409_v13 = vld [vmem:[#allocation6 + $0xc8] sm:$0xff]  ;;  %v4969_v15 = vld [vmem:[%s4892_s23 + $0x10] sm:$0xff]  ;;  %p4637_p7 = pnand %p4636_p3, %p6151_p11 }
  0x54   : > { %260 = vst [vmem:[#allocation2 + $0x90] sm:$0x1] %v4739_v0  ;;  %261 = vst [vmem:[#allocation2 + $0xa8] sm:$0x1] %v4739_v0  ;;  %4472 = vmatprep.subr.mxu1 %v412_v4  ;;  %3755 = vmatprep.subr.mxu0 %v412_v4  ;;  %v4972_v16 = vld [vmem:[%s4892_s23 + $0x98] sm:$0xff]  ;;  %v408_v17 = vld [vmem:[#allocation6 + $0xc0] sm:$0xff] }
  0x55   : > { %262 = vst [vmem:[#allocation2 + $0xc0] sm:$0x1] %v4739_v0  ;;  %263 = vst [vmem:[#allocation2 + $0xd8] sm:$0x1] %v4739_v0  ;;  %4488 = vmatpush3.msra.mxu1 %v412_v4  ;;  %3756 = vmatpush3.msra.mxu0 %v412_v4  ;;  %v4977_v18 = vld [vmem:[%s4892_s23 + $0x18] sm:$0xff]  ;;  %v4981_v19 = vld [vmem:[%s4892_s23 + $0xa0] sm:$0xff]  ;;  %p4638_p9 = pneg %p4637_p7 }
  0x56   : > { %264 = vst [vmem:[#allocation2 + $0xf0] sm:$0x1] %v4739_v0  ;;  %265 = vst [vmem:[#allocation2 + $0x108] sm:$0x1] %v4739_v0  ;;  %4473 = vmatprep.subr.mxu1 %v411_v6  ;;  %3757 = vmatprep.subr.mxu0 %v411_v6  ;;  %v4984_v20 = vld [vmem:[%s4892_s23 + $0x20] sm:$0xff]  ;;  %v407_v21 = vld [vmem:[#allocation6 + $0xb8] sm:$0xff] }
  0x57   : > { %266 = vst [vmem:[#allocation2 + $0x120] sm:$0x1] %v4739_v0  ;;  %267 = vst [vmem:[#allocation2 + $0x138] sm:$0x1] %v4739_v0  ;;  %4489 = vmatpush3.msra.mxu1 %v411_v6  ;;  %3758 = vmatpush3.msra.mxu0 %v411_v6  ;;  %v4989_v22 = vld [vmem:[%s4892_s23 + $0xa8] sm:$0xff]  ;;  %v4997_v24 = vld [vmem:[%s4892_s23 + $0xb0] sm:$0xff] }
  0x58   : > { %268 = vst [vmem:[#allocation2 + $0x150] sm:$0x1] %v4739_v0  ;;  %269 = vst [vmem:[#allocation2 + $0x168] sm:$0x1] %v4739_v0  ;;  %4474 = vmatprep.subr.mxu1 %v410_v9  ;;  %3759 = vmatprep.subr.mxu0 %v410_v9  ;;  %v4992_v23 = vld [vmem:[%s4892_s23 + $0x28] sm:$0xff]  ;;  %v406_v25 = vld [vmem:[#allocation6 + $0xb0] sm:$0xff] }
  0x59   : > { %270 = vst [vmem:[#allocation2 + $0x180] sm:$0x1] %v4739_v0  ;;  %271 = vst [vmem:[#allocation2 + $0x29] sm:$0x1] %v4739_v0  ;;  %4490 = vmatpush3.msra.mxu1 %v410_v9  ;;  %3760 = vmatpush3.msra.mxu0 %v410_v9  ;;  %v5001_v26 = vld [vmem:[%s4892_s23 + $0x30] sm:$0xff]  ;;  %v5004_v27 = vld [vmem:[%s4892_s23 + $0xb8] sm:$0xff] }
  0x5a   : > { %272 = vst [vmem:[#allocation2 + $0x41] sm:$0x1] %v4739_v0  ;;  %273 = vst [vmem:[#allocation2 + $0x59] sm:$0x1] %v4739_v0  ;;  %4475 = vmatprep.subr.mxu1 %v409_v13  ;;  %3761 = vmatprep.subr.mxu0 %v409_v13  ;;  %v5009_v28 = vld [vmem:[%s4892_s23 + $0x38] sm:$0xff]  ;;  %v405_v29 = vld [vmem:[#allocation6 + $0xa8] sm:$0xff] }
  0x5b   : > { %274 = vst [vmem:[#allocation2 + $0x71] sm:$0x1] %v4739_v0  ;;  %275 = vst [vmem:[#allocation2 + $0x89] sm:$0x1] %v4739_v0  ;;  %4491 = vmatpush3.msra.mxu1 %v409_v13  ;;  %3762 = vmatpush3.msra.mxu0 %v409_v13  ;;  %v5013_v30 = vld [vmem:[%s4892_s23 + $0xc0] sm:$0xff]  ;;  %v5020_v32 = vld [vmem:[%s4892_s23 + $0xc8] sm:$0xff] }
  0x5c   : > { %276 = vst [vmem:[#allocation2 + $0xa1] sm:$0x1] %v4739_v0  ;;  %277 = vst [vmem:[#allocation2 + $0xb9] sm:$0x1] %v4739_v0  ;;  %4476 = vmatprep.subr.mxu1 %v408_v17  ;;  %3763 = vmatprep.subr.mxu0 %v408_v17  ;;  %v5017_v31 = vld [vmem:[%s4892_s23 + $0x40] sm:$0xff]  ;;  %v5025_v34 = vld [vmem:[%s4892_s23 + $0x48] sm:$0xff] }
  0x5d   : > { %278 = vst [vmem:[#allocation2 + $0xd1] sm:$0x1] %v4739_v0  ;;  %279 = vst [vmem:[#allocation2 + $0xe9] sm:$0x1] %v4739_v0  ;;  %4492 = vmatpush3.msra.mxu1 %v408_v17  ;;  %3764 = vmatpush3.msra.mxu0 %v408_v17  ;;  %v404_v33 = vld [vmem:[#allocation6 + $0xa0] sm:$0xff]  ;;  %v5029_v35 = vld [vmem:[%s4892_s23 + $0xd0] sm:$0xff] }
  0x5e   : > { %280 = vst [vmem:[#allocation2 + $0x101] sm:$0x1] %v4739_v0  ;;  %281 = vst [vmem:[#allocation2 + $0x119] sm:$0x1] %v4739_v0  ;;  %4477 = vmatprep.subr.mxu1 %v407_v21  ;;  %3765 = vmatprep.subr.mxu0 %v407_v21  ;;  %v5032_v36 = vld [vmem:[%s4892_s23 + $0x50] sm:$0xff]  ;;  %v403_v37 = vld [vmem:[#allocation6 + $0x98] sm:$0xff] }
  0x5f   : > { %282 = vst [vmem:[#allocation2 + $0x131] sm:$0x1] %v4739_v0  ;;  %283 = vst [vmem:[#allocation2 + $0x149] sm:$0x1] %v4739_v0  ;;  %4493 = vmatpush3.msra.mxu1 %v407_v21  ;;  %3766 = vmatpush3.msra.mxu0 %v407_v21  ;;  %v5037_v38 = vld [vmem:[%s4892_s23 + $0xd8] sm:$0xff]  ;;  %v5045_v40 = vld [vmem:[%s4892_s23 + $0xe0] sm:$0xff] }
  0x60   : > { %284 = vst [vmem:[#allocation2 + $0x161] sm:$0x1] %v4739_v0  ;;  %285 = vst [vmem:[#allocation2 + $0x179] sm:$0x1] %v4739_v0  ;;  %4478 = vmatprep.subr.mxu1 %v406_v25  ;;  %3767 = vmatprep.subr.mxu0 %v406_v25  ;;  %v5040_v39 = vld [vmem:[%s4892_s23 + $0x58] sm:$0xff]  ;;  %v402_v41 = vld [vmem:[#allocation6 + $0x90] sm:$0xff] }
  0x61   : > { %286 = vst [vmem:[#allocation2 + $0x191] sm:$0x1] %v4739_v0  ;;  %301 = vst [vmem:[#allocation2 + $0xc1] sm:$0xff] %v4941_v5  ;;  %4494 = vmatpush3.msra.mxu1 %v406_v25  ;;  %3768 = vmatpush3.msra.mxu0 %v406_v25  ;;  %v5049_v42 = vld [vmem:[%s4892_s23 + $0x60] sm:$0xff]  ;;  %v5052_v43 = vld [vmem:[%s4892_s23 + $0xe8] sm:$0xff]  ;;  %s4740_s8 = smov [#allocation8]  }
  0x62   : > { %302 = vst [vmem:[#allocation2 + $0xc9] sm:$0xff] %v4945_v7  ;;  %303 = vst [vmem:[#allocation2 + $0xd9] sm:$0xff] %v4949_v8  ;;  %4479 = vmatprep.subr.mxu1 %v405_v29  ;;  %3769 = vmatprep.subr.mxu0 %v405_v29  ;;  %v5057_v44 = vld [vmem:[%s4892_s23 + $0x68] sm:$0xff]  ;;  %v400_v46 = vld [vmem:[#allocation6 + $0x80] sm:$0xff]  ;;  %s4639_s9 = sshll.u32 %s4740_s8, 4  ;;  %s4640_s9 = int_to_ptr.vmem [resolvable:$false] %s4639_s9 }
  0x63   : > { %287 = vst [vmem:[#allocation2 + $0x19] sm:$0xff] %v4953_v10  ;;  %304 = vst [vmem:[#allocation2 + $0xe1] sm:$0xff] %v4956_v11  ;;  %4495 = vmatpush3.msra.mxu1 %v405_v29  ;;  %3770 = vmatpush3.msra.mxu0 %v405_v29  ;;  %v401_v45 = vld [vmem:[#allocation6 + $0x88] sm:$0xff]  ;;  %v367_v47 = vld [vmem:[#allocation2 + $0x1] sm:$0xff]  ;;  %s4641_s7 = scalar_lea.vmem %s4640_s9, 8192  ;;  %p4642_p10 = scmp.lt.s32.totalorder %s5936_s28, %s4640_s9 }
  0x64   : > { %288 = vst [vmem:[#allocation2 + $0x21] sm:$0xff] %v4961_v12  ;;  %305 = vst [vmem:[#allocation2 + $0xf1] sm:$0xff] %v4965_v14  ;;  %4480 = vmatprep.subr.mxu1 %v404_v33  ;;  %3771 = vmatprep.subr.mxu0 %v404_v33  ;;  %v366_v48 = vld [vmem:[#allocation6 + $0x78] sm:$0xff]  ;;  %v365_v51 = vld [vmem:[#allocation6 + $0x70] sm:$0xff]  ;;  %p4643_p12 = scmp.lt.s32.totalorder %s4641_s7, %s4635_s4 }
  0x65   : > { %289 = vst [vmem:[#allocation2 + $0x31] sm:$0xff] %v4969_v15  ;;  %306 = vst [vmem:[#allocation2 + $0xf9] sm:$0xff] %v4972_v16  ;;  %4496 = vmatpush3.msra.mxu1 %v404_v33  ;;  %3772 = vmatpush3.msra.mxu0 %v404_v33  ;;  %v368_v49 = vld [vmem:[#allocation2 + $0x9] sm:$0xff]  ;;  %v913_v52 = vld [vmem:[#allocation6 + $0x170] sm:$0xff] }
  0x66   : > { %290 = vst [vmem:[#allocation2 + $0x39] sm:$0xff] %v4977_v18  ;;  %307 = vst [vmem:[#allocation2 + $0x109] sm:$0xff] %v4981_v19  ;;  %4481 = vmatprep.subr.mxu1 %v403_v37  ;;  %3773 = vmatprep.subr.mxu0 %v403_v37  ;;  %v914_v50 = vld [vmem:[#allocation6 + $0x178] sm:$0xff]  ;;  %v364_v53 = vld [vmem:[#allocation6 + $0x68] sm:$0xff]  ;;  %p4644_p13 = por %p4643_p12, %p4642_p10 }
  0x67   : > { %291 = vst [vmem:[#allocation2 + $0x49] sm:$0xff] %v4984_v20  ;;  %308 = vst [vmem:[#allocation2 + $0x111] sm:$0xff] %v4989_v22  ;;  %4497 = vmatpush3.msra.mxu1 %v403_v37  ;;  %3774 = vmatpush3.msra.mxu0 %v403_v37  ;;  %v912_v54 = vld [vmem:[#allocation6 + $0x168] sm:$0xff]  ;;  %v363_v55 = vld [vmem:[#allocation6 + $0x60] sm:$0xff] }
  0x68   : > { %292 = vst [vmem:[#allocation2 + $0x51] sm:$0xff] %v4992_v23  ;;  %309 = vst [vmem:[#allocation2 + $0x121] sm:$0xff] %v4997_v24  ;;  %4482 = vmatprep.subr.mxu1 %v402_v41  ;;  %3775 = vmatprep.subr.mxu0 %v402_v41  ;;  %v911_v56 = vld [vmem:[#allocation6 + $0x160] sm:$0xff]  ;;  %v362_v57 = vld [vmem:[#allocation6 + $0x58] sm:$0xff]  ;;  %p4645_p0 = pnand %p4644_p13, %p4638_p9 }
  0x69   : > { %293 = vst [vmem:[#allocation2 + $0x61] sm:$0xff] %v5001_v26  ;;  %310 = vst [vmem:[#allocation2 + $0x129] sm:$0xff] %v5004_v27  ;;  %4498 = vmatpush3.msra.mxu1 %v402_v41  ;;  %3776 = vmatpush3.msra.mxu0 %v402_v41  ;;  %v910_v58 = vld [vmem:[#allocation6 + $0x158] sm:$0xff]  ;;  %v361_v59 = vld [vmem:[#allocation6 + $0x50] sm:$0xff] }
  0x6a   : > { %294 = vst [vmem:[#allocation2 + $0x69] sm:$0xff] %v5009_v28  ;;  %311 = vst [vmem:[#allocation2 + $0x139] sm:$0xff] %v5013_v30  ;;  %4483 = vmatprep.subr.mxu1 %v401_v45  ;;  %3777 = vmatprep.subr.mxu0 %v401_v45  ;;  %v909_v60 = vld [vmem:[#allocation6 + $0x150] sm:$0xff]  ;;  %v360_v61 = vld [vmem:[#allocation6 + $0x48] sm:$0xff] }
  0x6b   : > { %295 = vst [vmem:[#allocation2 + $0x79] sm:$0xff] %v5017_v31  ;;  %312 = vst [vmem:[#allocation2 + $0x141] sm:$0xff] %v5020_v32  ;;  %4499 = vmatpush3.msra.mxu1 %v401_v45  ;;  %3778 = vmatpush3.msra.mxu0 %v401_v45  ;;  %v908_v62 = vld [vmem:[#allocation6 + $0x148] sm:$0xff]  ;;  %v359_v63 = vld [vmem:[#allocation6 + $0x40] sm:$0xff] }
  0x6c   : > { %296 = vst [vmem:[#allocation2 + $0x81] sm:$0xff] %v5025_v34  ;;  %313 = vst [vmem:[#allocation2 + $0x151] sm:$0xff] %v5029_v35  ;;  %4484 = vmatprep.subr.mxu1 %v400_v46  ;;  %3779 = vmatprep.subr.mxu0 %v400_v46  ;;  %v907_v1 = vld [vmem:[#allocation6 + $0x140] sm:$0xff]  ;;  %v358_v2 = vld [vmem:[#allocation6 + $0x38] sm:$0xff] }
  0x6d   : > { %297 = vst [vmem:[#allocation2 + $0x91] sm:$0xff] %v5032_v36  ;;  %314 = vst [vmem:[#allocation2 + $0x159] sm:$0xff] %v5037_v38  ;;  %4500 = vmatpush3.msra.mxu1 %v400_v46  ;;  %3805 = vmatprep.mubr.f32.mxu1 %v4941_v5  ;;  %v906_v3 = vld [vmem:[#allocation6 + $0x138] sm:$0xff]  ;;  %v357_v4 = vld [vmem:[#allocation6 + $0x30] sm:$0xff] }
  0x6e   : > { %298 = vst [vmem:[#allocation2 + $0x99] sm:$0xff] %v5040_v39  ;;  %315 = vst [vmem:[#allocation2 + $0x169] sm:$0xff] %v5045_v40  ;;  %3780 = vmatpush3.msra.mxu0 %v400_v46  ;;  %3781 = vmatprep.mubr.f32.mxu0 %v367_v47  ;;  %v905_v5 = vld [vmem:[#allocation6 + $0x130] sm:$0xff]  ;;  %v356_v6 = vld [vmem:[#allocation6 + $0x28] sm:$0xff] }
  0x6f   : > { %299 = vst [vmem:[#allocation2 + $0xa9] sm:$0xff] %v5049_v42  ;;  %316 = vst [vmem:[#allocation2 + $0x171] sm:$0xff] %v5052_v43  ;;  %3806 = vmatmul.mubr.f32.vlgmr.msra.gmra.mxu1 %v4945_v7  ;;  %3829 = vmatprep.subr.mxu1 %v366_v48  ;;  %v904_v7 = vld [vmem:[#allocation6 + $0x128] sm:$0xff]  ;;  %v903_v9 = vld [vmem:[#allocation6 + $0x120] sm:$0xff] }
  0x70   : > { %300 = vst [vmem:[#allocation2 + $0xb1] sm:$0xff] %v5057_v44  ;;  %3782 = vmatmul.mubr.f32.vlgmr.msra.gmra.mxu0 %v368_v49  ;;  %3830 = vmatpush3.msra.mxu1 %v366_v48  ;;  %v902_v13 = vld [vmem:[#allocation6 + $0x118] sm:$0xff]  ;;  %v352_v21 = vld [vmem:[#allocation6 + $0x8] sm:$0xff]  ;;  %v899_v25 = vld [vmem:[#allocation6 + $0x100] sm:$0xff] }
  0x71   : > { %3909 = vmatprep.subr.mxu0 %v914_v50  ;;  %3831 = vmatprep.subr.mxu1 %v365_v51  ;;  %v5090_v17 = vld [vmem:[%s4892_s23 + $0xf8] sm:$0xff]  ;;  %v5100_v33 = vld [vmem:[#allocation2 + $0x18] sm:$0xff]  ;;  %v5110_v41 = vld [vmem:[#allocation2 + $0x30] sm:$0xff] }
  0x72   : > { %3910 = vmatpush3.msra.mxu0 %v914_v50  ;;  %3808 = vmatprep.mubr.f32.mxu1 %v4949_v8  ;;  %v355_v8 = vld [vmem:[#allocation6 + $0x20] sm:$0xff]  ;;  %318 = vst [vmem:[#allocation2 + $0x189] sm:$0xff] %v5090_v17  ;;  %v1220_v29 = vld [vmem:[#allocation6 + $0x1f8] sm:$0xff]  ;;  %v5104_v37 = vld [vmem:[#allocation2 + $0x1a] sm:$0xff] }
  0x73   : > { %3832 = vmatpush3.msra.mxu1 %v365_v51  ;;  %3911 = vmatprep.subr.mxu0 %v913_v52  ;;  %v5116_v45 = vld [vmem:[#allocation2 + $0x32] sm:$0xff]  ;;  %v5119_v47 = vld [vmem:[#allocation2 + $0x3a] sm:$0xff]  ;;  %v5122_v49 = vld [vmem:[#allocation2 + $0x48] sm:$0xff] }
  0x74   : > { %3784 = vmatprep.mubr.f32.mxu0 %v4953_v10  ;;  %3809 = vmatmul.mubr.f32.gmra.mxu1 %v4956_v11  ;;  %v354_v11 = vld [vmem:[#allocation6 + $0x18] sm:$0xff]  ;;  %v1218_v46 = vld [vmem:[#allocation6 + $0x1e8] sm:$0xff]  ;;  %v5125_v50 = vld [vmem:[#allocation2 + $0x50] sm:$0xff] }
  0x75   : > { %3833 = vmatprep.subr.mxu1 %v364_v53  ;;  %3912 = vmatpush3.msra.mxu0 %v913_v52  ;;  %v1524_v48 = vld [vmem:[#allocation6 + $0x268] sm:$0xff]  ;;  %v5128_v51 = vld [vmem:[#allocation2 + $0x4a] sm:$0xff] }
  0x76   : > { %3785 = vmatmul.mubr.f32.gmra.mxu0 %v4961_v12  ;;  %3834 = vmatpush3.msra.mxu1 %v364_v53  ;;  %v1217_v52 = vld [vmem:[#allocation6 + $0x1e0] sm:$0xff] }
  0x77   : > { %3913 = vmatprep.subr.mxu0 %v912_v54  ;;  %3835 = vmatprep.subr.mxu1 %v363_v55  ;;  %v5131_v53 = vld [vmem:[#allocation2 + $0x52] sm:$0xff] }
  0x78   : > { %3914 = vmatpush3.msra.mxu0 %v912_v54  ;;  %3811 = vmatprep.mubr.f32.mxu1 %v4965_v14  ;;  %v353_v14 = vld [vmem:[#allocation6 + $0x10] sm:$0xff]  ;;  %v1523_v54 = vld [vmem:[#allocation6 + $0x260] sm:$0xff] }
  0x79   : > { %3836 = vmatpush3.msra.mxu1 %v363_v55  ;;  %3915 = vmatprep.subr.mxu0 %v911_v56  ;;  %v5134_v55 = vld [vmem:[#allocation2 + $0x60] sm:$0xff] }
  0x7a   : > { %3787 = vmatprep.mubr.f32.mxu0 %v4969_v15  ;;  %3812 = vmatmul.mubr.f32.gmra.mxu1 %v4972_v16  ;;  %v5086_v16 = vld [vmem:[%s4892_s23 + $0xf0] sm:$0xff] }
  0x7b   : > { %3837 = vmatprep.subr.mxu1 %v362_v57  ;;  %3916 = vmatpush3.msra.mxu0 %v911_v56  ;;  %317 = vst [vmem:[#allocation2 + $0x181] sm:$0xff] %v5086_v16  ;;  %v5137_v56 = vld [vmem:[#allocation2 + $0x68] sm:$0xff] }
  0x7c   : > { %3788 = vmatmul.mubr.f32.gmra.mxu0 %v4977_v18  ;;  %3838 = vmatpush3.msra.mxu1 %v362_v57  ;;  %v5140_v57 = vld [vmem:[#allocation2 + $0x62] sm:$0xff] }
  0x7d   : > { %3917 = vmatprep.subr.mxu0 %v910_v58  ;;  %3839 = vmatprep.subr.mxu1 %v361_v59 }
  0x7e   : > { %3918 = vmatpush3.msra.mxu0 %v910_v58  ;;  %3814 = vmatprep.mubr.f32.mxu1 %v4981_v19  ;;  %v901_v19 = vld [vmem:[#allocation6 + $0x110] sm:$0xff]  ;;  %v1216_v58 = vld [vmem:[#allocation6 + $0x1d8] sm:$0xff] }
  0x7f   : > { %3840 = vmatpush3.msra.mxu1 %v361_v59  ;;  %3919 = vmatprep.subr.mxu0 %v909_v60  ;;  %v5143_v59 = vld [vmem:[#allocation2 + $0x6a] sm:$0xff] }
  0x80   : > { %3790 = vmatprep.mubr.f32.mxu0 %v4984_v20  ;;  %3815 = vmatmul.mubr.f32.gmra.mxu1 %v4989_v22  ;;  %v900_v22 = vld [vmem:[#allocation6 + $0x108] sm:$0xff] }
  0x81   : > { %3841 = vmatprep.subr.mxu1 %v360_v61  ;;  %3920 = vmatpush3.msra.mxu0 %v909_v60  ;;  %v1522_v60 = vld [vmem:[#allocation6 + $0x258] sm:$0xff] }
  0x82   : > { %3791 = vmatmul.mubr.f32.gmra.mxu0 %v4992_v23  ;;  %3842 = vmatpush3.msra.mxu1 %v360_v61  ;;  %v5146_v61 = vld [vmem:[#allocation2 + $0x78] sm:$0xff] }
  0x83   : > { %3921 = vmatprep.subr.mxu0 %v908_v62  ;;  %3843 = vmatprep.subr.mxu1 %v359_v63 }
  0x84   : > { %3922 = vmatpush3.msra.mxu0 %v908_v62  ;;  %3817 = vmatprep.mubr.f32.mxu1 %v4997_v24  ;;  %v351_v24 = vld [vmem:[#allocation6] sm:$0xff]  ;;  %v5149_v62 = vld [vmem:[#allocation2 + $0x80] sm:$0xff] }
  0x85   : > { %3844 = vmatpush3.msra.mxu1 %v359_v63  ;;  %3923 = vmatprep.subr.mxu0 %v907_v1  ;;  %v5152_v63 = vld [vmem:[#allocation2 + $0x7a] sm:$0xff] }
  0x86   : > { %3793 = vmatprep.mubr.f32.mxu0 %v5001_v26  ;;  %3818 = vmatmul.mubr.f32.gmra.mxu1 %v5004_v27  ;;  %v866_v27 = vld [vmem:[#allocation2 + $0x2] sm:$0xff] }
  0x87   : > { %3845 = vmatprep.subr.mxu1 %v358_v2  ;;  %3924 = vmatpush3.msra.mxu0 %v907_v1  ;;  %v1215_v1 = vld [vmem:[#allocation6 + $0x1d0] sm:$0xff] }
  0x88   : > { %3794 = vmatmul.mubr.f32.gmra.mxu0 %v5009_v28  ;;  %3846 = vmatpush3.msra.mxu1 %v358_v2  ;;  %v5155_v2 = vld [vmem:[#allocation2 + $0x82] sm:$0xff] }
  0x89   : > { %3925 = vmatprep.subr.mxu0 %v906_v3  ;;  %3847 = vmatprep.subr.mxu1 %v357_v4 }
  0x8a   : > { %3926 = vmatpush3.msra.mxu0 %v906_v3  ;;  %3820 = vmatprep.mubr.f32.mxu1 %v5013_v30  ;;  %v867_v30 = vld [vmem:[#allocation2 + $0xa] sm:$0xff]  ;;  %v1521_v3 = vld [vmem:[#allocation6 + $0x250] sm:$0xff] }
  0x8b   : > { %3848 = vmatpush3.msra.mxu1 %v357_v4  ;;  %3927 = vmatprep.subr.mxu0 %v905_v5  ;;  %v5158_v4 = vld [vmem:[#allocation2 + $0x90] sm:$0xff] }
  0x8c   : > { %3796 = vmatprep.mubr.f32.mxu0 %v5017_v31  ;;  %3821 = vmatmul.mubr.f32.gmra.mxu1 %v5020_v32  ;;  %v1526_v32 = vld [vmem:[#allocation6 + $0x278] sm:$0xff] }
  0x8d   : > { %3849 = vmatprep.subr.mxu1 %v356_v6  ;;  %3928 = vmatpush3.msra.mxu0 %v905_v5  ;;  %v5161_v5 = vld [vmem:[#allocation2 + $0x98] sm:$0xff] }
  0x8e   : > { %3797 = vmatmul.mubr.f32.gmra.mxu0 %v5025_v34  ;;  %3850 = vmatpush3.msra.mxu1 %v356_v6  ;;  %v5164_v6 = vld [vmem:[#allocation2 + $0x92] sm:$0xff] }
  0x8f   : > { %3929 = vmatprep.subr.mxu0 %v904_v7  ;;  %3851 = vmatprep.subr.mxu1 %v355_v8  ;;  %6035 = vst [vmem:[#allocation15_spill] sm:$0xff] %v5164_v6 }
  0x90   : > { %3930 = vmatpush3.msra.mxu0 %v904_v7  ;;  %3823 = vmatprep.mubr.f32.mxu1 %v5029_v35  ;;  %v5102_v35 = vld [vmem:[#allocation2 + $0x20] sm:$0xff]  ;;  %v1214_v7 = vld [vmem:[#allocation6 + $0x1c8] sm:$0xff] }
  0x91   : > { %3852 = vmatpush3.msra.mxu1 %v355_v8  ;;  %3931 = vmatprep.subr.mxu0 %v903_v9  ;;  %v5167_v8 = vld [vmem:[#allocation2 + $0x9a] sm:$0xff] }
  0x92   : > { %3799 = vmatprep.mubr.f32.mxu0 %v5032_v36  ;;  %3824 = vmatmul.mubr.f32.gmra.mxu1 %v5037_v38  ;;  %v1219_v38 = vld [vmem:[#allocation6 + $0x1f0] sm:$0xff]  ;;  %6036 = vst [vmem:[#allocation16_spill] sm:$0xff] %v5167_v8 }
  0x93   : > { %3853 = vmatprep.subr.mxu1 %v354_v11  ;;  %3932 = vmatpush3.msra.mxu0 %v903_v9  ;;  %v1520_v9 = vld [vmem:[#allocation6 + $0x248] sm:$0xff] }
  0x94   : > { %3800 = vmatmul.mubr.f32.gmra.mxu0 %v5040_v39  ;;  %3854 = vmatpush3.msra.mxu1 %v354_v11  ;;  %v5170_v11 = vld [vmem:[#allocation2 + $0xa8] sm:$0xff] }
  0x95   : > { %3933 = vmatprep.subr.mxu0 %v902_v13  ;;  %3855 = vmatprep.subr.mxu1 %v353_v14 }
  0x96   : > { %3934 = vmatpush3.msra.mxu0 %v902_v13  ;;  %3826 = vmatprep.mubr.f32.mxu1 %v5045_v40  ;;  %v5107_v40 = vld [vmem:[#allocation2 + $0x22] sm:$0xff]  ;;  %v5173_v13 = vld [vmem:[#allocation2 + $0xb0] sm:$0xff] }
  0x97   : > { %3856 = vmatpush3.msra.mxu1 %v353_v14  ;;  %3935 = vmatprep.subr.mxu0 %v901_v19  ;;  %v5176_v14 = vld [vmem:[#allocation2 + $0xaa] sm:$0xff] }
  0x98   : > { %3802 = vmatprep.mubr.f32.mxu0 %v5049_v42  ;;  %3827 = vmatmul.mubr.f32.gmra.mxu1 %v5052_v43  ;;  %v5113_v43 = vld [vmem:[#allocation2 + $0x38] sm:$0xff]  ;;  %6037 = vst [vmem:[#allocation17_spill] sm:$0xff] %v5176_v14 }
  0x99   : > { %3857 = vmatprep.subr.mxu1 %v352_v21  ;;  %3936 = vmatpush3.msra.mxu0 %v901_v19  ;;  %v1213_v19 = vld [vmem:[#allocation6 + $0x1c0] sm:$0xff] }
  0x9a   : > { %3803 = vmatmul.mubr.f32.gmra.mxu0 %v5057_v44  ;;  %3858 = vmatpush3.msra.mxu1 %v352_v21  ;;  %v5179_v21 = vld [vmem:[#allocation2 + $0xb2] sm:$0xff] }
  0x9b   : > { %3937 = vmatprep.subr.mxu0 %v900_v22  ;;  %3859 = vmatprep.subr.mxu1 %v351_v24  ;;  %6038 = vst [vmem:[#allocation18_spill] sm:$0xff] %v5179_v21 }
  0x9c   : > { %3938 = vmatpush3.msra.mxu0 %v900_v22  ;;  %3860 = vmatpush3.msra.mxu1 %v351_v24  ;;  %v1519_v22 = vld [vmem:[#allocation6 + $0x240] sm:$0xff]  ;;  %v5182_v24 = vld [vmem:[#allocation2 + $0xc0] sm:$0xff] }
  0x9d   : > { %3861 = vmatprep.mubr.f32.mxu1 %v4739_v0  ;;  %3939 = vmatprep.subr.mxu0 %v899_v25 }
  0x9e   : > { %3862 = vmatmul.mubr.f32.vlgmr.msra.gmra.mxu1 %v4739_v0  ;;  %3940 = vmatpush3.msra.mxu0 %v899_v25  ;;  %v1525_v0 = vld [vmem:[#allocation6 + $0x270] sm:$0xff]  ;;  %v5185_v25 = vld [vmem:[#allocation2 + $0xc8] sm:$0xff] }
  0x9f   : > { %3941 = vmatprep.mubr.f32.mxu0 %v866_v27  ;;  %3989 = vmatprep.subr.mxu1 %v1220_v29  ;;  %v5188_v27 = vld [vmem:[#allocation2 + $0xc2] sm:$0xff] }
  0xa0   : > { %3942 = vmatmul.mubr.f32.vlgmr.msra.gmra.mxu0 %v867_v30  ;;  %3990 = vmatpush3.msra.mxu1 %v1220_v29  ;;  %6039 = vst [vmem:[#allocation19_spill] sm:$0xff] %v5188_v27  ;;  %v1212_v29 = vld [vmem:[#allocation6 + $0x1b8] sm:$0xff] }
  0xa1   : > { %4069 = vmatprep.subr.mxu0 %v1526_v32  ;;  %3864 = vmatprep.mubr.f32.mxu1 %v5100_v33  ;;  %v5191_v30 = vld [vmem:[#allocation2 + $0xca] sm:$0xff] }
  0xa2   : > { %4070 = vmatpush3.msra.mxu0 %v1526_v32  ;;  %3865 = vmatmul.mubr.f32.gmra.mxu1 %v5102_v35  ;;  %6040 = vst [vmem:[#allocation20_spill] sm:$0xff] %v5191_v30  ;;  %v1518_v32 = vld [vmem:[#allocation6 + $0x238] sm:$0xff] }
  0xa3   : > { %3944 = vmatprep.mubr.f32.mxu0 %v5104_v37  ;;  %3991 = vmatprep.subr.mxu1 %v1219_v38 }
  0xa4   : > { %3945 = vmatmul.mubr.f32.gmra.mxu0 %v5107_v40  ;;  %3992 = vmatpush3.msra.mxu1 %v1219_v38  ;;  %v5194_v38 = vld [vmem:[#allocation2 + $0xd8] sm:$0xff] }
  0xa5   : > { %4071 = vmatprep.subr.mxu0 %v1525_v0  ;;  %3867 = vmatprep.mubr.f32.mxu1 %v5110_v41 }
  0xa6   : > { %4072 = vmatpush3.msra.mxu0 %v1525_v0  ;;  %3868 = vmatmul.mubr.f32.gmra.mxu1 %v5113_v43  ;;  %v5197_v0 = vld [vmem:[#allocation2 + $0xe0] sm:$0xff] }
  0xa7   : > { %3947 = vmatprep.mubr.f32.mxu0 %v5116_v45  ;;  %3993 = vmatprep.subr.mxu1 %v1218_v46 }
  0xa8   : > { %3948 = vmatmul.mubr.f32.gmra.mxu0 %v5119_v47  ;;  %3994 = vmatpush3.msra.mxu1 %v1218_v46  ;;  %v5200_v46 = vld [vmem:[#allocation2 + $0xda] sm:$0xff] }
  0xa9   : > { %4073 = vmatprep.subr.mxu0 %v1524_v48  ;;  %3870 = vmatprep.mubr.f32.mxu1 %v5122_v49  ;;  %6041 = vst [vmem:[#allocation21_spill] sm:$0xff] %v5200_v46 }
  0xaa   : > { %4074 = vmatpush3.msra.mxu0 %v1524_v48  ;;  %3871 = vmatmul.mubr.f32.gmra.mxu1 %v5125_v50  ;;  %v1211_v48 = vld [vmem:[#allocation6 + $0x1b0] sm:$0xff] }
  0xab   : > { %3950 = vmatprep.mubr.f32.mxu0 %v5128_v51  ;;  %3995 = vmatprep.subr.mxu1 %v1217_v52 }
  0xac   : > { %3951 = vmatmul.mubr.f32.gmra.mxu0 %v5131_v53  ;;  %3996 = vmatpush3.msra.mxu1 %v1217_v52  ;;  %v5203_v52 = vld [vmem:[#allocation2 + $0xe2] sm:$0xff] }
  0xad   : > { %4075 = vmatprep.subr.mxu0 %v1523_v54  ;;  %3873 = vmatprep.mubr.f32.mxu1 %v5134_v55  ;;  %6042 = vst [vmem:[#allocation22_spill] sm:$0xff] %v5203_v52 }
  0xae   : > { %4076 = vmatpush3.msra.mxu0 %v1523_v54  ;;  %3874 = vmatmul.mubr.f32.gmra.mxu1 %v5137_v56  ;;  %v1517_v54 = vld [vmem:[#allocation6 + $0x230] sm:$0xff] }
  0xaf   : > { %3953 = vmatprep.mubr.f32.mxu0 %v5140_v57  ;;  %3997 = vmatprep.subr.mxu1 %v1216_v58 }
  0xb0   : > { %3954 = vmatmul.mubr.f32.gmra.mxu0 %v5143_v59  ;;  %3998 = vmatpush3.msra.mxu1 %v1216_v58  ;;  %v5206_v58 = vld [vmem:[#allocation2 + $0xf0] sm:$0xff] }
  0xb1   : > { %4077 = vmatprep.subr.mxu0 %v1522_v60  ;;  %3876 = vmatprep.mubr.f32.mxu1 %v5146_v61 }
  0xb2   : > { %4078 = vmatpush3.msra.mxu0 %v1522_v60  ;;  %3877 = vmatmul.mubr.f32.gmra.mxu1 %v5149_v62  ;;  %v5209_v60 = vld [vmem:[#allocation2 + $0xf8] sm:$0xff] }
  0xb3   : > { %3956 = vmatprep.mubr.f32.mxu0 %v5152_v63  ;;  %3999 = vmatprep.subr.mxu1 %v1215_v1 }
  0xb4   : > { %3957 = vmatmul.mubr.f32.gmra.mxu0 %v5155_v2  ;;  %4000 = vmatpush3.msra.mxu1 %v1215_v1  ;;  %v5212_v1 = vld [vmem:[#allocation2 + $0xf2] sm:$0xff] }
  0xb5   : > { %4079 = vmatprep.subr.mxu0 %v1521_v3  ;;  %3879 = vmatprep.mubr.f32.mxu1 %v5158_v4  ;;  %6043 = vst [vmem:[#allocation23_spill] sm:$0xff] %v5212_v1 }
  0xb6   : > { %4080 = vmatpush3.msra.mxu0 %v1521_v3  ;;  %3880 = vmatmul.mubr.f32.gmra.mxu1 %v5161_v5  ;;  %v1210_v3 = vld [vmem:[#allocation6 + $0x1a8] sm:$0xff] }
  0xb7   : > { %3959 = vmatprep.mubr.f32.mxu0 %v5164_v6  ;;  %4001 = vmatprep.subr.mxu1 %v1214_v7  ;;  %v1511_v6 = vld [vmem:[#allocation6 + $0x200] sm:$0xff] }
  0xb8   : > { %3960 = vmatmul.mubr.f32.gmra.mxu0 %v5167_v8  ;;  %4002 = vmatpush3.msra.mxu1 %v1214_v7  ;;  %v5215_v7 = vld [vmem:[#allocation2 + $0xfa] sm:$0xff]  ;;  %v5266_v8 = vld [vmem:[#allocation2 + $0x168] sm:$0xff] }
  0xb9   : > { %4081 = vmatprep.subr.mxu0 %v1520_v9  ;;  %3882 = vmatprep.mubr.f32.mxu1 %v5170_v11  ;;  %6044 = vst [vmem:[#allocation24_spill] sm:$0xff] %v5215_v7 }
  0xba   : > { %4082 = vmatpush3.msra.mxu0 %v1520_v9  ;;  %3883 = vmatmul.mubr.f32.gmra.mxu1 %v5173_v13  ;;  %v1516_v9 = vld [vmem:[#allocation6 + $0x228] sm:$0xff] }
  0xbb   : > { %3962 = vmatprep.mubr.f32.mxu0 %v5176_v14  ;;  %4003 = vmatprep.subr.mxu1 %v1213_v19  ;;  %v1512_v14 = vld [vmem:[#allocation6 + $0x208] sm:$0xff] }
  0xbc   : > { %3963 = vmatmul.mubr.f32.gmra.mxu0 %v5179_v21  ;;  %4004 = vmatpush3.msra.mxu1 %v1213_v19  ;;  %v5218_v19 = vld [vmem:[#allocation2 + $0x108] sm:$0xff]  ;;  %v5254_v21 = vld [vmem:[#allocation2 + $0x150] sm:$0xff] }
  0xbd   : > { %4083 = vmatprep.subr.mxu0 %v1519_v22  ;;  %3885 = vmatprep.mubr.f32.mxu1 %v5182_v24 }
  0xbe   : > { %4084 = vmatpush3.msra.mxu0 %v1519_v22  ;;  %3886 = vmatmul.mubr.f32.gmra.mxu1 %v5185_v25  ;;  %v5221_v22 = vld [vmem:[#allocation2 + $0x110] sm:$0xff] }
  0xbf   : > { %3965 = vmatprep.mubr.f32.mxu0 %v5188_v27  ;;  %4005 = vmatprep.subr.mxu1 %v1212_v29  ;;  %v1513_v27 = vld [vmem:[#allocation6 + $0x210] sm:$0xff] }
  0xc0   : > { %3966 = vmatmul.mubr.f32.gmra.mxu0 %v5191_v30  ;;  %4006 = vmatpush3.msra.mxu1 %v1212_v29  ;;  %v5224_v29 = vld [vmem:[#allocation2 + $0x10a] sm:$0xff]  ;;  %v5242_v30 = vld [vmem:[#allocation2 + $0x138] sm:$0xff] }
  0xc1   : > { %4085 = vmatprep.subr.mxu0 %v1518_v32  ;;  %3888 = vmatprep.mubr.f32.mxu1 %v5194_v38  ;;  %6045 = vst [vmem:[#allocation25_spill] sm:$0xff] %v5224_v29 }
  0xc2   : > { %4086 = vmatpush3.msra.mxu0 %v1518_v32  ;;  %3889 = vmatmul.mubr.f32.gmra.mxu1 %v5197_v0  ;;  %v1209_v32 = vld [vmem:[#allocation6 + $0x1a0] sm:$0xff] }
  0xc3   : > { %3968 = vmatprep.mubr.f32.mxu0 %v5200_v46  ;;  %4007 = vmatprep.subr.mxu1 %v1211_v48  ;;  %v1514_v46 = vld [vmem:[#allocation6 + $0x218] sm:$0xff] }
  0xc4   : > { %3969 = vmatmul.mubr.f32.gmra.mxu0 %v5203_v52  ;;  %4008 = vmatpush3.msra.mxu1 %v1211_v48  ;;  %v5227_v48 = vld [vmem:[#allocation2 + $0x112] sm:$0xff]  ;;  %v5230_v52 = vld [vmem:[#allocation2 + $0x120] sm:$0xff] }
  0xc5   : > { %4087 = vmatprep.subr.mxu0 %v1517_v54  ;;  %3891 = vmatprep.mubr.f32.mxu1 %v5206_v58  ;;  %6046 = vst [vmem:[#allocation26_spill] sm:$0xff] %v5227_v48 }
  0xc6   : > { %4088 = vmatpush3.msra.mxu0 %v1517_v54  ;;  %3892 = vmatmul.mubr.f32.gmra.mxu1 %v5209_v60  ;;  %v1515_v54 = vld [vmem:[#allocation6 + $0x220] sm:$0xff] }
  0xc7   : > { %3971 = vmatprep.mubr.f32.mxu0 %v5212_v1  ;;  %4009 = vmatprep.subr.mxu1 %v1210_v3  ;;  %v5233_v1 = vld [vmem:[#allocation2 + $0x128] sm:$0xff] }
  0xc8   : > { %3972 = vmatmul.mubr.f32.gmra.mxu0 %v5215_v7  ;;  %4010 = vmatpush3.msra.mxu1 %v1210_v3  ;;  %v5236_v3 = vld [vmem:[#allocation2 + $0x122] sm:$0xff] }
  0xc9   : > { %4089 = vmatprep.subr.mxu0 %v1516_v9  ;;  %3894 = vmatprep.mubr.f32.mxu1 %v5218_v19  ;;  %6047 = vst [vmem:[#allocation27_spill] sm:$0xff] %v5236_v3  ;;  %v1208_v7 = vld [vmem:[#allocation6 + $0x198] sm:$0xff] }
  0xca   : > { %4090 = vmatpush3.msra.mxu0 %v1516_v9  ;;  %3895 = vmatmul.mubr.f32.gmra.mxu1 %v5221_v22  ;;  %v5239_v9 = vld [vmem:[#allocation2 + $0x12a] sm:$0xff] }
  0xcb   : > { %3974 = vmatprep.mubr.f32.mxu0 %v5224_v29  ;;  %4011 = vmatprep.subr.mxu1 %v1209_v32  ;;  %6048 = vst [vmem:[#allocation28_spill] sm:$0xff] %v5239_v9  ;;  %v5245_v29 = vld [vmem:[#allocation2 + $0x140] sm:$0xff] }
  0xcc   : > { %3975 = vmatmul.mubr.f32.gmra.mxu0 %v5227_v48  ;;  %4012 = vmatpush3.msra.mxu1 %v1209_v32  ;;  %v5248_v32 = vld [vmem:[#allocation2 + $0x13a] sm:$0xff] }
  0xcd   : > { %4091 = vmatprep.subr.mxu0 %v1515_v54  ;;  %3897 = vmatprep.mubr.f32.mxu1 %v5230_v52  ;;  %6049 = vst [vmem:[#allocation29_spill] sm:$0xff] %v5248_v32  ;;  %v1207_v48 = vld [vmem:[#allocation6 + $0x190] sm:$0xff] }
  0xce   : > { %4092 = vmatpush3.msra.mxu0 %v1515_v54  ;;  %3898 = vmatmul.mubr.f32.gmra.mxu1 %v5233_v1  ;;  %v5251_v54 = vld [vmem:[#allocation2 + $0x142] sm:$0xff] }
  0xcf   : > { %3977 = vmatprep.mubr.f32.mxu0 %v5236_v3  ;;  %4013 = vmatprep.subr.mxu1 %v1208_v7  ;;  %6050 = vst [vmem:[#allocation30_spill] sm:$0xff] %v5251_v54  ;;  %v5257_v3 = vld [vmem:[#allocation2 + $0x158] sm:$0xff] }
  0xd0   : > { %3978 = vmatmul.mubr.f32.gmra.mxu0 %v5239_v9  ;;  %4014 = vmatpush3.msra.mxu1 %v1208_v7  ;;  %v5260_v7 = vld [vmem:[#allocation2 + $0x152] sm:$0xff] }
  0xd1   : > { %4093 = vmatprep.subr.mxu0 %v1514_v46  ;;  %3900 = vmatprep.mubr.f32.mxu1 %v5242_v30  ;;  %v1206_v9 = vld [vmem:[#allocation6 + $0x188] sm:$0xff] }
  0xd2   : > { %4094 = vmatpush3.msra.mxu0 %v1514_v46  ;;  %3901 = vmatmul.mubr.f32.gmra.mxu1 %v5245_v29  ;;  %v5263_v46 = vld [vmem:[#allocation2 + $0x15a] sm:$0xff] }
  0xd3   : > { %3980 = vmatprep.mubr.f32.mxu0 %v5248_v32  ;;  %4015 = vmatprep.subr.mxu1 %v1207_v48  ;;  %6051 = vst [vmem:[#allocation31_spill] sm:$0xff] %v5263_v46  ;;  %v5269_v32 = vld [vmem:[#allocation2 + $0x170] sm:$0xff] }
  0xd4   : > { %3981 = vmatmul.mubr.f32.gmra.mxu0 %v5251_v54  ;;  %4016 = vmatpush3.msra.mxu1 %v1207_v48  ;;  %v5272_v48 = vld [vmem:[#allocation2 + $0x16a] sm:$0xff] }
  0xd5   : > { %4095 = vmatprep.subr.mxu0 %v1513_v27  ;;  %3903 = vmatprep.mubr.f32.mxu1 %v5254_v21  ;;  %v1205_v54 = vld [vmem:[#allocation6 + $0x180] sm:$0xff] }
  0xd6   : > { %4096 = vmatpush3.msra.mxu0 %v1513_v27  ;;  %3904 = vmatmul.mubr.f32.gmra.mxu1 %v5257_v3  ;;  %v5275_v27 = vld [vmem:[#allocation2 + $0x172] sm:$0xff] }
  0xd7   : > { %3983 = vmatprep.mubr.f32.mxu0 %v5260_v7  ;;  %4017 = vmatprep.subr.mxu1 %v1206_v9 }
  0xd8   : > { %3984 = vmatmul.mubr.f32.gmra.mxu0 %v5263_v46  ;;  %4018 = vmatpush3.msra.mxu1 %v1206_v9  ;;  %v1832_v46 = vld [vmem:[#allocation6 + $0x2f8] sm:$0xff] }
  0xd9   : > { %4097 = vmatprep.subr.mxu0 %v1512_v14  ;;  %3906 = vmatprep.mubr.f32.mxu1 %v5266_v8  ;;  %v2139_v9 = vld [vmem:[#allocation6 + $0x378] sm:$0xff] }
  0xda   : > { %4098 = vmatpush3.msra.mxu0 %v1512_v14  ;;  %3907 = vmatmul.mubr.f32.gmra.mxu1 %v5269_v32  ;;  %v1831_v14 = vld [vmem:[#allocation6 + $0x2f0] sm:$0xff] }
  0xdb   : > { %3986 = vmatprep.mubr.f32.mxu0 %v5272_v48  ;;  %4019 = vmatprep.subr.mxu1 %v1205_v54 }
  0xdc   : > { %3987 = vmatmul.mubr.f32.gmra.mxu0 %v5275_v27  ;;  %4020 = vmatpush3.msra.mxu1 %v1205_v54  ;;  %v2138_v54 = vld [vmem:[#allocation6 + $0x370] sm:$0xff] }
  0xdd   : > { %4099 = vmatprep.subr.mxu0 %v1511_v6  ;;  %4021 = vmatprep.mubr.f32.mxu1 %v5100_v33  ;;  %v1830_v33 = vld [vmem:[#allocation6 + $0x2e8] sm:$0xff] }
  0xde   : > { %4100 = vmatpush3.msra.mxu0 %v1511_v6  ;;  %4022 = vmatmul.mubr.f32.vlgmr.msra.gmra.mxu1 %v5102_v35  ;;  %v2132_v35 = vld [vmem:[#allocation6 + $0x340] sm:$0xff]  ;;  %v5319_v6 = vld [vmem:[#allocation2 + $0xe1] sm:$0xff] }
  0xdf   : > { %4101 = vmatprep.mubr.f32.mxu0 %v4953_v10  ;;  %4149 = vmatprep.subr.mxu1 %v1832_v46  ;;  %v2137_v10 = vld [vmem:[#allocation6 + $0x368] sm:$0xff] }
  0xe0   : > { %4102 = vmatmul.mubr.f32.vlgmr.msra.gmra.mxu0 %v4961_v12  ;;  %4150 = vmatpush3.msra.mxu1 %v1832_v46  ;;  %v1829_v12 = vld [vmem:[#allocation6 + $0x2e0] sm:$0xff]  ;;  %v2131_v46 = vld [vmem:[#allocation6 + $0x338] sm:$0xff] }
  0xe1   : > { %4229 = vmatprep.subr.mxu0 %v2139_v9  ;;  %4024 = vmatprep.mubr.f32.mxu1 %v5110_v41 }
  0xe2   : > { %4230 = vmatpush3.msra.mxu0 %v2139_v9  ;;  %4025 = vmatmul.mubr.f32.gmra.mxu1 %v5113_v43  ;;  %v5324_v9 = vld [vmem:[#allocation2 + $0xf1] sm:$0xff] }
  0xe3   : > { %4104 = vmatprep.mubr.f32.mxu0 %v4969_v15  ;;  %4151 = vmatprep.subr.mxu1 %v1831_v14  ;;  %v2136_v15 = vld [vmem:[#allocation6 + $0x360] sm:$0xff] }
  0xe4   : > { %4105 = vmatmul.mubr.f32.gmra.mxu0 %v4977_v18  ;;  %4152 = vmatpush3.msra.mxu1 %v1831_v14  ;;  %v1828_v18 = vld [vmem:[#allocation6 + $0x2d8] sm:$0xff]  ;;  %v1823_v14 = vld [vmem:[#allocation6 + $0x2b0] sm:$0xff] }
  0xe5   : > { %4231 = vmatprep.subr.mxu0 %v2138_v54  ;;  %4027 = vmatprep.mubr.f32.mxu1 %v5122_v49 }
  0xe6   : > { %4232 = vmatpush3.msra.mxu0 %v2138_v54  ;;  %4028 = vmatmul.mubr.f32.gmra.mxu1 %v5125_v50  ;;  %v5327_v54 = vld [vmem:[#allocation2 + $0xf9] sm:$0xff] }
  0xe7   : > { %4107 = vmatprep.mubr.f32.mxu0 %v4984_v20  ;;  %4153 = vmatprep.subr.mxu1 %v1830_v33  ;;  %v2135_v20 = vld [vmem:[#allocation6 + $0x358] sm:$0xff] }
  0xe8   : > { %4108 = vmatmul.mubr.f32.gmra.mxu0 %v4992_v23  ;;  %4154 = vmatpush3.msra.mxu1 %v1830_v33  ;;  %v1827_v23 = vld [vmem:[#allocation6 + $0x2d0] sm:$0xff] }
  0xe9   : > { %4233 = vmatprep.subr.mxu0 %v2137_v10  ;;  %4030 = vmatprep.mubr.f32.mxu1 %v5134_v55  ;;  %v2130_v33 = vld [vmem:[#allocation6 + $0x330] sm:$0xff] }
  0xea   : > { %4234 = vmatpush3.msra.mxu0 %v2137_v10  ;;  %4031 = vmatmul.mubr.f32.gmra.mxu1 %v5137_v56  ;;  %v1822_v10 = vld [vmem:[#allocation6 + $0x2a8] sm:$0xff] }
  0xeb   : > { %4110 = vmatprep.mubr.f32.mxu0 %v5001_v26  ;;  %4155 = vmatprep.subr.mxu1 %v1829_v12  ;;  %v2134_v26 = vld [vmem:[#allocation6 + $0x350] sm:$0xff] }
  0xec   : > { %4111 = vmatmul.mubr.f32.gmra.mxu0 %v5009_v28  ;;  %4156 = vmatpush3.msra.mxu1 %v1829_v12  ;;  %v1826_v28 = vld [vmem:[#allocation6 + $0x2c8] sm:$0xff] }
  0xed   : > { %4235 = vmatprep.subr.mxu0 %v2136_v15  ;;  %4033 = vmatprep.mubr.f32.mxu1 %v5146_v61  ;;  %v2129_v12 = vld [vmem:[#allocation6 + $0x328] sm:$0xff] }
  0xee   : > { %4236 = vmatpush3.msra.mxu0 %v2136_v15  ;;  %4034 = vmatmul.mubr.f32.gmra.mxu1 %v5149_v62  ;;  %v4568_v15 = vld [vmem:[#allocation2 + $0x109] sm:$0xff] }
  0xef   : > { %4113 = vmatprep.mubr.f32.mxu0 %v5017_v31  ;;  %4157 = vmatprep.subr.mxu1 %v1828_v18  ;;  %v2133_v31 = vld [vmem:[#allocation6 + $0x348] sm:$0xff] }
  0xf0   : > { %4114 = vmatmul.mubr.f32.gmra.mxu0 %v5025_v34  ;;  %4158 = vmatpush3.msra.mxu1 %v1828_v18  ;;  %v5308_v34 = vld [vmem:[#allocation2 + $0xc1] sm:$0xff]  ;;  %v4569_v18 = vld [vmem:[#allocation2 + $0x111] sm:$0xff] }
  0xf1   : > { %4237 = vmatprep.subr.mxu0 %v2135_v20  ;;  %4036 = vmatprep.mubr.f32.mxu1 %v5158_v4 }
  0xf2   : > { %4238 = vmatpush3.msra.mxu0 %v2135_v20  ;;  %4037 = vmatmul.mubr.f32.gmra.mxu1 %v5161_v5  ;;  %v1821_v20 = vld [vmem:[#allocation6 + $0x2a0] sm:$0xff] }
  0xf3   : > { %4116 = vmatprep.mubr.f32.mxu0 %v5032_v36  ;;  %4159 = vmatprep.subr.mxu1 %v1827_v23  ;;  %v1825_v36 = vld [vmem:[#allocation6 + $0x2c0] sm:$0xff] }
  0xf4   : > { %4117 = vmatmul.mubr.f32.gmra.mxu0 %v5040_v39  ;;  %4160 = vmatpush3.msra.mxu1 %v1827_v23  ;;  %v5311_v39 = vld [vmem:[#allocation2 + $0xc9] sm:$0xff] }
  0xf5   : > { %4239 = vmatprep.subr.mxu0 %v2134_v26  ;;  %4039 = vmatprep.mubr.f32.mxu1 %v5170_v11  ;;  %v2128_v23 = vld [vmem:[#allocation6 + $0x320] sm:$0xff] }
  0xf6   : > { %4240 = vmatpush3.msra.mxu0 %v2134_v26  ;;  %4040 = vmatmul.mubr.f32.gmra.mxu1 %v5173_v13  ;;  %v4570_v26 = vld [vmem:[#allocation2 + $0x121] sm:$0xff] }
  0xf7   : > { %4119 = vmatprep.mubr.f32.mxu0 %v5049_v42  ;;  %4161 = vmatprep.subr.mxu1 %v1826_v28  ;;  %v5316_v42 = vld [vmem:[#allocation2 + $0xd9] sm:$0xff] }
  0xf8   : > { %4120 = vmatmul.mubr.f32.gmra.mxu0 %v5057_v44  ;;  %4162 = vmatpush3.msra.mxu1 %v1826_v28  ;;  %v1824_v44 = vld [vmem:[#allocation6 + $0x2b8] sm:$0xff] }
  0xf9   : > { %4241 = vmatprep.subr.mxu0 %v2133_v31  ;;  %4042 = vmatprep.mubr.f32.mxu1 %v5182_v24  ;;  %v4571_v28 = vld [vmem:[#allocation2 + $0x129] sm:$0xff] }
  0xfa   : > { %4242 = vmatpush3.msra.mxu0 %v2133_v31  ;;  %4043 = vmatmul.mubr.f32.gmra.mxu1 %v5185_v25  ;;  %v1820_v31 = vld [vmem:[#allocation6 + $0x298] sm:$0xff] }
  0xfb   : > { %4122 = vmatprep.mubr.f32.mxu0 %v5308_v34  ;;  %4163 = vmatprep.subr.mxu1 %v1825_v36 }
  0xfc   : > { %4123 = vmatmul.mubr.f32.gmra.mxu0 %v5311_v39  ;;  %4164 = vmatpush3.msra.mxu1 %v1825_v36  ;;  %v2127_v36 = vld [vmem:[#allocation6 + $0x318] sm:$0xff] }
  0xfd   : > { %4243 = vmatprep.subr.mxu0 %v2132_v35  ;;  %4045 = vmatprep.mubr.f32.mxu1 %v5194_v38 }
  0xfe   : > { %4244 = vmatpush3.msra.mxu0 %v2132_v35  ;;  %4046 = vmatmul.mubr.f32.gmra.mxu1 %v5197_v0  ;;  %v4572_v35 = vld [vmem:[#allocation2 + $0x139] sm:$0xff] }
  0xff   : > { %4125 = vmatprep.mubr.f32.mxu0 %v5316_v42  ;;  %4165 = vmatprep.subr.mxu1 %v1824_v44 }
 0x100   : > { %4126 = vmatmul.mubr.f32.gmra.mxu0 %v5319_v6  ;;  %4166 = vmatpush3.msra.mxu1 %v1824_v44  ;;  %v4573_v44 = vld [vmem:[#allocation2 + $0x141] sm:$0xff] }
 0x101   : > { %4245 = vmatprep.subr.mxu0 %v2131_v46  ;;  %4048 = vmatprep.mubr.f32.mxu1 %v5206_v58 }
 0x102   : > { %4246 = vmatpush3.msra.mxu0 %v2131_v46  ;;  %4049 = vmatmul.mubr.f32.gmra.mxu1 %v5209_v60  ;;  %v1819_v46 = vld [vmem:[#allocation6 + $0x290] sm:$0xff] }
 0x103   : > { %4128 = vmatprep.mubr.f32.mxu0 %v5324_v9  ;;  %4167 = vmatprep.subr.mxu1 %v1823_v14 }
 0x104   : > { %4129 = vmatmul.mubr.f32.gmra.mxu0 %v5327_v54  ;;  %4168 = vmatpush3.msra.mxu1 %v1823_v14  ;;  %v2126_v14 = vld [vmem:[#allocation6 + $0x310] sm:$0xff] }
 0x105   : > { %4247 = vmatprep.subr.mxu0 %v2130_v33  ;;  %4051 = vmatprep.mubr.f32.mxu1 %v5218_v19 }
 0x106   : > { %4248 = vmatpush3.msra.mxu0 %v2130_v33  ;;  %4052 = vmatmul.mubr.f32.gmra.mxu1 %v5221_v22  ;;  %v4574_v33 = vld [vmem:[#allocation2 + $0x151] sm:$0xff] }
 0x107   : > { %4131 = vmatprep.mubr.f32.mxu0 %v4568_v15  ;;  %4169 = vmatprep.subr.mxu1 %v1822_v10  ;;  %v2125_v15 = vld [vmem:[#allocation6 + $0x308] sm:$0xff] }
 0x108   : > { %4132 = vmatmul.mubr.f32.gmra.mxu0 %v4569_v18  ;;  %4170 = vmatpush3.msra.mxu1 %v1822_v10  ;;  %v4575_v10 = vld [vmem:[#allocation2 + $0x159] sm:$0xff] }
 0x109   : > { %4249 = vmatprep.subr.mxu0 %v2129_v12  ;;  %4054 = vmatprep.mubr.f32.mxu1 %v5230_v52  ;;  %v5342_v18 = vld [vmem:[#allocation2 + $0x180] sm:$0xff] }
 0x10a   : > { %4250 = vmatpush3.msra.mxu0 %v2129_v12  ;;  %4055 = vmatmul.mubr.f32.gmra.mxu1 %v5233_v1  ;;  %v1818_v12 = vld [vmem:[#allocation6 + $0x288] sm:$0xff] }
 0x10b   : > { %4134 = vmatprep.mubr.f32.mxu0 %v4570_v26  ;;  %4171 = vmatprep.subr.mxu1 %v1821_v20  ;;  %v4577_v26 = vld [vmem:[#allocation2 + $0x171] sm:$0xff] }
 0x10c   : > { %4135 = vmatmul.mubr.f32.gmra.mxu0 %v4571_v28  ;;  %4172 = vmatpush3.msra.mxu1 %v1821_v20  ;;  %v4576_v20 = vld [vmem:[#allocation2 + $0x169] sm:$0xff] }
 0x10d   : > { %4251 = vmatprep.subr.mxu0 %v2128_v23  ;;  %4057 = vmatprep.mubr.f32.mxu1 %v5242_v30  ;;  %v1817_v28 = vld [vmem:[#allocation6 + $0x280] sm:$0xff] }
 0x10e   : > { %4252 = vmatpush3.msra.mxu0 %v2128_v23  ;;  %4058 = vmatmul.mubr.f32.gmra.mxu1 %v5245_v29  ;;  %v5344_v23 = vld [vmem:[#allocation2 + $0x188] sm:$0xff] }
 0x10f   : > { %4137 = vmatprep.mubr.f32.mxu0 %v4572_v35  ;;  %4173 = vmatprep.subr.mxu1 %v1820_v31  ;;  %v2751_v35 = vld [vmem:[#allocation6 + $0x478] sm:$0xff] }
 0x110   : > { %4138 = vmatmul.mubr.f32.gmra.mxu0 %v4573_v44  ;;  %4174 = vmatpush3.msra.mxu1 %v1820_v31  ;;  %v2124_v31 = vld [vmem:[#allocation6 + $0x300] sm:$0xff]  ;;  %v2444_v44 = vld [vmem:[#allocation6 + $0x3f0] sm:$0xff] }
 0x111   : > { %4253 = vmatprep.subr.mxu0 %v2127_v36  ;;  %4060 = vmatprep.mubr.f32.mxu1 %v5254_v21 }
 0x112   : > { %4254 = vmatpush3.msra.mxu0 %v2127_v36  ;;  %4061 = vmatmul.mubr.f32.gmra.mxu1 %v5257_v3  ;;  %v2445_v36 = vld [vmem:[#allocation6 + $0x3f8] sm:$0xff] }
 0x113   : > { %4140 = vmatprep.mubr.f32.mxu0 %v4574_v33  ;;  %4175 = vmatprep.subr.mxu1 %v1819_v46  ;;  %v2744_v33 = vld [vmem:[#allocation6 + $0x440] sm:$0xff] }
 0x114   : > { %4141 = vmatmul.mubr.f32.gmra.mxu0 %v4575_v10  ;;  %4176 = vmatpush3.msra.mxu1 %v1819_v46  ;;  %v6056_v46 = vld [vmem:[#allocation19_spill] sm:$0xff] }
 0x115   : > { %4255 = vmatprep.subr.mxu0 %v2126_v14  ;;  %4063 = vmatprep.mubr.f32.mxu1 %v5266_v8 }
 0x116   : > { %4256 = vmatpush3.msra.mxu0 %v2126_v14  ;;  %4064 = vmatmul.mubr.f32.gmra.mxu1 %v5269_v32  ;;  %v6057_v14 = vld [vmem:[#allocation20_spill] sm:$0xff] }
 0x117   : > { %4143 = vmatprep.mubr.f32.mxu0 %v4576_v20  ;;  %4177 = vmatprep.subr.mxu1 %v1818_v12  ;;  %v6059_v20 = vld [vmem:[#allocation22_spill] sm:$0xff] }
 0x118   : > { %4144 = vmatmul.mubr.f32.gmra.mxu0 %v4577_v26  ;;  %4178 = vmatpush3.msra.mxu1 %v1818_v12  ;;  %v2743_v26 = vld [vmem:[#allocation6 + $0x438] sm:$0xff] }
 0x119   : > { %4257 = vmatprep.subr.mxu0 %v2125_v15  ;;  %4066 = vmatprep.mubr.f32.mxu1 %v5342_v18 }
 0x11a   : > { %4258 = vmatpush3.msra.mxu0 %v2125_v15  ;;  %4067 = vmatmul.mubr.f32.gmra.mxu1 %v5344_v23  ;;  %v6058_v15 = vld [vmem:[#allocation21_spill] sm:$0xff] }
 0x11b   : > { %4146 = vmatprep.mubr.f32.mxu0 %v5086_v16  ;;  %4179 = vmatprep.subr.mxu1 %v1817_v28  ;;  %v2750_v16 = vld [vmem:[#allocation6 + $0x470] sm:$0xff] }
 0x11c   : > { %4147 = vmatmul.mubr.f32.gmra.mxu0 %v5090_v17  ;;  %4180 = vmatpush3.msra.mxu1 %v1817_v28  ;;  %v2443_v17 = vld [vmem:[#allocation6 + $0x3e8] sm:$0xff] }
 0x11d   : > { %4259 = vmatprep.subr.mxu0 %v2124_v31  ;;  %4181 = vmatprep.mubr.f32.mxu1 %v5104_v37  ;;  %v2749_v37 = vld [vmem:[#allocation6 + $0x468] sm:$0xff] }
 0x11e   : > { %4260 = vmatpush3.msra.mxu0 %v2124_v31  ;;  %4182 = vmatmul.mubr.f32.vlgmr.msra.gmra.mxu1 %v5107_v40  ;;  %v2442_v40 = vld [vmem:[#allocation6 + $0x3e0] sm:$0xff] }
 0x11f   : > { %4261 = vmatprep.mubr.f32.mxu0 %v5110_v41  ;;  %4309 = vmatprep.subr.mxu1 %v2445_v36  ;;  %v2748_v41 = vld [vmem:[#allocation6 + $0x460] sm:$0xff] }
 0x120   : > { %4262 = vmatmul.mubr.f32.vlgmr.msra.gmra.mxu0 %v5113_v43  ;;  %4310 = vmatpush3.msra.mxu1 %v2445_v36  ;;  %v2441_v43 = vld [vmem:[#allocation6 + $0x3d8] sm:$0xff]  ;;  %v6060_v31 = vld [vmem:[#allocation23_spill] sm:$0xff]  ;;  %v6061_v36 = vld [vmem:[#allocation24_spill] sm:$0xff] }
 0x121   : > { %4389 = vmatprep.subr.mxu0 %v2751_v35  ;;  %4184 = vmatprep.mubr.f32.mxu1 %v5116_v45  ;;  %v2747_v45 = vld [vmem:[#allocation6 + $0x458] sm:$0xff] }
 0x122   : > { %4390 = vmatpush3.msra.mxu0 %v2751_v35  ;;  %4185 = vmatmul.mubr.f32.gmra.mxu1 %v5119_v47  ;;  %v2742_v35 = vld [vmem:[#allocation6 + $0x430] sm:$0xff] }
 0x123   : > { %4264 = vmatprep.mubr.f32.mxu0 %v5122_v49  ;;  %4311 = vmatprep.subr.mxu1 %v2444_v44  ;;  %v2440_v49 = vld [vmem:[#allocation6 + $0x3d0] sm:$0xff] }
 0x124   : > { %4265 = vmatmul.mubr.f32.gmra.mxu0 %v5125_v50  ;;  %4312 = vmatpush3.msra.mxu1 %v2444_v44 }
 0x125   : > { %4391 = vmatprep.subr.mxu0 %v2750_v16  ;;  %4187 = vmatprep.mubr.f32.mxu1 %v5128_v51  ;;  %v6052_v51 = vld [vmem:[#allocation15_spill] sm:$0xff] }
 0x126   : > { %4392 = vmatpush3.msra.mxu0 %v2750_v16  ;;  %4188 = vmatmul.mubr.f32.gmra.mxu1 %v5131_v53 }
 0x127   : > { %4267 = vmatprep.mubr.f32.mxu0 %v5134_v55  ;;  %4313 = vmatprep.subr.mxu1 %v2443_v17  ;;  %v6053_v55 = vld [vmem:[#allocation16_spill] sm:$0xff] }
 0x128   : > { %4268 = vmatmul.mubr.f32.gmra.mxu0 %v5137_v56  ;;  %4314 = vmatpush3.msra.mxu1 %v2443_v17  ;;  %v2746_v56 = vld [vmem:[#allocation6 + $0x450] sm:$0xff] }
 0x129   : > { %4393 = vmatprep.subr.mxu0 %v2749_v37  ;;  %4190 = vmatprep.mubr.f32.mxu1 %v5140_v57  ;;  %v6062_v17 = vld [vmem:[#allocation25_spill] sm:$0xff] }
 0x12a   : > { %4394 = vmatpush3.msra.mxu0 %v2749_v37  ;;  %4191 = vmatmul.mubr.f32.gmra.mxu1 %v5143_v59  ;;  %v2439_v59 = vld [vmem:[#allocation6 + $0x3c8] sm:$0xff]  ;;  %v6063_v37 = vld [vmem:[#allocation26_spill] sm:$0xff] }
 0x12b   : > { %4270 = vmatprep.mubr.f32.mxu0 %v5146_v61  ;;  %4315 = vmatprep.subr.mxu1 %v2442_v40 }
 0x12c   : > { %4271 = vmatmul.mubr.f32.gmra.mxu0 %v5149_v62  ;;  %4316 = vmatpush3.msra.mxu1 %v2442_v40  ;;  %v6054_v62 = vld [vmem:[#allocation17_spill] sm:$0xff]  ;;  %v2741_v40 = vld [vmem:[#allocation6 + $0x428] sm:$0xff] }
 0x12d   : > { %4395 = vmatprep.subr.mxu0 %v2748_v41  ;;  %4193 = vmatprep.mubr.f32.mxu1 %v5152_v63  ;;  %v6055_v63 = vld [vmem:[#allocation18_spill] sm:$0xff] }
 0x12e   : > { %4396 = vmatpush3.msra.mxu0 %v2748_v41  ;;  %4194 = vmatmul.mubr.f32.gmra.mxu1 %v5155_v2  ;;  %v2745_v2 = vld [vmem:[#allocation6 + $0x448] sm:$0xff] }
 0x12f   : > { %4273 = vmatprep.mubr.f32.mxu0 %v5158_v4  ;;  %4317 = vmatprep.subr.mxu1 %v2441_v43  ;;  %v5369_v47 = vpop.f32.mrf.mxu1 }
 0x130   : > { %4274 = vmatmul.mubr.f32.gmra.mxu0 %v5161_v5  ;;  %4318 = vmatpush3.msra.mxu1 %v2441_v43  ;;  %v5372_v50 = vpop.f32.mrf.mxu0 }
 0x131   : > { %4397 = vmatprep.subr.mxu0 %v2747_v45  ;;  %4196 = vmatprep.mubr.f32.mxu1 %v6052_v51  ;;  %v5375_v53 = vpop.f32.mrf.mxu1  ;;  %v2740_v51 = vld [vmem:[#allocation6 + $0x420] sm:$0xff] }
 0x132   : > { %4398 = vmatpush3.msra.mxu0 %v2747_v45  ;;  %4197 = vmatmul.mubr.f32.gmra.mxu1 %v6053_v55  ;;  %v5378_v57 = vpop.f32.mrf.mxu0  ;;  %v6064_v45 = vld [vmem:[#allocation27_spill] sm:$0xff] }
 0x133   : > { %4276 = vmatprep.mubr.f32.mxu0 %v5170_v11  ;;  %4319 = vmatprep.subr.mxu1 %v2440_v49  ;;  %v2438_v11 = vld [vmem:[#allocation6 + $0x3c0] sm:$0xff] }
 0x134   : > { %4277 = vmatmul.mubr.f32.gmra.mxu0 %v5173_v13  ;;  %4320 = vmatpush3.msra.mxu1 %v2440_v49  ;;  %v5382_v61 = vpop.f32.mrf.mxu1  ;;  %v6065_v49 = vld [vmem:[#allocation28_spill] sm:$0xff] }
 0x135   : > { %4399 = vmatprep.subr.mxu0 %v2746_v56  ;;  %4199 = vmatprep.mubr.f32.mxu1 %v6054_v62  ;;  %v2739_v62 = vld [vmem:[#allocation6 + $0x418] sm:$0xff] }
 0x136   : > { %4400 = vmatpush3.msra.mxu0 %v2746_v56  ;;  %4200 = vmatmul.mubr.f32.gmra.mxu1 %v6055_v63  ;;  %v5386_v4 = vpop.f32.mrf.mxu0  ;;  %v5388_v5 = vpop.f32.mrf.mxu1  ;;  %v6066_v56 = vld [vmem:[#allocation29_spill] sm:$0xff] }
 0x137   : > { %4279 = vmatprep.mubr.f32.mxu0 %v5182_v24  ;;  %4321 = vmatprep.subr.mxu1 %v2439_v59  ;;  %v2437_v24 = vld [vmem:[#allocation6 + $0x3b8] sm:$0xff] }
 0x138   : > { %4280 = vmatmul.mubr.f32.gmra.mxu0 %v5185_v25  ;;  %4322 = vmatpush3.msra.mxu1 %v2439_v59  ;;  %v5392_v13 = vpop.f32.mrf.mxu0  ;;  %v6067_v59 = vld [vmem:[#allocation30_spill] sm:$0xff] }
 0x139   : > { %4401 = vmatprep.subr.mxu0 %v2745_v2  ;;  %4202 = vmatprep.mubr.f32.mxu1 %v6056_v46  ;;  %v2738_v46 = vld [vmem:[#allocation6 + $0x410] sm:$0xff] }
 0x13a   : > { %4402 = vmatpush3.msra.mxu0 %v2745_v2  ;;  %4203 = vmatmul.mubr.f32.gmra.mxu1 %v6057_v14  ;;  %v5396_v10 = vpop.f32.mrf.mxu1 }
 0x13b   : > { %4282 = vmatprep.mubr.f32.mxu0 %v5194_v38  ;;  %4323 = vmatprep.subr.mxu1 %v2438_v11  ;;  %v2436_v38 = vld [vmem:[#allocation6 + $0x3b0] sm:$0xff] }
 0x13c   : > { %4283 = vmatmul.mubr.f32.gmra.mxu0 %v5197_v0  ;;  %4324 = vmatpush3.msra.mxu1 %v2438_v11  ;;  %v5400_v25 = vpop.f32.mrf.mxu0  ;;  %v5402_v12 = vpop.f32.mrf.mxu1  ;;  %v6068_v11 = vld [vmem:[#allocation31_spill] sm:$0xff] }
 0x13d   : > { %4403 = vmatprep.subr.mxu0 %v2744_v33  ;;  %4205 = vmatprep.mubr.f32.mxu1 %v6058_v15  ;;  %v5464_v15 = vld [vmem:[#allocation2 + $0x182] sm:$0xff] }
 0x13e   : > { %4404 = vmatpush3.msra.mxu0 %v2744_v33  ;;  %4206 = vmatmul.mubr.f32.gmra.mxu1 %v6059_v20  ;;  %v5406_v28 = vpop.f32.mrf.mxu0  ;;  %v2430_v20 = vld [vmem:[#allocation6 + $0x380] sm:$0xff] }
 0x13f   : > { %4285 = vmatprep.mubr.f32.mxu0 %v5206_v58  ;;  %4325 = vmatprep.subr.mxu1 %v2437_v24  ;;  %v2435_v58 = vld [vmem:[#allocation6 + $0x3a8] sm:$0xff] }
 0x140   : > { %4286 = vmatmul.mubr.f32.gmra.mxu0 %v5209_v60  ;;  %4326 = vmatpush3.msra.mxu1 %v2437_v24  ;;  %v5410_v0 = vpop.f32.mrf.mxu1 }
 0x141   : > { %4405 = vmatprep.subr.mxu0 %v2743_v26  ;;  %4208 = vmatprep.mubr.f32.mxu1 %v6060_v31 }
 0x142   : > { %4406 = vmatpush3.msra.mxu0 %v2743_v26  ;;  %4209 = vmatmul.mubr.f32.gmra.mxu1 %v6061_v36  ;;  %v5414_v44 = vpop.f32.mrf.mxu0  ;;  %v5416_v16 = vpop.f32.mrf.mxu1  ;;  %v2397_v26 = vld [vmem:[#allocation2 + $0x31] sm:$0xff] }
 0x143   : > { %4288 = vmatprep.mubr.f32.mxu0 %v5218_v19  ;;  %4327 = vmatprep.subr.mxu1 %v2436_v38  ;;  %v2434_v19 = vld [vmem:[#allocation6 + $0x3a0] sm:$0xff] }
 0x144   : > { %4289 = vmatmul.mubr.f32.gmra.mxu0 %v5221_v22  ;;  %4328 = vmatpush3.msra.mxu1 %v2436_v38  ;;  %v5420_v60 = vpop.f32.mrf.mxu0  ;;  %v4578_v38 = vld [vmem:[#allocation2] sm:$0xff]  ;;  %v2703_v36 = vld [vmem:[#allocation2 + $0x32] sm:$0xff] }
 0x145   : > { %4407 = vmatprep.subr.mxu0 %v2742_v35  ;;  %4211 = vmatprep.mubr.f32.mxu1 %v6062_v17 }
 0x146   : > { %4408 = vmatpush3.msra.mxu0 %v2742_v35  ;;  %4212 = vmatmul.mubr.f32.gmra.mxu1 %v6063_v37  ;;  %v5424_v41 = vpop.f32.mrf.mxu1  ;;  %v2399_v35 = vld [vmem:[#allocation2 + $0x49] sm:$0xff] }
 0x147   : > { %4291 = vmatprep.mubr.f32.mxu0 %v5230_v52  ;;  %4329 = vmatprep.subr.mxu1 %v2435_v58  ;;  %v2433_v52 = vld [vmem:[#allocation6 + $0x398] sm:$0xff] }
 0x148   : > { %4292 = vmatmul.mubr.f32.gmra.mxu0 %v5233_v1  ;;  %4330 = vmatpush3.msra.mxu1 %v2435_v58  ;;  %v5428_v22 = vpop.f32.mrf.mxu0  ;;  %v5430_v43 = vpop.f32.mrf.mxu1  ;;  %v2704_v58 = vld [vmem:[#allocation2 + $0x3a] sm:$0xff]  ;;  %v2705_v37 = vld [vmem:[#allocation2 + $0x4a] sm:$0xff] }
 0x149   : > { %4409 = vmatprep.subr.mxu0 %v2741_v40  ;;  %4214 = vmatprep.mubr.f32.mxu1 %v6064_v45 }
 0x14a   : > { %4410 = vmatpush3.msra.mxu0 %v2741_v40  ;;  %4215 = vmatmul.mubr.f32.gmra.mxu1 %v6065_v49  ;;  %v5434_v55 = vpop.f32.mrf.mxu0 }
 0x14b   : > { %4294 = vmatprep.mubr.f32.mxu0 %v5242_v30  ;;  %4331 = vmatprep.subr.mxu1 %v2434_v19  ;;  %v2432_v30 = vld [vmem:[#allocation6 + $0x390] sm:$0xff] }
 0x14c   : > { %4295 = vmatmul.mubr.f32.gmra.mxu0 %v5245_v29  ;;  %4332 = vmatpush3.msra.mxu1 %v2434_v19  ;;  %v5438_v1 = vpop.f32.mrf.mxu1  ;;  %v2400_v19 = vld [vmem:[#allocation2 + $0x51] sm:$0xff] }
 0x14d   : > { %4411 = vmatprep.subr.mxu0 %v2740_v51  ;;  %4217 = vmatprep.mubr.f32.mxu1 %v6066_v56 }
 0x14e   : > { %4412 = vmatpush3.msra.mxu0 %v2740_v51  ;;  %4218 = vmatmul.mubr.f32.gmra.mxu1 %v6067_v59  ;;  %v5442_v63 = vpop.f32.mrf.mxu0  ;;  %v5444_v2 = vpop.f32.mrf.mxu1  ;;  %v2401_v51 = vld [vmem:[#allocation2 + $0x61] sm:$0xff]  ;;  %v2706_v59 = vld [vmem:[#allocation2 + $0x52] sm:$0xff] }
 0x14f   : > { %4297 = vmatprep.mubr.f32.mxu0 %v5254_v21  ;;  %4333 = vmatprep.subr.mxu1 %v2433_v52  ;;  %v2431_v21 = vld [vmem:[#allocation6 + $0x388] sm:$0xff] }
 0x150   : > { %4298 = vmatmul.mubr.f32.gmra.mxu0 %v5257_v3  ;;  %4334 = vmatpush3.msra.mxu1 %v2433_v52  ;;  %v5448_v29 = vpop.f32.mrf.mxu0 }
 0x151   : > { %4413 = vmatprep.subr.mxu0 %v2739_v62  ;;  %4220 = vmatprep.mubr.f32.mxu1 %v5260_v7  ;;  %v2737_v7 = vld [vmem:[#allocation6 + $0x408] sm:$0xff] }
 0x152   : > { %4414 = vmatpush3.msra.mxu0 %v2739_v62  ;;  %4221 = vmatmul.mubr.f32.gmra.mxu1 %v6068_v11  ;;  %v5452_v14 = vpop.f32.mrf.mxu1  ;;  %v2707_v11 = vld [vmem:[#allocation2 + $0x62] sm:$0xff] }
 0x153   : > { %4300 = vmatprep.mubr.f32.mxu0 %v5266_v8  ;;  %4335 = vmatprep.subr.mxu1 %v2432_v30  ;;  %v5467_v8 = vld [vmem:[#allocation2 + $0x18a] sm:$0xff] }
 0x154   : > { %4301 = vmatmul.mubr.f32.gmra.mxu0 %v5269_v32  ;;  %4336 = vmatpush3.msra.mxu1 %v2432_v30  ;;  %v5456_v3 = vpop.f32.mrf.mxu0  ;;  %v5458_v33 = vpop.f32.mrf.mxu1 }
 0x155   : > { %4415 = vmatprep.subr.mxu0 %v2738_v46  ;;  %4223 = vmatprep.mubr.f32.mxu1 %v5272_v48 }
 0x156   : > { %4416 = vmatpush3.msra.mxu0 %v2738_v46  ;;  %4224 = vmatmul.mubr.f32.gmra.mxu1 %v5275_v27  ;;  %v5462_v24 = vpop.f32.mrf.mxu0 }
 0x157   : > { %4303 = vmatprep.mubr.f32.mxu0 %v5342_v18  ;;  %4337 = vmatprep.subr.mxu1 %v2431_v21  ;;  %v2736_v18 = vld [vmem:[#allocation6 + $0x400] sm:$0xff] }
 0x158   : > { %4304 = vmatmul.mubr.f32.gmra.mxu0 %v5344_v23  ;;  %4338 = vmatpush3.msra.mxu1 %v2431_v21  ;;  %v5470_v32 = vpop.f32.mrf.mxu1  ;;  %v2398_v23 = vld [vmem:[#allocation2 + $0x39] sm:$0xff]  ;;  %v2402_v21 = vld [vmem:[#allocation2 + $0x69] sm:$0xff] }
 0x159   : > { %4417 = vmatprep.subr.mxu0 %v2737_v7  ;;  %4226 = vmatprep.mubr.f32.mxu1 %v5464_v15 }
 0x15a   : > { %4418 = vmatpush3.msra.mxu0 %v2737_v7  ;;  %4227 = vmatmul.mubr.f32.gmra.mxu1 %v5467_v8  ;;  %v5474_v48 = vpop.f32.mrf.mxu0  ;;  %v5476_v27 = vpop.f32.mrf.mxu1 }
 0x15b   : > { %4306 = vmatprep.mubr.f32.mxu0 %v4578_v38  ;;  %4339 = vmatprep.subr.mxu1 %v2430_v20 }
 0x15c   : > { %4307 = vmatmul.mubr.f32.gmra.mxu0 %v4578_v38  ;;  %4340 = vmatpush3.msra.mxu1 %v2430_v20  ;;  %v5478_v31 = vpop.f32.mrf.mxu0  ;;  %v2708_v38 = vld [vmem:[#allocation2 + $0x6a] sm:$0xff] }
 0x15d   : > { %4419 = vmatprep.subr.mxu0 %v2736_v18  ;;  %4341 = vmatprep.mubr.f32.mxu1 %v2397_v26 }
 0x15e   : > { %4420 = vmatpush3.msra.mxu0 %v2736_v18  ;;  %v3863_v17 = vpop.f32.mrf.mxu1  ;;  %4342 = vmatmul.mubr.f32.vlgmr.msra.gmra.mxu1 %v2398_v23  ;;  %v2403_v18 = vld [vmem:[#allocation2 + $0x79] sm:$0xff] }
 0x15f   : > { %v713_v40 = vadd.f32 %v3863_v17, %v5372_v50  ;;  %4421 = vmatprep.mubr.f32.mxu0 %v2703_v36  ;;  %4344 = vmatprep.mubr.f32.mxu1 %v2399_v35  ;;  %v2709_v35 = vld [vmem:[#allocation2 + $0x7a] sm:$0xff] }
 0x160   : > { %v3943_v45 = vpop.f32.mrf.mxu0  ;;  %4422 = vmatmul.mubr.f32.vlgmr.msra.gmra.mxu0 %v2704_v58  ;;  %v707_v49 = vpop.f32.mrf.mxu1  ;;  %v2404_v17 = vld [vmem:[#allocation2 + $0x81] sm:$0xff] }
 0x161   : > { %v5481_v52 = vadd.f32 %v3943_v45, %v713_v40  ;;  %v708_v56 = vadd.f32 %v707_v49, %v5378_v57  ;;  %4424 = vmatprep.mubr.f32.mxu0 %v2705_v37  ;;  %v2710_v49 = vld [vmem:[#allocation2 + $0x82] sm:$0xff] }
 0x162   : > { %v981_v62 = vpop.f32.mrf.mxu0  ;;  %v3866_v30 = vpop.f32.mrf.mxu1  ;;  %4345 = vmatmul.mubr.f32.gmra.mxu1 %v2400_v19  ;;  %v2405_v19 = vld [vmem:[#allocation2 + $0x91] sm:$0xff] }
 0x163   : > { %v5484_v46 = vadd.f32 %v981_v62, %v708_v56  ;;  %v723_v50 = vadd.f32 %v3866_v30, %v5386_v4  ;;  %4347 = vmatprep.mubr.f32.mxu1 %v2401_v51  ;;  %v2406_v30 = vld [vmem:[#allocation2 + $0x99] sm:$0xff] }
 0x164   : > { %v3946_v7 = vpop.f32.mrf.mxu0  ;;  %4425 = vmatmul.mubr.f32.gmra.mxu0 %v2706_v59  ;;  %v717_v20 = vpop.f32.mrf.mxu1  ;;  %v2711_v59 = vld [vmem:[#allocation2 + $0x92] sm:$0xff] }
 0x165   : > { %v5487_v26 = vadd.f32 %v3946_v7, %v723_v50  ;;  %v718_v57 = vadd.f32 %v717_v20, %v5392_v13  ;;  %4427 = vmatprep.mubr.f32.mxu0 %v2707_v11  ;;  %v2712_v20 = vld [vmem:[#allocation2 + $0x9a] sm:$0xff] }
 0x166   : > { %v991_v23 = vpop.f32.mrf.mxu0  ;;  %v3869_v36 = vpop.f32.mrf.mxu1  ;;  %4348 = vmatmul.mubr.f32.gmra.mxu1 %v2402_v21  ;;  %v2407_v21 = vld [vmem:[#allocation2 + $0xa9] sm:$0xff] }
 0x167   : > { %v5490_v58 = vadd.f32 %v991_v23, %v718_v57  ;;  %v733_v4 = vadd.f32 %v3869_v36, %v5400_v25  ;;  %4350 = vmatprep.mubr.f32.mxu1 %v2403_v18  ;;  %v2408_v36 = vld [vmem:[#allocation2 + $0xb1] sm:$0xff] }
 0x168   : > { %v3949_v37 = vpop.f32.mrf.mxu0  ;;  %4428 = vmatmul.mubr.f32.gmra.mxu0 %v2708_v38  ;;  %v727_v40 = vpop.f32.mrf.mxu1  ;;  %v2713_v38 = vld [vmem:[#allocation2 + $0xaa] sm:$0xff] }
 0x169   : > { %v5493_v45 = vadd.f32 %v3949_v37, %v733_v4  ;;  %v728_v13 = vadd.f32 %v727_v40, %v5406_v28  ;;  %4430 = vmatprep.mubr.f32.mxu0 %v2709_v35 }
 0x16a   : > { %v1001_v51 = vpop.f32.mrf.mxu0  ;;  %v3872_v56 = vpop.f32.mrf.mxu1  ;;  %4351 = vmatmul.mubr.f32.gmra.mxu1 %v2404_v17 }
 0x16b   : > { %v5496_v62 = vadd.f32 %v1001_v51, %v728_v13  ;;  %v743_v25 = vadd.f32 %v3872_v56, %v5414_v44  ;;  %4353 = vmatprep.mubr.f32.mxu1 %v2405_v19  ;;  %v2715_v13 = vld [vmem:[#allocation2 + $0xc2] sm:$0xff] }
 0x16c   : > { %v3952_v11 = vpop.f32.mrf.mxu0  ;;  %4431 = vmatmul.mubr.f32.gmra.mxu0 %v2710_v49  ;;  %v737_v50 = vpop.f32.mrf.mxu1 }
 0x16d   : > { %v5499_v7 = vadd.f32 %v3952_v11, %v743_v25  ;;  %v738_v28 = vadd.f32 %v737_v50, %v5420_v60  ;;  %4433 = vmatprep.mubr.f32.mxu0 %v2711_v59  ;;  %v2714_v60 = vld [vmem:[#allocation2 + $0xb2] sm:$0xff]  ;;  %v2717_v50 = vld [vmem:[#allocation2 + $0xda] sm:$0xff] }
 0x16e   : > { %v1011_v18 = vpop.f32.mrf.mxu0  ;;  %v3875_v57 = vpop.f32.mrf.mxu1  ;;  %4354 = vmatmul.mubr.f32.gmra.mxu1 %v2406_v30 }
 0x16f   : > { %v5502_v23 = vadd.f32 %v1011_v18, %v738_v28  ;;  %v753_v44 = vadd.f32 %v3875_v57, %v5428_v22  ;;  %4356 = vmatprep.mubr.f32.mxu1 %v2407_v21  ;;  %v2718_v18 = vld [vmem:[#allocation2 + $0xe2] sm:$0xff] }
 0x170   : > { %v3955_v35 = vpop.f32.mrf.mxu0  ;;  %4434 = vmatmul.mubr.f32.gmra.mxu0 %v2712_v20  ;;  %v747_v4 = vpop.f32.mrf.mxu1 }
 0x171   : > { %v5505_v17 = vadd.f32 %v3955_v35, %v753_v44  ;;  %v748_v37 = vadd.f32 %v747_v4, %v5434_v55  ;;  %4436 = vmatprep.mubr.f32.mxu0 %v2713_v38  ;;  %v2716_v55 = vld [vmem:[#allocation2 + $0xca] sm:$0xff] }
 0x172   : > { %v1021_v40 = vpop.f32.mrf.mxu0  ;;  %v3878_v19 = vpop.f32.mrf.mxu1  ;;  %4357 = vmatmul.mubr.f32.gmra.mxu1 %v2408_v36  ;;  %v2415_v35 = vld [vmem:[#allocation2 + $0x109] sm:$0xff] }
 0x173   : > { %v5508_v49 = vadd.f32 %v1021_v40, %v748_v37  ;;  %v763_v51 = vadd.f32 %v3878_v19, %v5442_v63  ;;  %4359 = vmatprep.mubr.f32.mxu1 %v5308_v34  ;;  %v2720_v37 = vld [vmem:[#allocation2 + $0xfa] sm:$0xff] }
 0x174   : > { %v3958_v22 = vpop.f32.mrf.mxu0  ;;  %4437 = vmatmul.mubr.f32.gmra.mxu0 %v2714_v60  ;;  %v757_v56 = vpop.f32.mrf.mxu1 }
 0x175   : > { %v5512_v59 = vadd.f32 %v3958_v22, %v763_v51  ;;  %v758_v25 = vadd.f32 %v757_v56, %v5448_v29  ;;  %4439 = vmatprep.mubr.f32.mxu0 %v2715_v13  ;;  %v2417_v22 = vld [vmem:[#allocation2 + $0x121] sm:$0xff] }
 0x176   : > { %v1031_v30 = vpop.f32.mrf.mxu0  ;;  %v3881_v11 = vpop.f32.mrf.mxu1  ;;  %4360 = vmatmul.mubr.f32.gmra.mxu1 %v5311_v39  ;;  %v2719_v39 = vld [vmem:[#allocation2 + $0xf2] sm:$0xff] }
 0x177   : > { %v5516_v21 = vadd.f32 %v1031_v30, %v758_v25  ;;  %v773_v63 = vadd.f32 %v3881_v11, %v5456_v3  ;;  %4362 = vmatprep.mubr.f32.mxu1 %v5316_v42  ;;  %v2722_v25 = vld [vmem:[#allocation2 + $0x112] sm:$0xff] }
 0x178   : > { %v3961_v34 = vpop.f32.mrf.mxu0  ;;  %4440 = vmatmul.mubr.f32.gmra.mxu0 %v2716_v55  ;;  %v767_v28 = vpop.f32.mrf.mxu1 }
 0x179   : > { %v5520_v20 = vadd.f32 %v3961_v34, %v773_v63  ;;  %v768_v29 = vadd.f32 %v767_v28, %v5462_v24  ;;  %4442 = vmatprep.mubr.f32.mxu0 %v2717_v50  ;;  %v2418_v50 = vld [vmem:[#allocation2 + $0x129] sm:$0xff]  ;;  %v2419_v28 = vld [vmem:[#allocation2 + $0x139] sm:$0xff] }
 0x17a   : > { %v1041_v57 = vpop.f32.mrf.mxu0  ;;  %v3884_v38 = vpop.f32.mrf.mxu1  ;;  %4363 = vmatmul.mubr.f32.gmra.mxu1 %v5319_v6  ;;  %v2721_v6 = vld [vmem:[#allocation2 + $0x10a] sm:$0xff] }
 0x17b   : > { %v5524_v44 = vadd.f32 %v1041_v57, %v768_v29  ;;  %v783_v3 = vadd.f32 %v3884_v38, %v5474_v48  ;;  %4365 = vmatprep.mubr.f32.mxu1 %v5324_v9  ;;  %v2416_v9 = vld [vmem:[#allocation2 + $0x111] sm:$0xff] }
 0x17c   : > { %v3964_v42 = vpop.f32.mrf.mxu0  ;;  %4443 = vmatmul.mubr.f32.gmra.mxu0 %v2718_v18  ;;  %v777_v36 = vpop.f32.mrf.mxu1  ;;  %v2724_v18 = vld [vmem:[#allocation2 + $0x12a] sm:$0xff] }
 0x17d   : > { %v5528_v4 = vadd.f32 %v3964_v42, %v783_v3  ;;  %v778_v24 = vadd.f32 %v777_v36, %v5478_v31  ;;  %4445 = vmatprep.mubr.f32.mxu0 %v2719_v39  ;;  %v2725_v39 = vld [vmem:[#allocation2 + $0x13a] sm:$0xff] }
 0x17e   : > { %v1051_v60 = vpop.f32.mrf.mxu0  ;;  %v3887_v40 = vpop.f32.mrf.mxu1  ;;  %4366 = vmatmul.mubr.f32.gmra.mxu1 %v5327_v54  ;;  %v2723_v54 = vld [vmem:[#allocation2 + $0x122] sm:$0xff] }
 0x17f   : > { %v5532_v19 = vadd.f32 %v1051_v60, %v778_v24  ;;  %v793_v48 = vadd.f32 %v3887_v40, %v5369_v47  ;;  %4368 = vmatprep.mubr.f32.mxu1 %v2415_v35  ;;  %v2420_v42 = vld [vmem:[#allocation2 + $0x141] sm:$0xff]  ;;  %v2421_v24 = vld [vmem:[#allocation2 + $0x151] sm:$0xff] }
 0x180   : > { %v3967_v13 = vpop.f32.mrf.mxu0  ;;  %4446 = vmatmul.mubr.f32.gmra.mxu0 %v2720_v37  ;;  %v787_v51 = vpop.f32.mrf.mxu1  ;;  %v2726_v60 = vld [vmem:[#allocation2 + $0x142] sm:$0xff] }
 0x181   : > { %v5535_v56 = vadd.f32 %v3967_v13, %v793_v48  ;;  %v788_v31 = vadd.f32 %v787_v51, %v5375_v53  ;;  %4448 = vmatprep.mubr.f32.mxu0 %v2721_v6  ;;  %v2727_v48 = vld [vmem:[#allocation2 + $0x152] sm:$0xff] }
 0x182   : > { %v1061_v55 = vpop.f32.mrf.mxu0  ;;  %v3890_v30 = vpop.f32.mrf.mxu1  ;;  %4369 = vmatmul.mubr.f32.gmra.mxu1 %v2416_v9  ;;  %v2422_v13 = vld [vmem:[#allocation2 + $0x159] sm:$0xff] }
 0x183   : > { %v5538_v11 = vadd.f32 %v1061_v55, %v788_v31  ;;  %v803_v47 = vadd.f32 %v3890_v30, %v5382_v61  ;;  %4371 = vmatprep.mubr.f32.mxu1 %v2417_v22  ;;  %v2423_v31 = vld [vmem:[#allocation2 + $0x169] sm:$0xff]  ;;  %v2728_v55 = vld [vmem:[#allocation2 + $0x15a] sm:$0xff] }
 0x184   : > { %v3970_v63 = vpop.f32.mrf.mxu0  ;;  %4449 = vmatmul.mubr.f32.gmra.mxu0 %v2722_v25  ;;  %v797_v34 = vpop.f32.mrf.mxu1 }
 0x185   : > { %v5541_v29 = vadd.f32 %v3970_v63, %v803_v47  ;;  %v798_v53 = vadd.f32 %v797_v34, %v5388_v5  ;;  %4451 = vmatprep.mubr.f32.mxu0 %v2723_v54  ;;  %v2729_v47 = vld [vmem:[#allocation2 + $0x16a] sm:$0xff] }
 0x186   : > { %v1071_v57 = vpop.f32.mrf.mxu0  ;;  %v3893_v38 = vpop.f32.mrf.mxu1  ;;  %4372 = vmatmul.mubr.f32.gmra.mxu1 %v2418_v50  ;;  %v2424_v63 = vld [vmem:[#allocation2 + $0x171] sm:$0xff] }
 0x187   : > { %v5544_v3 = vadd.f32 %v1071_v57, %v798_v53  ;;  %v813_v61 = vadd.f32 %v3893_v38, %v5396_v10  ;;  %4374 = vmatprep.mubr.f32.mxu1 %v2419_v28 }
 0x188   : > { %v3973_v36 = vpop.f32.mrf.mxu0  ;;  %4452 = vmatmul.mubr.f32.gmra.mxu0 %v2724_v18  ;;  %v807_v35 = vpop.f32.mrf.mxu1 }
 0x189   : > { %v5547_v37 = vadd.f32 %v3973_v36, %v813_v61  ;;  %v808_v5 = vadd.f32 %v807_v35, %v5402_v12  ;;  %4454 = vmatprep.mubr.f32.mxu0 %v2725_v39  ;;  %v2427_v35 = vld [vmem:[#allocation2 + $0x199] sm:$0xff] }
 0x18a   : > { %v1081_v40 = vpop.f32.mrf.mxu0  ;;  %v3896_v6 = vpop.f32.mrf.mxu1  ;;  %4375 = vmatmul.mubr.f32.gmra.mxu1 %v2420_v42  ;;  %v4579_v42 = vld [vmem:[#allocation2 + $0x181] sm:$0xff] }
 0x18b   : > { %v5550_v9 = vadd.f32 %v1081_v40, %v808_v5  ;;  %v823_v10 = vadd.f32 %v3896_v6, %v5410_v0  ;;  %4377 = vmatprep.mubr.f32.mxu1 %v2421_v24  ;;  %v4580_v40 = vld [vmem:[#allocation2 + $0x189] sm:$0xff]  ;;  %v2733_v6 = vld [vmem:[#allocation2 + $0x19a] sm:$0xff] }
 0x18c   : > { %v3976_v51 = vpop.f32.mrf.mxu0  ;;  %4455 = vmatmul.mubr.f32.gmra.mxu0 %v2726_v60  ;;  %v817_v22 = vpop.f32.mrf.mxu1 }
 0x18d   : > { %v5553_v25 = vadd.f32 %v3976_v51, %v823_v10  ;;  %v818_v12 = vadd.f32 %v817_v22, %v5416_v16  ;;  %4457 = vmatprep.mubr.f32.mxu0 %v2727_v48  ;;  %v2730_v16 = vld [vmem:[#allocation2 + $0x172] sm:$0xff]  ;;  %v2428_v10 = vld [vmem:[#allocation2 + $0x1a1] sm:$0xff] }
 0x18e   : > { %v1091_v30 = vpop.f32.mrf.mxu0  ;;  %v3899_v54 = vpop.f32.mrf.mxu1  ;;  %4378 = vmatmul.mubr.f32.gmra.mxu1 %v2422_v13 }
 0x18f   : > { %v5556_v50 = vadd.f32 %v1091_v30, %v818_v12  ;;  %v833_v0 = vadd.f32 %v3899_v54, %v5424_v41  ;;  %4380 = vmatprep.mubr.f32.mxu1 %v2423_v31 }
 0x190   : > { %v3979_v34 = vpop.f32.mrf.mxu0  ;;  %4458 = vmatmul.mubr.f32.gmra.mxu0 %v2728_v55  ;;  %v827_v28 = vpop.f32.mrf.mxu1 }
 0x191   : > { %v5559_v53 = vadd.f32 %v3979_v34, %v833_v0  ;;  %v828_v18 = vadd.f32 %v827_v28, %v5430_v43  ;;  %4460 = vmatprep.mubr.f32.mxu0 %v2729_v47 }
 0x192   : > { %v1101_v57 = vpop.f32.mrf.mxu0  ;;  %v3902_v38 = vpop.f32.mrf.mxu1  ;;  %4381 = vmatmul.mubr.f32.gmra.mxu1 %v2424_v63 }
 0x193   : > { %v5562_v39 = vadd.f32 %v1101_v57, %v828_v18  ;;  %v843_v61 = vadd.f32 %v3902_v38, %v5438_v1  ;;  %4383 = vmatprep.mubr.f32.mxu1 %v4579_v42 }
 0x194   : > { %v3982_v41 = vpop.f32.mrf.mxu0  ;;  %4461 = vmatmul.mubr.f32.gmra.mxu0 %v2730_v16  ;;  %v837_v36 = vpop.f32.mrf.mxu1 }
 0x195   : > { %v5565_v24 = vadd.f32 %v3982_v41, %v843_v61  ;;  %v838_v5 = vadd.f32 %v837_v36, %v5444_v2  ;;  %4463 = vmatprep.mubr.f32.mxu0 %v5464_v15  ;;  %v2734_v15 = vld [vmem:[#allocation2 + $0x1a2] sm:$0xff] }
 0x196   : > { %v1111_v43 = vpop.f32.mrf.mxu0  ;;  %v3905_v60 = vpop.f32.mrf.mxu1  ;;  %4384 = vmatmul.mubr.f32.gmra.mxu1 %v4580_v40 }
 0x197   : > { %v5569_v48 = vadd.f32 %v1111_v43, %v838_v5  ;;  %v853_v1 = vadd.f32 %v3905_v60, %v5452_v14  ;;  %4386 = vmatprep.mubr.f32.mxu1 %v2427_v35 }
 0x198   : > { %v3985_v13 = vpop.f32.mrf.mxu0  ;;  %4464 = vmatmul.mubr.f32.gmra.mxu0 %v5467_v8  ;;  %v847_v51 = vpop.f32.mrf.mxu1 }
 0x199   : > { %v5573_v22 = vadd.f32 %v3985_v13, %v853_v1  ;;  %v848_v2 = vadd.f32 %v847_v51, %v5458_v33  ;;  %4466 = vmatprep.mubr.f32.mxu0 %v2733_v6 }
 0x19a   : > { %v1121_v31 = vpop.f32.mrf.mxu0  ;;  %v3908_v12 = vpop.f32.mrf.mxu1  ;;  %4387 = vmatmul.mubr.f32.gmra.mxu1 %v2428_v10 }
 0x19b   : > { %v5576_v55 = vadd.f32 %v1121_v31, %v848_v2  ;;  %v863_v30 = vadd.f32 %v3908_v12, %v5470_v32 }
 0x19c   : > { %v3988_v14 = vpop.f32.mrf.mxu0  ;;  %4467 = vmatmul.mubr.f32.gmra.mxu0 %v2734_v15  ;;  %v857_v54 = vpop.f32.mrf.mxu1 }
 0x19d   : > { %v5579_v47 = vadd.f32 %v3988_v14, %v863_v30  ;;  %v858_v8 = vadd.f32 %v857_v54, %v5476_v27 }
 0x19e   : > { %v1131_v0 = vpop.f32.mrf.mxu0  ;;  %v4023_v63 = vpop.f32.mrf.mxu1 }
 0x19f   : > { %v5582_v34 = vadd.f32 %v1131_v0, %v858_v8  ;;  %v1447_v33 = vadd.f32 %v4023_v63, %v5481_v52 }
 0x1a0   : > { %v4103_v28 = vpop.f32.mrf.mxu0  ;;  %v1287_v18 = vpop.f32.mrf.mxu1 }
 0x1a1   : > { %v5585_v16 = vadd.f32 %v4103_v28, %v1447_v33  ;;  %v1446_v57 = vadd.f32 %v1287_v18, %v5484_v46 }
 0x1a2   : > { %v1593_v32 = vpop.f32.mrf.mxu0  ;;  %v4026_v38 = vpop.f32.mrf.mxu1 }
 0x1a3   : > { %v5588_v61 = vadd.f32 %v1593_v32, %v1446_v57  ;;  %v1449_v42 = vadd.f32 %v4026_v38, %v5487_v26 }
 0x1a4   : > { %v4106_v41 = vpop.f32.mrf.mxu0  ;;  %v1297_v27 = vpop.f32.mrf.mxu1 }
 0x1a5   : > { %v5591_v36 = vadd.f32 %v4106_v41, %v1449_v42  ;;  %v1448_v35 = vadd.f32 %v1297_v27, %v5490_v58 }
 0x1a6   : > { %v1603_v5 = vpop.f32.mrf.mxu0  ;;  %v4029_v52 = vpop.f32.mrf.mxu1 }
 0x1a7   : > { %v5594_v43 = vadd.f32 %v1603_v5, %v1448_v35  ;;  %v1451_v60 = vadd.f32 %v4029_v52, %v5493_v45 }
 0x1a8   : > { %v4109_v40 = vpop.f32.mrf.mxu0  ;;  %v1307_v46 = vpop.f32.mrf.mxu1 }
 0x1a9   : > { %v5597_v6 = vadd.f32 %v4109_v40, %v1451_v60  ;;  %v1450_v1 = vadd.f32 %v1307_v46, %v5496_v62 }
 0x1aa   : > { %v1613_v10 = vpop.f32.mrf.mxu0  ;;  %v4032_v26 = vpop.f32.mrf.mxu1 }
 0x1ab   : > { %v5600_v13 = vadd.f32 %v1613_v10, %v1450_v1  ;;  %v1453_v51 = vadd.f32 %v4032_v26, %v5499_v7 }
 0x1ac   : > { %v4112_v2 = vpop.f32.mrf.mxu0  ;;  %v1317_v58 = vpop.f32.mrf.mxu1 }
 0x1ad   : > { %v5603_v15 = vadd.f32 %v4112_v2, %v1453_v51  ;;  %v1452_v31 = vadd.f32 %v1317_v58, %v5502_v23 }
 0x1ae   : > { %v1623_v12 = vpop.f32.mrf.mxu0  ;;  %v4035_v45 = vpop.f32.mrf.mxu1 }
 0x1af   : > { %v5606_v30 = vadd.f32 %v1623_v12, %v1452_v31  ;;  %v1455_v14 = vadd.f32 %v4035_v45, %v5505_v17 }
 0x1b0   : > { %v4115_v54 = vpop.f32.mrf.mxu0  ;;  %v1327_v62 = vpop.f32.mrf.mxu1 }
 0x1b1   : > { %v5609_v8 = vadd.f32 %v4115_v54, %v1455_v14  ;;  %v1454_v0 = vadd.f32 %v1327_v62, %v5508_v49 }
 0x1b2   : > { %v1633_v63 = vpop.f32.mrf.mxu0  ;;  %v4038_v7 = vpop.f32.mrf.mxu1 }
 0x1b3   : > { %v5612_v33 = vadd.f32 %v1633_v63, %v1454_v0  ;;  %v1457_v28 = vadd.f32 %v4038_v7, %v5512_v59 }
 0x1b4   : > { %v4118_v18 = vpop.f32.mrf.mxu0  ;;  %v1337_v23 = vpop.f32.mrf.mxu1 }
 0x1b5   : > { %v5615_v57 = vadd.f32 %v4118_v18, %v1457_v28  ;;  %v1456_v32 = vadd.f32 %v1337_v23, %v5516_v21 }
 0x1b6   : > { %v1643_v38 = vpop.f32.mrf.mxu0  ;;  %v4041_v17 = vpop.f32.mrf.mxu1 }
 0x1b7   : > { %v5618_v42 = vadd.f32 %v1643_v38, %v1456_v32  ;;  %v1459_v41 = vadd.f32 %v4041_v17, %v5520_v20 }
 0x1b8   : > { %v4121_v27 = vpop.f32.mrf.mxu0  ;;  %v1347_v49 = vpop.f32.mrf.mxu1 }
 0x1b9   : > { %v5621_v35 = vadd.f32 %v4121_v27, %v1459_v41  ;;  %v1458_v5 = vadd.f32 %v1347_v49, %v5524_v44 }
 0x1ba   : > { %v1653_v52 = vpop.f32.mrf.mxu0  ;;  %v4044_v59 = vpop.f32.mrf.mxu1 }
 0x1bb   : > { %v5624_v60 = vadd.f32 %v1653_v52, %v1458_v5  ;;  %v1461_v40 = vadd.f32 %v4044_v59, %v5528_v4 }
 0x1bc   : > { %v4124_v46 = vpop.f32.mrf.mxu0  ;;  %v1357_v21 = vpop.f32.mrf.mxu1 }
 0x1bd   : > { %v5627_v1 = vadd.f32 %v4124_v46, %v1461_v40  ;;  %v1460_v10 = vadd.f32 %v1357_v21, %v5532_v19 }
 0x1be   : > { %v1663_v26 = vpop.f32.mrf.mxu0  ;;  %v4047_v20 = vpop.f32.mrf.mxu1 }
 0x1bf   : > { %v5630_v51 = vadd.f32 %v1663_v26, %v1460_v10  ;;  %v1463_v2 = vadd.f32 %v4047_v20, %v5535_v56 }
 0x1c0   : > { %v4127_v58 = vpop.f32.mrf.mxu0  ;;  %v1367_v44 = vpop.f32.mrf.mxu1 }
 0x1c1   : > { %v5633_v31 = vadd.f32 %v4127_v58, %v1463_v2  ;;  %v1462_v12 = vadd.f32 %v1367_v44, %v5538_v11 }
 0x1c2   : > { %v1673_v45 = vpop.f32.mrf.mxu0  ;;  %v4050_v4 = vpop.f32.mrf.mxu1 }
 0x1c3   : > { %v5636_v14 = vadd.f32 %v1673_v45, %v1462_v12  ;;  %v1465_v54 = vadd.f32 %v4050_v4, %v5541_v29 }
 0x1c4   : > { %v4130_v62 = vpop.f32.mrf.mxu0  ;;  %v1377_v19 = vpop.f32.mrf.mxu1 }
 0x1c5   : > { %v5639_v0 = vadd.f32 %v4130_v62, %v1465_v54  ;;  %v1464_v63 = vadd.f32 %v1377_v19, %v5544_v3 }
 0x1c6   : > { %v1683_v7 = vpop.f32.mrf.mxu0  ;;  %v4053_v56 = vpop.f32.mrf.mxu1 }
 0x1c7   : > { %6069 = vst [vmem:[#allocation15_spill] sm:$0xff] %v5639_v0  ;;  %v5642_v28 = vadd.f32 %v1683_v7, %v1464_v63  ;;  %v1467_v18 = vadd.f32 %v4053_v56, %v5547_v37 }
 0x1c8   : > { %v4133_v23 = vpop.f32.mrf.mxu0  ;;  %v1387_v11 = vpop.f32.mrf.mxu1 }
 0x1c9   : > { %6070 = vst [vmem:[#allocation16_spill] sm:$0xff] %v5642_v28  ;;  %v5645_v32 = vadd.f32 %v4133_v23, %v1467_v18  ;;  %v1466_v38 = vadd.f32 %v1387_v11, %v5550_v9 }
 0x1ca   : > { %v1693_v17 = vpop.f32.mrf.mxu0  ;;  %v4056_v29 = vpop.f32.mrf.mxu1 }
 0x1cb   : > { %6071 = vst [vmem:[#allocation17_spill] sm:$0xff] %v5645_v32  ;;  %v5648_v41 = vadd.f32 %v1693_v17, %v1466_v38  ;;  %v1469_v27 = vadd.f32 %v4056_v29, %v5553_v25 }
 0x1cc   : > { %v4136_v49 = vpop.f32.mrf.mxu0  ;;  %v1397_v3 = vpop.f32.mrf.mxu1 }
 0x1cd   : > { %6072 = vst [vmem:[#allocation18_spill] sm:$0xff] %v5648_v41  ;;  %v5651_v5 = vadd.f32 %v4136_v49, %v1469_v27  ;;  %v1468_v52 = vadd.f32 %v1397_v3, %v5556_v50 }
 0x1ce   : > { %v1703_v59 = vpop.f32.mrf.mxu0  ;;  %v4059_v37 = vpop.f32.mrf.mxu1 }
 0x1cf   : > { %6073 = vst [vmem:[#allocation19_spill] sm:$0xff] %v5651_v5  ;;  %v5654_v40 = vadd.f32 %v1703_v59, %v1468_v52  ;;  %v1471_v46 = vadd.f32 %v4059_v37, %v5559_v53 }
 0x1d0   : > { %v4139_v21 = vpop.f32.mrf.mxu0  ;;  %v1407_v9 = vpop.f32.mrf.mxu1 }
 0x1d1   : > { %6074 = vst [vmem:[#allocation20_spill] sm:$0xff] %v5654_v40  ;;  %v5657_v10 = vadd.f32 %v4139_v21, %v1471_v46  ;;  %v1470_v26 = vadd.f32 %v1407_v9, %v5562_v39 }
 0x1d2   : > { %v1713_v20 = vpop.f32.mrf.mxu0  ;;  %v4062_v25 = vpop.f32.mrf.mxu1 }
 0x1d3   : > { %6075 = vst [vmem:[#allocation21_spill] sm:$0xff] %v5657_v10  ;;  %v5660_v2 = vadd.f32 %v1713_v20, %v1470_v26  ;;  %v1473_v58 = vadd.f32 %v4062_v25, %v5565_v24 }
 0x1d4   : > { %v4142_v44 = vpop.f32.mrf.mxu0  ;;  %v1417_v50 = vpop.f32.mrf.mxu1 }
 0x1d5   : > { %6076 = vst [vmem:[#allocation22_spill] sm:$0xff] %v5660_v2  ;;  %v5663_v12 = vadd.f32 %v4142_v44, %v1473_v58  ;;  %v1472_v45 = vadd.f32 %v1417_v50, %v5569_v48 }
 0x1d6   : > { %v1723_v4 = vpop.f32.mrf.mxu0  ;;  %v4065_v53 = vpop.f32.mrf.mxu1 }
 0x1d7   : > { %6077 = vst [vmem:[#allocation23_spill] sm:$0xff] %v5663_v12  ;;  %v5666_v54 = vadd.f32 %v1723_v4, %v1472_v45  ;;  %v1475_v62 = vadd.f32 %v4065_v53, %v5573_v22 }
 0x1d8   : > { %v4145_v19 = vpop.f32.mrf.mxu0  ;;  %v1427_v39 = vpop.f32.mrf.mxu1 }
 0x1d9   : > { %6078 = vst [vmem:[#allocation24_spill] sm:$0xff] %v5666_v54  ;;  %v5669_v63 = vadd.f32 %v4145_v19, %v1475_v62  ;;  %v1474_v7 = vadd.f32 %v1427_v39, %v5576_v55 }
 0x1da   : > { %v1733_v56 = vpop.f32.mrf.mxu0  ;;  %v4068_v24 = vpop.f32.mrf.mxu1 }
 0x1db   : > { %6079 = vst [vmem:[#allocation25_spill] sm:$0xff] %v5669_v63  ;;  %v5672_v18 = vadd.f32 %v1733_v56, %v1474_v7  ;;  %v1477_v23 = vadd.f32 %v4068_v24, %v5579_v47 }
 0x1dc   : > { %v4148_v11 = vpop.f32.mrf.mxu0  ;;  %v1437_v48 = vpop.f32.mrf.mxu1 }
 0x1dd   : > { %6080 = vst [vmem:[#allocation26_spill] sm:$0xff] %v5672_v18  ;;  %v5675_v38 = vadd.f32 %v4148_v11, %v1477_v23  ;;  %v1476_v17 = vadd.f32 %v1437_v48, %v5582_v34 }
 0x1de   : > { %v1743_v29 = vpop.f32.mrf.mxu0  ;;  %v4183_v22 = vpop.f32.mrf.mxu1 }
 0x1df   : > { %6081 = vst [vmem:[#allocation27_spill] sm:$0xff] %v5675_v38  ;;  %v5678_v27 = vadd.f32 %v1743_v29, %v1476_v17 }
 0x1e0   : > { %v5680_v49 = vpop.f32.mrf.mxu0  ;;  %v1899_v3 = vpop.f32.mrf.mxu1 }
 0x1e1   : > { %6082 = vst [vmem:[#allocation28_spill] sm:$0xff] %v5678_v27 }
 0x1e2   : > { %v5682_v55 = vpop.f32.mrf.mxu0  ;;  %v4186_v52 = vpop.f32.mrf.mxu1 }
 0x1e4   : > { %v5684_v59 = vpop.f32.mrf.mxu0  ;;  %v5686_v37 = vpop.f32.mrf.mxu1 }
 0x1e6   : > { %v5688_v47 = vpop.f32.mrf.mxu0  ;;  %v5690_v46 = vpop.f32.mrf.mxu1 }
 0x1e8   : > { %v5692_v21 = vpop.f32.mrf.mxu0  ;;  %v5694_v34 = vpop.f32.mrf.mxu1 }
 0x1ea   : > { %v5696_v9 = vpop.f32.mrf.mxu0  ;;  %v5698_v26 = vpop.f32.mrf.mxu1 }
 0x1ec   : > { %v5700_v20 = vpop.f32.mrf.mxu0  ;;  %v5702_v25 = vpop.f32.mrf.mxu1 }
 0x1ee   : > { %v5704_v58 = vpop.f32.mrf.mxu0  ;;  %v5706_v44 = vpop.f32.mrf.mxu1 }
 0x1f0   : > { %v5708_v50 = vpop.f32.mrf.mxu0  ;;  %v5710_v45 = vpop.f32.mrf.mxu1 }
 0x1f2   : > { %v5712_v4 = vpop.f32.mrf.mxu0  ;;  %v5714_v53 = vpop.f32.mrf.mxu1 }
 0x1f4   : > { %v5716_v62 = vpop.f32.mrf.mxu0  ;;  %v5718_v19 = vpop.f32.mrf.mxu1 }
 0x1f6   : > { %v5720_v39 = vpop.f32.mrf.mxu0  ;;  %v5722_v7 = vpop.f32.mrf.mxu1 }
 0x1f8   : > { %v5724_v56 = vpop.f32.mrf.mxu0  ;;  %v5726_v24 = vpop.f32.mrf.mxu1 }
 0x1fa   : > { %v5728_v23 = vpop.f32.mrf.mxu0  ;;  %v5730_v11 = vpop.f32.mrf.mxu1 }
 0x1fc   : > { %v5732_v48 = vpop.f32.mrf.mxu0  ;;  %v5734_v17 = vpop.f32.mrf.mxu1 }
 0x1fe   : > { %v5736_v29 = vpop.f32.mrf.mxu0  ;;  %v5738_v27 = vpop.f32.mrf.mxu1 }
 0x200   : > { %v5740_v38 = vpop.f32.mrf.mxu0  ;;  %v5742_v18 = vpop.f32.mrf.mxu1 }
 0x202   : > { %v5744_v63 = vpop.f32.mrf.mxu0  ;;  %v5746_v54 = vpop.f32.mrf.mxu1 }
 0x203   : > { %6083 = vst [vmem:[#allocation29_spill] sm:$0xff] %v5744_v63  ;;  %6084 = vst [vmem:[#allocation30_spill] sm:$0xff] %v5746_v54 }
 0x204   : > { %v5748_v12 = vpop.f32.mrf.mxu0  ;;  %v5750_v2 = vpop.f32.mrf.mxu1 }
 0x205   : > { %6085 = vst [vmem:[#allocation31_spill] sm:$0xff] %v5748_v12  ;;  %6086 = vst [vmem:[#allocation32_spill] sm:$0xff] %v5750_v2 }
 0x206   : > { %v5752_v10 = vpop.f32.mrf.mxu0  ;;  %v5754_v40 = vpop.f32.mrf.mxu1 }
 0x207   : > { %6087 = vst [vmem:[#allocation33_spill] sm:$0xff] %v5752_v10  ;;  %6088 = vst [vmem:[#allocation34_spill] sm:$0xff] %v5754_v40 }
 0x208   : > { %v5756_v5 = vpop.f32.mrf.mxu0  ;;  %v5758_v41 = vpop.f32.mrf.mxu1 }
 0x209   : > { %6089 = vst [vmem:[#allocation35_spill] sm:$0xff] %v5756_v5  ;;  %6090 = vst [vmem:[#allocation36_spill] sm:$0xff] %v5758_v41 }
 0x20a   : > { %v5760_v32 = vpop.f32.mrf.mxu0  ;;  %v5762_v28 = vpop.f32.mrf.mxu1 }
 0x20b   : > { %6091 = vst [vmem:[#allocation37_spill] sm:$0xff] %v5760_v32  ;;  %6092 = vst [vmem:[#allocation38_spill] sm:$0xff] %v5762_v28 }
 0x20c   : > { %v5764_v0 = vpop.f32.mrf.mxu0  ;;  %v5766_v63 = vpop.f32.mrf.mxu1 }
 0x20d   : > { %6093 = vst [vmem:[#allocation39_spill] sm:$0xff] %v5764_v0  ;;  %6094 = vst [vmem:[#allocation40_spill] sm:$0xff] %v5766_v63 }
 0x20e   : > { %v5768_v54 = vpop.f32.mrf.mxu0  ;;  %v5770_v12 = vpop.f32.mrf.mxu1 }
 0x20f   : > { %6095 = vst [vmem:[#allocation41_spill] sm:$0xff] %v5768_v54  ;;  %6096 = vst [vmem:[#allocation42_spill] sm:$0xff] %v5770_v12 }
 0x210   : > { %v5772_v2 = vpop.f32.mrf.mxu0  ;;  %v5774_v10 = vpop.f32.mrf.mxu1 }
 0x211   : > { %6097 = vst [vmem:[#allocation43_spill] sm:$0xff] %v5772_v2  ;;  %6098 = vst [vmem:[#allocation44_spill] sm:$0xff] %v5774_v10  ;;  %v2059_v2 = vadd.f32 %v4183_v22, %v5585_v16  ;;  %v2060_v22 = vadd.f32 %v5686_v37, %v5594_v43  ;;  %v2065_v37 = vadd.f32 %v5698_v26, %v5603_v15 }
 0x212   : > { %v5776_v40 = vpop.f32.mrf.mxu0  ;;  %v5778_v5 = vpop.f32.mrf.mxu1 }
 0x213   : > { %6099 = vst [vmem:[#allocation45_spill] sm:$0xff] %v5776_v40  ;;  %6100 = vst [vmem:[#allocation46_spill] sm:$0xff] %v5778_v5  ;;  %v2058_v40 = vadd.f32 %v1899_v3, %v5588_v61  ;;  %v2063_v61 = vadd.f32 %v5690_v46, %v5597_v6 }
 0x214   : > { %v5780_v41 = vpop.f32.mrf.mxu0  ;;  %v5782_v32 = vpop.f32.mrf.mxu1 }
 0x215   : > { %6101 = vst [vmem:[#allocation47_spill] sm:$0xff] %v5780_v41  ;;  %v2365_v16 = vadd.f32 %v5682_v55, %v2058_v40  ;;  %v2062_v40 = vadd.f32 %v5694_v34, %v5600_v13 }
 0x216   : > { %v5784_v28 = vpop.f32.mrf.mxu0  ;;  %v5786_v0 = vpop.f32.mrf.mxu1 }
 0x217   : > { %6102 = vst [vmem:[#allocation48_spill] sm:$0xff] %v5784_v28  ;;  %6103 = vst [vmem:[#allocation49_spill] sm:$0xff] %v5786_v0  ;;  %v2366_v28 = vadd.f32 %v5680_v49, %v2059_v2  ;;  %v2061_v0 = vadd.f32 %v4186_v52, %v5591_v36  ;;  %v2369_v34 = vadd.f32 %v5696_v9, %v2062_v40 }
 0x218   : > { %v5788_v63 = vpop.f32.mrf.mxu0  ;;  %v5790_v54 = vpop.f32.mrf.mxu1 }
 0x219   : > { %6104 = vst [vmem:[#allocation50_spill] sm:$0xff] %v5788_v63  ;;  %6105 = vst [vmem:[#allocation51_spill] sm:$0xff] %v5790_v54 }
 0x21a   : > { %v5793_v12 = vpop.f32.mrf.mxu0  ;;  %v5795_v10 = vpop.f32.mrf.mxu1 }
 0x21b   : > { %6106 = vst [vmem:[#allocation52_spill] sm:$0xff] %v5793_v12 }
 0x21c   : > { %v5798_v5 = vpop.f32.mrf.mxu0  ;;  %v5800_v41 = vpop.f32.mrf.mxu1 }
 0x21d   : > { %6107 = vst [vmem:[#allocation53_spill] sm:$0xff] %v5798_v5  ;;  %6108 = vst [vmem:[#allocation54_spill] sm:$0xff] %v5800_v41  ;;  %v2368_v41 = vadd.f32 %v5684_v59, %v2061_v0  ;;  %v2370_v0 = vadd.f32 %v5692_v21, %v2063_v61  ;;  %v2067_v61 = vadd.f32 %v5706_v44, %v5609_v8 }
 0x21e   : > { %v5804_v63 = vpop.f32.mrf.mxu0  ;;  %v4343_v54 = vpop.f32.mrf.mxu1  ;;  %v2066_v44 = vadd.f32 %v5710_v45, %v5612_v33 }
 0x21f   : > { %6109 = vst [vmem:[#allocation55_spill] sm:$0xff] %v5804_v63  ;;  %v2672_v12 = vadd.f32 %v4343_v54, %v2366_v28  ;;  %v2367_v63 = vadd.f32 %v5688_v47, %v2060_v22  ;;  %v2064_v47 = vadd.f32 %v5702_v25, %v5606_v30  ;;  %v2372_v30 = vadd.f32 %v5700_v20, %v2065_v37 }
 0x220   : > { %v4423_v3 = vpop.f32.mrf.mxu0  ;;  %v2512_v5 = vpop.f32.mrf.mxu1  ;;  %v2374_v8 = vadd.f32 %v5708_v50, %v2067_v61 }
 0x221   : > { %v2978_v2 = vadd.f32 %v4423_v3, %v2672_v12  ;;  %v2671_v49 = vadd.f32 %v2512_v5, %v2365_v16  ;;  %v2371_v9 = vadd.f32 %v5704_v58, %v2064_v47 }
 0x222   : > { %v2818_v36 = vpop.f32.mrf.mxu0  ;;  %v4346_v52 = vpop.f32.mrf.mxu1 }
 0x223   : > { %3010 = vst [vmem:[%s5817_s18 + $0x8] sm:$0xff] %v2978_v2  ;;  %v2977_v43 = vadd.f32 %v2818_v36, %v2671_v49  ;;  %v2674_v6 = vadd.f32 %v4346_v52, %v2368_v41  ;;  %v3080_v28 = vmul.f32 %v2978_v2, %v2978_v2 }
 0x224   : > { %v4426_v5 = vpop.f32.mrf.mxu0  ;;  %v2522_v12 = vpop.f32.mrf.mxu1 }
 0x225   : > { %3009 = vst [vmem:[%s5817_s18] sm:$0xff] %v2977_v43  ;;  %v3041_v54 = vadd.f32 %v2978_v2, %v2977_v43  ;;  %v3079_v55 = vmul.f32 %v2977_v43, %v2977_v43  ;;  %v2980_v59 = vadd.f32 %v4426_v5, %v2674_v6  ;;  %v2673_v13 = vadd.f32 %v2522_v12, %v2367_v63 }
 0x226   : > { %v2828_v46 = vpop.f32.mrf.mxu0  ;;  %v4349_v41 = vpop.f32.mrf.mxu1 }
 0x227   : > { %v3111_v21 = vadd.f32 %v3080_v28, %v3079_v55  ;;  %3012 = vst [vmem:[%s5817_s18 + $0x18] sm:$0xff] %v2980_v59  ;;  %v2979_v16 = vadd.f32 %v2828_v46, %v2673_v13  ;;  %v2676_v22 = vadd.f32 %v4349_v41, %v2370_v0  ;;  %v3082_v52 = vmul.f32 %v2980_v59, %v2980_v59 }
 0x228   : > { %v4429_v3 = vpop.f32.mrf.mxu0  ;;  %v2532_v63 = vpop.f32.mrf.mxu1  ;;  %v2069_v0 = vadd.f32 %v5714_v53, %v5615_v57  ;;  %v2373_v46 = vadd.f32 %v5712_v4, %v2066_v44 }
 0x229   : > { %3011 = vst [vmem:[%s5817_s18 + $0x10] sm:$0xff] %v2979_v16  ;;  %v3042_v2 = vadd.f32 %v3041_v54, %v2979_v16  ;;  %v3081_v15 = vmul.f32 %v2979_v16, %v2979_v16  ;;  %v2982_v26 = vadd.f32 %v4429_v3, %v2676_v22  ;;  %v2675_v49 = vadd.f32 %v2532_v63, %v2369_v34 }
 0x22a   : > { %v2838_v25 = vpop.f32.mrf.mxu0  ;;  %v4352_v36 = vpop.f32.mrf.mxu1  ;;  %v2376_v41 = vadd.f32 %v5716_v62, %v2069_v0  ;;  %v2071_v34 = vadd.f32 %v5722_v7, %v5621_v35  ;;  %v2070_v63 = vadd.f32 %v5726_v24, %v5624_v60 }
 0x22b   : > { %v3112_v40 = vadd.f32 %v3111_v21, %v3081_v15  ;;  %3014 = vst [vmem:[%s5817_s18 + $0x28] sm:$0xff] %v2982_v26  ;;  %v2981_v43 = vadd.f32 %v2838_v25, %v2675_v49  ;;  %v3043_v6 = vadd.f32 %v3042_v2, %v2980_v59  ;;  %v2678_v28 = vadd.f32 %v4352_v36, %v2372_v30 }
 0x22c   : > { %v4432_v5 = vpop.f32.mrf.mxu0  ;;  %v2542_v20 = vpop.f32.mrf.mxu1  ;;  %v2068_v59 = vadd.f32 %v5718_v19, %v5618_v42  ;;  %v3084_v50 = vmul.f32 %v2982_v26, %v2982_v26  ;;  %v2378_v49 = vadd.f32 %v5724_v56, %v2071_v34  ;;  %v2072_v56 = vadd.f32 %v5734_v17, %v5630_v51 }
 0x22d   : > { %3013 = vst [vmem:[%s5817_s18 + $0x20] sm:$0xff] %v2981_v43  ;;  %v3044_v58 = vadd.f32 %v3043_v6, %v2981_v43  ;;  %v3083_v12 = vmul.f32 %v2981_v43, %v2981_v43  ;;  %v3113_v54 = vadd.f32 %v3112_v40, %v3082_v52  ;;  %v2677_v55 = vadd.f32 %v2542_v20, %v2371_v9 }
 0x22e   : > { %v2984_v13 = vadd.f32 %v4432_v5, %v2678_v28  ;;  %v2848_v37 = vpop.f32.mrf.mxu0  ;;  %v4355_v33 = vpop.f32.mrf.mxu1  ;;  %v2375_v3 = vadd.f32 %v5720_v39, %v2068_v59  ;;  %v2073_v39 = vadd.f32 %v5730_v11, %v5627_v1  ;;  %v2075_v1 = vadd.f32 %v5738_v27, %v5633_v31 }
 0x22f   : > { %v3114_v45 = vadd.f32 %v3113_v54, %v3083_v12  ;;  %v2983_v47 = vadd.f32 %v2848_v37, %v2677_v55  ;;  %v3045_v57 = vadd.f32 %v3044_v58, %v2982_v26  ;;  %v2680_v53 = vadd.f32 %v4355_v33, %v2374_v8 }
 0x230   : > { %3016 = vst [vmem:[%s5817_s18 + $0x38] sm:$0xff] %v2984_v13  ;;  %v4435_v21 = vpop.f32.mrf.mxu0  ;;  %v2552_v16 = vpop.f32.mrf.mxu1  ;;  %v3086_v15 = vmul.f32 %v2984_v13, %v2984_v13  ;;  %v2377_v8 = vadd.f32 %v5728_v23, %v2070_v63  ;;  %v2380_v12 = vadd.f32 %v5732_v48, %v2073_v39  ;;  %v2074_v31 = vadd.f32 %v5742_v18, %v5636_v14 }
 0x231   : > { %3015 = vst [vmem:[%s5817_s18 + $0x30] sm:$0xff] %v2983_v47  ;;  %v3046_v42 = vadd.f32 %v3045_v57, %v2983_v47  ;;  %v3085_v19 = vmul.f32 %v2983_v47, %v2983_v47  ;;  %v3115_v22 = vadd.f32 %v3114_v45, %v3084_v50  ;;  %v2986_v61 = vadd.f32 %v4435_v21, %v2680_v53 }
 0x232   : > { %v2679_v4 = vadd.f32 %v2552_v16, %v2373_v46  ;;  %v2858_v62 = vpop.f32.mrf.mxu0  ;;  %v4358_v2 = vpop.f32.mrf.mxu1  ;;  %v2382_v33 = vadd.f32 %v5740_v38, %v2075_v1  ;;  %v6110_v46 = vld [vmem:[#allocation15_spill] sm:$0xff] }
 0x233   : > { %v3116_v35 = vadd.f32 %v3115_v22, %v3085_v19  ;;  %3018 = vst [vmem:[%s5817_s18 + $0x48] sm:$0xff] %v2986_v61  ;;  %v3047_v7 = vadd.f32 %v3046_v42, %v2984_v13  ;;  %v2682_v26 = vadd.f32 %v4358_v2, %v2376_v41  ;;  %v3088_v11 = vmul.f32 %v2986_v61, %v2986_v61  ;;  %v6111_v41 = vld [vmem:[#allocation30_spill] sm:$0xff]  ;;  %v6112_v22 = vld [vmem:[#allocation29_spill] sm:$0xff] }
 0x234   : > { %v2985_v30 = vadd.f32 %v2858_v62, %v2679_v4  ;;  %v4438_v9 = vpop.f32.mrf.mxu0  ;;  %v2562_v25 = vpop.f32.mrf.mxu1  ;;  %v2379_v13 = vadd.f32 %v5736_v29, %v2072_v56  ;;  %v2077_v34 = vadd.f32 %v6111_v41, %v6110_v46  ;;  %v2381_v38 = vadd.f32 %v6112_v22, %v2074_v31  ;;  %v6115_v2 = vld [vmem:[#allocation17_spill] sm:$0xff] }
 0x235   : > { %v3117_v36 = vadd.f32 %v3116_v35, %v3086_v15  ;;  %v2988_v60 = vadd.f32 %v4438_v9, %v2682_v26  ;;  %v2681_v24 = vadd.f32 %v2562_v25, %v2375_v3  ;;  %v6114_v3 = vld [vmem:[#allocation32_spill] sm:$0xff]  ;;  %v6116_v15 = vld [vmem:[#allocation34_spill] sm:$0xff]  ;;  %v6117_v25 = vld [vmem:[#allocation31_spill] sm:$0xff] }
 0x236   : > { %3017 = vst [vmem:[%s5817_s18 + $0x40] sm:$0xff] %v2985_v30  ;;  %v3048_v52 = vadd.f32 %v3047_v7, %v2985_v30  ;;  %v3087_v40 = vmul.f32 %v2985_v30, %v2985_v30  ;;  %v2868_v43 = vpop.f32.mrf.mxu0  ;;  %v4361_v6 = vpop.f32.mrf.mxu1  ;;  %v2079_v35 = vadd.f32 %v6116_v15, %v6115_v2  ;;  %v2384_v39 = vadd.f32 %v6117_v25, %v2077_v34 }
 0x237   : > { %3020 = vst [vmem:[%s5817_s18 + $0x58] sm:$0xff] %v2988_v60  ;;  %v2987_v44 = vadd.f32 %v2868_v43, %v2681_v24  ;;  %v2684_v0 = vadd.f32 %v4361_v6, %v2378_v49  ;;  %v3090_v48 = vmul.f32 %v2988_v60, %v2988_v60 }
 0x238   : > { %v3118_v28 = vadd.f32 %v3117_v36, %v3087_v40  ;;  %v3049_v5 = vadd.f32 %v3048_v52, %v2986_v61  ;;  %v4441_v20 = vpop.f32.mrf.mxu0  ;;  %v2572_v58 = vpop.f32.mrf.mxu1  ;;  %v6113_v61 = vld [vmem:[#allocation16_spill] sm:$0xff] }
 0x239   : > { %3019 = vst [vmem:[%s5817_s18 + $0x50] sm:$0xff] %v2987_v44  ;;  %v3089_v54 = vmul.f32 %v2987_v44, %v2987_v44  ;;  %v2990_v23 = vadd.f32 %v4441_v20, %v2684_v0  ;;  %v2683_v55 = vadd.f32 %v2572_v58, %v2377_v8  ;;  %v2076_v63 = vadd.f32 %v6114_v3, %v6113_v61  ;;  %v6118_v8 = vld [vmem:[#allocation33_spill] sm:$0xff]  ;;  %v6120_v0 = vld [vmem:[#allocation36_spill] sm:$0xff] }
 0x23a   : > { %v3050_v59 = vadd.f32 %v3049_v5, %v2987_v44  ;;  %v3119_v51 = vadd.f32 %v3118_v28, %v3088_v11  ;;  %v2878_v17 = vpop.f32.mrf.mxu0  ;;  %v4364_v50 = vpop.f32.mrf.mxu1  ;;  %v6119_v44 = vld [vmem:[#allocation18_spill] sm:$0xff]  ;;  %v6121_v5 = vld [vmem:[#allocation35_spill] sm:$0xff] }
 0x23b   : > { %3022 = vst [vmem:[%s5817_s18 + $0x68] sm:$0xff] %v2990_v23  ;;  %v2989_v27 = vadd.f32 %v2878_v17, %v2683_v55  ;;  %v2686_v37 = vadd.f32 %v4364_v50, %v2380_v12  ;;  %v3092_v7 = vmul.f32 %v2990_v23, %v2990_v23  ;;  %v2383_v56 = vadd.f32 %v6118_v8, %v2076_v63  ;;  %v6134_v8 = vld [vmem:[#allocation23_spill] sm:$0xff] }
 0x23c   : > { %v3120_v45 = vadd.f32 %v3119_v51, %v3089_v54  ;;  %v3051_v47 = vadd.f32 %v3050_v59, %v2988_v60  ;;  %v4444_v57 = vpop.f32.mrf.mxu0  ;;  %v2582_v53 = vpop.f32.mrf.mxu1  ;;  %v2078_v1 = vadd.f32 %v6120_v0, %v6119_v44  ;;  %v2386_v20 = vadd.f32 %v6121_v5, %v2079_v35  ;;  %v6122_v59 = vld [vmem:[#allocation19_spill] sm:$0xff]  ;;  %v6123_v51 = vld [vmem:[#allocation38_spill] sm:$0xff] }
 0x23d   : > { %3021 = vst [vmem:[%s5817_s18 + $0x60] sm:$0xff] %v2989_v27  ;;  %v3091_v21 = vmul.f32 %v2989_v27, %v2989_v27  ;;  %v2992_v29 = vadd.f32 %v4444_v57, %v2686_v37  ;;  %v2685_v16 = vadd.f32 %v2582_v53, %v2379_v13  ;;  %v2081_v17 = vadd.f32 %v6123_v51, %v6122_v59  ;;  %v6125_v57 = vld [vmem:[#allocation20_spill] sm:$0xff] }
 0x23e   : > { %v3052_v42 = vadd.f32 %v3051_v47, %v2989_v27  ;;  %v3121_v14 = vadd.f32 %v3120_v45, %v3090_v48  ;;  %v2888_v18 = vpop.f32.mrf.mxu0  ;;  %v4367_v19 = vpop.f32.mrf.mxu1  ;;  %v6124_v45 = vld [vmem:[#allocation37_spill] sm:$0xff]  ;;  %v6126_v53 = vld [vmem:[#allocation40_spill] sm:$0xff] }
 0x23f   : > { %3024 = vst [vmem:[%s5817_s18 + $0x78] sm:$0xff] %v2992_v29  ;;  %v2991_v4 = vadd.f32 %v2888_v18, %v2685_v16  ;;  %v2688_v62 = vadd.f32 %v4367_v19, %v2382_v33  ;;  %v3094_v58 = vmul.f32 %v2992_v29, %v2992_v29  ;;  %v2385_v47 = vadd.f32 %v6124_v45, %v2078_v1  ;;  %v6140_v45 = vld [vmem:[#allocation47_spill] sm:$0xff] }
 0x240   : > { %v3122_v26 = vadd.f32 %v3121_v14, %v3091_v21  ;;  %v3053_v49 = vadd.f32 %v3052_v42, %v2990_v23  ;;  %v4447_v30 = vpop.f32.mrf.mxu0  ;;  %v2592_v9 = vpop.f32.mrf.mxu1  ;;  %v2080_v46 = vadd.f32 %v6126_v53, %v6125_v57  ;;  %v6127_v21 = vld [vmem:[#allocation21_spill] sm:$0xff] }
 0x241   : > { %3023 = vst [vmem:[%s5817_s18 + $0x70] sm:$0xff] %v2991_v4  ;;  %v3093_v36 = vmul.f32 %v2991_v4, %v2991_v4  ;;  %v2994_v60 = vadd.f32 %v4447_v30, %v2688_v62  ;;  %v2687_v24 = vadd.f32 %v2592_v9, %v2381_v38  ;;  %v6129_v38 = vld [vmem:[#allocation39_spill] sm:$0xff]  ;;  %v6132_v30 = vld [vmem:[#allocation44_spill] sm:$0xff] }
 0x242   : > { %v3054_v52 = vadd.f32 %v3053_v49, %v2991_v4  ;;  %v3123_v40 = vadd.f32 %v3122_v26, %v3092_v7  ;;  %v2898_v43 = vpop.f32.mrf.mxu0  ;;  %v4370_v6 = vpop.f32.mrf.mxu1  ;;  %v2388_v61 = vadd.f32 %v6129_v38, %v2081_v17  ;;  %v6130_v7 = vld [vmem:[#allocation41_spill] sm:$0xff]  ;;  %v6131_v49 = vld [vmem:[#allocation22_spill] sm:$0xff] }
 0x243   : > { %3026 = vst [vmem:[%s5817_s18 + $0x88] sm:$0xff] %v2994_v60  ;;  %v2993_v11 = vadd.f32 %v2898_v43, %v2687_v24  ;;  %v2690_v28 = vadd.f32 %v4370_v6, %v2384_v39  ;;  %v3096_v42 = vmul.f32 %v2994_v60, %v2994_v60  ;;  %v2387_v26 = vadd.f32 %v6130_v7, %v2080_v46  ;;  %v6138_v17 = vld [vmem:[#allocation25_spill] sm:$0xff]  ;;  %v6144_v38 = vld [vmem:[#allocation50_spill] sm:$0xff] }
 0x244   : > { %v3124_v12 = vadd.f32 %v3123_v40, %v3093_v36  ;;  %v3055_v54 = vadd.f32 %v3054_v52, %v2992_v29  ;;  %v4450_v23 = vpop.f32.mrf.mxu0  ;;  %v2602_v55 = vpop.f32.mrf.mxu1  ;;  %v6128_v29 = vld [vmem:[#allocation42_spill] sm:$0xff]  ;;  %v2082_v9 = vadd.f32 %v6132_v30, %v6131_v49  ;;  %v6133_v36 = vld [vmem:[#allocation43_spill] sm:$0xff] }
 0x245   : > { %3025 = vst [vmem:[%s5817_s18 + $0x80] sm:$0xff] %v2993_v11  ;;  %v3095_v50 = vmul.f32 %v2993_v11, %v2993_v11  ;;  %v2996_v13 = vadd.f32 %v4450_v23, %v2690_v28  ;;  %v2689_v31 = vadd.f32 %v2602_v55, %v2383_v56  ;;  %v2083_v16 = vadd.f32 %v6128_v29, %v6127_v21  ;;  %v6135_v56 = vld [vmem:[#allocation46_spill] sm:$0xff]  ;;  %v6137_v23 = vld [vmem:[#allocation24_spill] sm:$0xff] }
 0x246   : > { %v3056_v27 = vadd.f32 %v3055_v54, %v2993_v11  ;;  %v3125_v37 = vadd.f32 %v3124_v12, %v3094_v58  ;;  %v2908_v33 = vpop.f32.mrf.mxu0  ;;  %v4373_v48 = vpop.f32.mrf.mxu1  ;;  %v2085_v44 = vadd.f32 %v6135_v56, %v6134_v8  ;;  %v6136_v12 = vld [vmem:[#allocation45_spill] sm:$0xff]  ;;  %v2084_v55 = vadd.f32 %v5782_v32, %v6137_v23  ;;  %v6141_v29 = vld [vmem:[#allocation48_spill] sm:$0xff] }
 0x247   : > { %3028 = vst [vmem:[%s5817_s18 + $0x98] sm:$0xff] %v2996_v13  ;;  %v2995_v41 = vadd.f32 %v2908_v33, %v2689_v31  ;;  %v2692_v34 = vadd.f32 %v4373_v48, %v2386_v20  ;;  %v3098_v24 = vmul.f32 %v2996_v13, %v2996_v13  ;;  %v2389_v54 = vadd.f32 %v6136_v12, %v2082_v9 }
 0x248   : > { %v3126_v14 = vadd.f32 %v3125_v37, %v3095_v50  ;;  %v3057_v18 = vadd.f32 %v3056_v27, %v2994_v60  ;;  %v4453_v19 = vpop.f32.mrf.mxu0  ;;  %v2612_v22 = vpop.f32.mrf.mxu1  ;;  %v2390_v60 = vadd.f32 %v6133_v36, %v2083_v16  ;;  %v6139_v50 = vld [vmem:[#allocation49_spill] sm:$0xff]  ;;  %v2391_v16 = vadd.f32 %v6141_v29, %v2084_v55  ;;  %v6146_v36 = vld [vmem:[#allocation52_spill] sm:$0xff]  ;;  %v6150_v55 = vld [vmem:[#allocation55_spill] sm:$0xff] }
 0x249   : > { %3027 = vst [vmem:[%s5817_s18 + $0x90] sm:$0xff] %v2995_v41  ;;  %v3097_v3 = vmul.f32 %v2995_v41, %v2995_v41  ;;  %v2998_v63 = vadd.f32 %v4453_v19, %v2692_v34  ;;  %v2691_v4 = vadd.f32 %v2612_v22, %v2385_v47  ;;  %v2392_v47 = vadd.f32 %v6140_v45, %v2085_v44 }
 0x24a   : > { %v3058_v62 = vadd.f32 %v3057_v18, %v2995_v41  ;;  %v3127_v2 = vadd.f32 %v3126_v14, %v3096_v42  ;;  %v2918_v15 = vpop.f32.mrf.mxu0  ;;  %v4376_v35 = vpop.f32.mrf.mxu1  ;;  %v6142_v42 = vld [vmem:[#allocation26_spill] sm:$0xff]  ;;  %v6143_v14 = vld [vmem:[#allocation51_spill] sm:$0xff] }
 0x24b   : > { %3030 = vst [vmem:[%s5817_s18 + $0xa8] sm:$0xff] %v2998_v63  ;;  %v2997_v25 = vadd.f32 %v2918_v15, %v2691_v4  ;;  %v2694_v39 = vadd.f32 %v4376_v35, %v2388_v61  ;;  %v3100_v31 = vmul.f32 %v2998_v63, %v2998_v63  ;;  %v2086_v18 = vadd.f32 %v6143_v14, %v6142_v42  ;;  %v6145_v15 = vld [vmem:[#allocation27_spill] sm:$0xff] }
 0x24c   : > { %v3128_v52 = vadd.f32 %v3127_v2, %v3097_v3  ;;  %v3059_v40 = vadd.f32 %v3058_v62, %v2996_v13  ;;  %v4456_v43 = vpop.f32.mrf.mxu0  ;;  %v2622_v6 = vpop.f32.mrf.mxu1  ;;  %v2087_v13 = vadd.f32 %v6139_v50, %v6138_v17  ;;  %v2089_v35 = vadd.f32 %v5795_v10, %v6145_v15 }
 0x24d   : > { %3029 = vst [vmem:[%s5817_s18 + $0xa0] sm:$0xff] %v2997_v25  ;;  %v3099_v0 = vmul.f32 %v2997_v25, %v2997_v25  ;;  %v3000_v1 = vadd.f32 %v4456_v43, %v2694_v39  ;;  %v2693_v11 = vadd.f32 %v2622_v6, %v2387_v26 }
 0x24e   : > { %v3060_v28 = vadd.f32 %v3059_v40, %v2997_v25  ;;  %v3129_v5 = vadd.f32 %v3128_v52, %v3098_v24  ;;  %v2928_v20 = vpop.f32.mrf.mxu0  ;;  %v4379_v58 = vpop.f32.mrf.mxu1  ;;  %v2394_v61 = vadd.f32 %v6144_v38, %v2087_v13  ;;  %v6147_v24 = vld [vmem:[#allocation28_spill] sm:$0xff]  ;;  %v6148_v52 = vld [vmem:[#allocation54_spill] sm:$0xff] }
 0x24f   : > { %3032 = vst [vmem:[%s5817_s18 + $0xb8] sm:$0xff] %v3000_v1  ;;  %v2999_v59 = vadd.f32 %v2928_v20, %v2693_v11  ;;  %v2696_v51 = vadd.f32 %v4379_v58, %v2390_v60  ;;  %v3102_v3 = vmul.f32 %v3000_v1, %v3000_v1  ;;  %v2393_v60 = vadd.f32 %v6146_v36, %v2086_v18 }
 0x250   : > { %v3130_v27 = vadd.f32 %v3129_v5, %v3099_v0  ;;  %v3061_v37 = vadd.f32 %v3060_v28, %v2998_v63  ;;  %v4459_v33 = vpop.f32.mrf.mxu0  ;;  %v2632_v48 = vpop.f32.mrf.mxu1  ;;  %v2088_v40 = vadd.f32 %v6148_v52, %v6147_v24 }
 0x251   : > { %3031 = vst [vmem:[%s5817_s18 + $0xb0] sm:$0xff] %v2999_v59  ;;  %v3101_v57 = vmul.f32 %v2999_v59, %v2999_v59  ;;  %v3002_v53 = vadd.f32 %v4459_v33, %v2696_v51  ;;  %v2695_v46 = vadd.f32 %v2632_v48, %v2389_v54 }
 0x252   : > { %v3062_v41 = vadd.f32 %v3061_v37, %v2999_v59  ;;  %v3131_v32 = vadd.f32 %v3130_v27, %v3100_v31  ;;  %v2938_v34 = vpop.f32.mrf.mxu0  ;;  %v4382_v21 = vpop.f32.mrf.mxu1  ;;  %v2395_v59 = vadd.f32 %v6150_v55, %v2088_v40 }
 0x253   : > { %3034 = vst [vmem:[%s5817_s18 + $0xc8] sm:$0xff] %v3002_v53  ;;  %v3001_v19 = vadd.f32 %v2938_v34, %v2695_v46  ;;  %v2698_v22 = vadd.f32 %v4382_v21, %v2392_v47  ;;  %v3104_v8 = vmul.f32 %v3002_v53, %v3002_v53 }
 0x254   : > { %v3132_v63 = vadd.f32 %v3131_v32, %v3101_v57  ;;  %v3063_v4 = vadd.f32 %v3062_v41, %v3000_v1  ;;  %v4462_v62 = vpop.f32.mrf.mxu0  ;;  %v2642_v2 = vpop.f32.mrf.mxu1  ;;  %v6149_v1 = vld [vmem:[#allocation53_spill] sm:$0xff] }
 0x255   : > { %3033 = vst [vmem:[%s5817_s18 + $0xc0] sm:$0xff] %v3001_v19  ;;  %v3103_v7 = vmul.f32 %v3001_v19, %v3001_v19  ;;  %v3004_v26 = vadd.f32 %v4462_v62, %v2698_v22  ;;  %v2697_v49 = vadd.f32 %v2642_v2, %v2391_v16  ;;  %v2396_v11 = vadd.f32 %v6149_v1, %v2089_v35 }
 0x256   : > { %v3064_v30 = vadd.f32 %v3063_v4, %v3001_v19  ;;  %v3133_v9 = vadd.f32 %v3132_v63, %v3102_v3  ;;  %v2948_v25 = vpop.f32.mrf.mxu0  ;;  %v4385_v39 = vpop.f32.mrf.mxu1 }
 0x257   : > { %3036 = vst [vmem:[%s5817_s18 + $0xd8] sm:$0xff] %v3004_v26  ;;  %v3003_v43 = vadd.f32 %v2948_v25, %v2697_v49  ;;  %v2700_v6 = vadd.f32 %v4385_v39, %v2394_v61  ;;  %v3106_v50 = vmul.f32 %v3004_v26, %v3004_v26 }
 0x258   : > { %v3134_v10 = vadd.f32 %v3133_v9, %v3103_v7  ;;  %v3065_v56 = vadd.f32 %v3064_v30, %v3002_v53  ;;  %v4465_v44 = vpop.f32.mrf.mxu0  ;;  %v2652_v0 = vpop.f32.mrf.mxu1 }
 0x259   : > { %3035 = vst [vmem:[%s5817_s18 + $0xd0] sm:$0xff] %v3003_v43  ;;  %v3105_v28 = vmul.f32 %v3003_v43, %v3003_v43  ;;  %v3006_v5 = vadd.f32 %v4465_v44, %v2700_v6  ;;  %v2699_v20 = vadd.f32 %v2652_v0, %v2393_v60 }
 0x25a   : > { %v3066_v58 = vadd.f32 %v3065_v56, %v3003_v43  ;;  %v3135_v12 = vadd.f32 %v3134_v10, %v3104_v8  ;;  %v2958_v54 = vpop.f32.mrf.mxu0  ;;  %v4388_v23 = vpop.f32.mrf.mxu1 }
 0x25b   : > { %3038 = vst [vmem:[%s5817_s18 + $0xe8] sm:$0xff] %v3006_v5  ;;  %v3005_v51 = vadd.f32 %v2958_v54, %v2699_v20  ;;  %v2702_v17 = vadd.f32 %v4388_v23, %v2396_v11  ;;  %v3108_v41 = vmul.f32 %v3006_v5, %v3006_v5 }
 0x25c   : > { %v3136_v13 = vadd.f32 %v3135_v12, %v3105_v28  ;;  %v3067_v31 = vadd.f32 %v3066_v58, %v3004_v26  ;;  %v4468_v27 = vpop.f32.mrf.mxu0  ;;  %v2662_v37 = vpop.f32.mrf.mxu1 }
 0x25d   : > { %3037 = vst [vmem:[%s5817_s18 + $0xe0] sm:$0xff] %v3005_v51  ;;  %v3107_v33 = vmul.f32 %v3005_v51, %v3005_v51  ;;  %v3008_v48 = vadd.f32 %v4468_v27, %v2702_v17  ;;  %v2701_v45 = vadd.f32 %v2662_v37, %v2395_v59 }
 0x25e   : > { %v3068_v47 = vadd.f32 %v3067_v31, %v3005_v51  ;;  %v3137_v57 = vadd.f32 %v3136_v13, %v3106_v50  ;;  %v2968_v53 = vpop.f32.mrf.mxu0 }
 0x25f   : > { %3040 = vst [vmem:[%s5817_s18 + $0xf8] sm:$0xff] %v3008_v48  ;;  %v3007_v46 = vadd.f32 %v2968_v53, %v2701_v45 }
 0x260   : > { %v3138_v32 = vadd.f32 %v3137_v57, %v3107_v33  ;;  %v3069_v34 = vadd.f32 %v3068_v47, %v3006_v5 }
 0x261   : > { %3039 = vst [vmem:[%s5817_s18 + $0xf0] sm:$0xff] %v3007_v46  ;;  %v3109_v21 = vmul.f32 %v3007_v46, %v3007_v46 }
 0x262   : > { %v3070_v29 = vadd.f32 %v3069_v34, %v3007_v46  ;;  %v3139_v16 = vadd.f32 %v3138_v32, %v3108_v41 }
 0x263   : > { %4648 = shalt.err (!%p4645_p0)
}
 0x264   : > { %s4649_s10 = scalar_lea.hbm %s5934_s22, 4096  ;;  %s4653_s27 = scalar_lea.hbm %s6001_s2, 8192 }
 0x265   : > { %p4650_p5 = scmp.ne.s32.totalorder %s5934_s22, %s4649_s10  ;;  %p4654_p4 = scmp.lt.s32.totalorder %s5934_s22, %s6001_s2 }
 0x266   : > { %p4655_p6 = scmp.lt.s32.totalorder %s4653_s27, %s4649_s10 }
 0x267   : > { %p4651_p2 = pnand %p4650_p5, %p6151_p11 }
 0x268   : > { %p4656_p8 = por %p4655_p6, %p4654_p4 }
 0x269   : > { %p4652_p1 = pneg %p4651_p2 }
 0x26b   : > { %p4657_p3 = pnand %p4656_p8, %p4652_p1 }
 0x26d   : > { %4660 = shalt.err (!%p4657_p3)
}
 0x26e   : > { %s4741_s18 = smov 128   ;;  %s4742_s20 = smov 8   ;;  %v3110_v42 = vmul.f32 %v3008_v48, %v3008_v48  ;;  %v3071_v14 = vadd.f32 %v3070_v29, %v3008_v48  ;;  %v3140_v18 = vadd.f32 %v3139_v16, %v3109_v21 }
 0x26f   : > { %4507 = dma.vmem_to_hbm [thread:$0]  (%p6151_p11), %s5936_s28, 4096, %s5934_s22, %s3150_s25, %s4741_s18, %s4741_s18, %s4742_s20  }
 0x270   : > { %v3072_v19 = vrot.slane %v3071_v14, 4  ;;  %v3141_v22 = vadd.f32 %v3140_v18, %v3110_v42  ;;  %s3307_s29 = sshll.u32 %s4886_s26, 1  ;;  %s3312_s17 = sshll.u32 %s4785_s16, 5 }
 0x271   : > { %s214_s4 = scalar_lea.vmem [#allocation9], %s3307_s29  ;;  %s3182_s25 = scalar_lea.hbm %s6002_s3, %s3312_s17 }
 0x272   : > { %v3073_v38 = vadd.f32 %v3072_v19, %v3071_v14  ;;  %v3142_v61 = vrot.slane %v3141_v22, 4  ;;  %s3184_s8 = sshll.u32 %s214_s4, 4  ;;  %s3155_s9 = scalar_lea.sflag [#allocation10], %s4886_s26  ;;  %s3185_s8 = int_to_ptr.vmem [resolvable:$true] %s3184_s8 }
 0x273   : > { %s4661_s7 = scalar_lea.vmem %s3185_s8, 32  ;;  %s4743_s10 = smov [#allocation9]  }
 0x274   : > { %v3074_v3 = vrot.slane %v3073_v38, 2  ;;  %v3143_v63 = vadd.f32 %v3142_v61, %v3141_v22  ;;  %p4662_p7 = scmp.ne.s32.totalorder %s3185_s8, %s4661_s7  ;;  %s4665_s16 = sshll.u32 %s4743_s10, 4  ;;  %s4666_s16 = int_to_ptr.vmem [resolvable:$false] %s4665_s16 }
 0x275   : > { %s4667_s11 = scalar_lea.vmem %s4666_s16, 64  ;;  %p4668_p12 = scmp.lt.s32.totalorder %s3185_s8, %s4666_s16 }
 0x276   : > { %v3075_v4 = vadd.f32 %v3074_v3, %v3073_v38  ;;  %v3144_v62 = vrot.slane %v3143_v63, 2  ;;  %p4663_p9 = pnand %p4662_p7, %p6151_p11  ;;  %p4669_p13 = scmp.lt.s32.totalorder %s4667_s11, %s4661_s7 }
 0x278   : > { %v3076_v2 = vrot.slane %v3075_v4, 1  ;;  %v3145_v15 = vadd.f32 %v3144_v62, %v3143_v63  ;;  %p4664_p10 = pneg %p4663_p9  ;;  %p4670_p0 = por %p4669_p13, %p4668_p12 }
 0x27a   : > { %v3077_v35 = vadd.f32 %v3076_v2, %v3075_v4  ;;  %v3146_v7 = vrot.slane %v3145_v15, 1  ;;  %p4671_p5 = pnand %p4670_p0, %p4664_p10 }
 0x27c   : > { %3078 = vst [vmem:[%s214_s4] sm:$0x1] %v3077_v35  ;;  %v3147_v26 = vadd.f32 %v3146_v7, %v3145_v15 }
 0x27e   : > { %3148 = vst [vmem:[%s214_s4 + $0x1] sm:$0x1] %v3147_v26 }
 0x27f   : > { %4674 = shalt.err (!%p4671_p5)
}
 0x280   : > { %s4675_s21 = scalar_lea.hbm %s3182_s25, 32  ;;  %s4679_s30 = scalar_lea.hbm %s6002_s3, 64 }
 0x281   : > { %p4676_p2 = scmp.ne.s32.totalorder %s3182_s25, %s4675_s21  ;;  %p4680_p6 = scmp.lt.s32.totalorder %s3182_s25, %s6002_s3 }
 0x282   : > { %p4681_p8 = scmp.lt.s32.totalorder %s4679_s30, %s4675_s21 }
 0x283   : > { %p4677_p1 = pnand %p4676_p2, %p6151_p11 }
 0x284   : > { %p4682_p3 = por %p4681_p8, %p4680_p6 }
 0x285   : > { %p4678_p4 = pneg %p4677_p1 }
 0x287   : > { %p4683_p7 = pnand %p4682_p3, %p4678_p4 }
 0x289   : > { %4686 = shalt.err (!%p4683_p7)
}
 0x28a   : > { %4508 = dma.vmem_to_hbm [thread:$0]  (%p6151_p11), %s3185_s8, 32, %s3182_s25, %s3155_s9  }
 0x28b PF: > { %s3196_s20 = sand.u32 1, %s4721_s12   ;;  %p6152_p9 = scmp.ne.s32.totalorder %s6025_s19, 0 }
 0x28c   : > { %p6153_p10 = scmp.ge.s32.totalorder %s4733_s15, 2  ;;  %s3197_s29 = scalar_lea.sflag [#allocation5], %s3196_s20 }
 0x28e   : > { %p4520_p12 = pnand %p6153_p10, %p6152_p9 }
 0x290   : > { %p4521_p13 = pneg %p4520_p12 }
 0x292   : > { %4712 = dma.done.wait (%p4521_p13), %s3197_s29, 4096  }
 0x293   : > { %4714 = vsyncadd (%p4521_p13), %s3197_s29, 4294963200  ;;  %s3206_s17 = scalar_lea.sflag [#allocation10], %s3196_s20 }
 0x294   : > { %4716 = dma.done.wait (%p4521_p13), %s3206_s17, 32  }
 0x295   : > { %4718 = vsyncadd (%p4521_p13), %s3206_s17, 4294967264  ;;  %p21_p11 = scmp.ge.s32.totalorder %s4818_s24, 4   ;;  %s6154_s12 = smov %s4725_s13 }
 0x296   : > { %s6155_s13 = smov %s4729_s14  ;;  %s6156_s14 = smov %s4838_s5 }
 0x297   : > { %s6157_s15 = smov %s4818_s24  ;;  %23 = sbr.rel (!%p21_p11) target bundleno = 8 (0x8), region = 105 }
 0x29c   :  { %3211 = vsyncpa [#allocation4], 1 }
 0x29d   :  { %3213 = vsyncpa [#allocation4 + $0x1], 1 }
 0x29e   :  { %3214 = vsyncpa [#allocation7], 1 }
 0x29f   :  { %3215 = vsyncpa [#allocation5], 1 }
 0x2a0   :  { %3217 = vsyncpa [#allocation5 + $0x1], 1 }
 0x2a1   :  { %3218 = vsyncpa [#allocation10], 1 }
 0x2a2   :  { %3220 = vsyncpa [#allocation10 + $0x1], 1 }

</bundles_post_ra>
